<compile_context>
chip_gen: v7x
topology: tpu7x:2x2x1
jax: 0.10.0
libtpu: 0.0.40
codegen_flags: <defaults>
</compile_context>

<pallas_src>
import functools

import jax
import jax.numpy as jnp
import numpy as np
from jax.experimental import pallas as pl
from jax.experimental.pallas import tpu as pltpu

_VMEM_LIMIT = 48 * 1024 * 1024  # fits v7x's 64 MiB physical VMEM with headroom


# ----------------------------------------------------------------------------
# Kernel 1: multi-head attention + residual add + LayerNorm (fused epilogue)
# ----------------------------------------------------------------------------
def _make_mha_ln_kernel(heads, head_dim, self_attn, eps, mxu_dtype):
    E = heads * head_dim
    scale = 1.0 / (float(head_dim) ** 0.5)
    approx = mxu_dtype != jnp.float32

    def kernel(*refs):
        if self_attn:
            q_ref, mask_ref, w_ref, g_ref, b_ref, o_ref = refs
        else:
            q_ref, k_ref, v_ref, mask_ref, w_ref, g_ref, b_ref, o_ref = refs

        q_in = q_ref[0]                                   # (Lq, E) f32
        Lq = q_in.shape[0]
        m = mask_ref[0, 0]                                # (Lq, Lk) f32
        Lk = m.shape[1]

        # Additive mask bias computed once for all heads.
        # (masked_fill(mask==0, -1e20) then scale  ==  scaled scores + (-1e20))
        bias = jnp.where(m == 0.0, jnp.float32(-1e20), jnp.float32(0.0))

        w = w_ref[...]                                    # (E, 3E) [Wq^T|Wk^T|Wv^T]
        if self_attn:
            # One wide MXU pass for the fused QKV projection (q == k == v).
            qkv = jnp.dot(q_in.astype(mxu_dtype), w,
                          preferred_element_type=jnp.float32)        # (Lq, 3E)
            qp, kp, vp = qkv[:, :E], qkv[:, E:2 * E], qkv[:, 2 * E:]
        else:
            k_in = k_ref[0]
            v_in = v_ref[0]
            qp = jnp.dot(q_in.astype(mxu_dtype), w[:, :E],
                         preferred_element_type=jnp.float32)
            kp = jnp.dot(k_in.astype(mxu_dtype), w[:, E:2 * E],
                         preferred_element_type=jnp.float32)
            vp = jnp.dot(v_in.astype(mxu_dtype), w[:, 2 * E:],
                         preferred_element_type=jnp.float32)

        # Heads-batched layout (heads, L, head_dim); 1/sqrt(d) folded into Q.
        qh = pltpu.einshape("lhd->hld", (qp * scale).reshape(Lq, heads, head_dim))
        kh = pltpu.einshape("lhd->hld", kp.reshape(Lk, heads, head_dim))
        vh = pltpu.einshape("lhd->hld", vp.reshape(Lk, heads, head_dim))

        s = jnp.einsum("hqd,hkd->hqk", qh.astype(mxu_dtype), kh.astype(mxu_dtype),
                       preferred_element_type=jnp.float32)            # (h, Lq, Lk)
        s = s + bias[None, :, :]

        # Softmax in f32 (numerically safe on v5e/v6e/v7x).
        smax = jnp.max(s, axis=-1, keepdims=True)
        p = jnp.exp(s - smax)
        denom = jnp.sum(p, axis=-1, keepdims=True)
        if approx:
            attn = p * pl.reciprocal(denom, approx=True)   # EUP slot, off VPU
        else:
            attn = p / denom

        ctx = jnp.einsum("hqk,hkd->hqd", attn.astype(mxu_dtype), vh.astype(mxu_dtype),
                         preferred_element_type=jnp.float32)           # (h, Lq, d)
        ctx = pltpu.einshape("hqd->qhd", ctx).reshape(Lq, E)

        # Fused residual add + LayerNorm epilogue (all f32).
        s2 = ctx + q_in
        mean = jnp.mean(s2, axis=-1, keepdims=True)
        var = jnp.mean(jnp.square(s2 - mean), axis=-1, keepdims=True)
        y = (s2 - mean) * jax.lax.rsqrt(var + eps)
        o_ref[0] = (y * g_ref[...] + b_ref[...]).astype(o_ref.dtype)

    return kernel


def mha_add_ln(q_in, k_in, v_in, mask, wq, wk, wv, gamma, beta, heads, *,
               self_attn, mxu_dtype=jnp.bfloat16, eps=1e-5):
    """LayerNorm(MHA(q_in, k_in, v_in, mask) + q_in).

    Projections: Wq @ q_in, Wk @ k_in, Wv @ v_in (nn.Linear convention).
    """
    N, Lq, E = q_in.shape
    Lk = k_in.shape[1]
    head_dim = E // heads
    assert head_dim * heads == E

    # Fused, pre-transposed projection weight: x @ W_qkv -> [Q | K | V].
    w_qkv = jnp.concatenate([wq.T, wk.T, wv.T], axis=1).astype(mxu_dtype)  # (E, 3E)
    g2 = gamma.reshape(1, E).astype(jnp.float32)
    b2 = beta.reshape(1, E).astype(jnp.float32)

    kernel = _make_mha_ln_kernel(heads, head_dim, self_attn, eps, mxu_dtype)

    wspec = pl.BlockSpec((E, 3 * E), lambda *_: (0, 0))
    gspec = pl.BlockSpec((1, E), lambda *_: (0, 0))

    if self_attn:
        # q == k == v: one full-sequence block per batch element so the fused
        # QKV projection is a single matmul; batch axis is "parallel".
        grid = (N,)
        in_specs = [
            pl.BlockSpec((1, Lq, E), lambda n: (n, 0, 0)),
            pl.BlockSpec((1, 1, Lq, Lk), lambda n: (n, 0, 0, 0)),
            wspec, gspec, gspec,
        ]
        out_specs = pl.BlockSpec((1, Lq, E), lambda n: (n, 0, 0))
        dims = ("parallel",)
        args = (q_in, mask, w_qkv, g2, b2)
    else:
        # Cross-attention: tile the query axis, keep K/V resident per batch.
        tq = Lq if Lq <= 128 else 128
        grid = (N, pl.cdiv(Lq, tq))
        in_specs = [
            pl.BlockSpec((1, tq, E), lambda n, i: (n, i, 0)),
            pl.BlockSpec((1, Lk, E), lambda n, i: (n, 0, 0)),
            pl.BlockSpec((1, Lk, E), lambda n, i: (n, 0, 0)),
            pl.BlockSpec((1, 1, tq, Lk), lambda n, i: (n, 0, i, 0)),
            wspec, gspec, gspec,
        ]
        out_specs = pl.BlockSpec((1, tq, E), lambda n, i: (n, i, 0))
        dims = ("parallel", "parallel")
        args = (q_in, k_in, v_in, mask, w_qkv, g2, b2)

    return pl.pallas_call(
        kernel,
        out_shape=jax.ShapeDtypeStruct((N, Lq, E), jnp.float32),
        grid=grid,
        in_specs=in_specs,
        out_specs=out_specs,
        compiler_params=pltpu.CompilerParams(
            dimension_semantics=dims, vmem_limit_bytes=_VMEM_LIMIT),
    )(*args)


# ----------------------------------------------------------------------------
# Kernel 2: feed-forward (Linear -> ReLU -> Linear) + residual + LayerNorm
# ----------------------------------------------------------------------------
def _ffn_ln_kernel(x_ref, w1_ref, b1_ref, w2_ref, b2_ref, g_ref, be_ref, o_ref,
                   *, eps, mxu_dtype):
    x = x_ref[...]                                         # (TM, E) f32
    h = jnp.dot(x.astype(mxu_dtype), w1_ref[...],
                preferred_element_type=jnp.float32) + b1_ref[...]
    h = jnp.maximum(h, 0.0)
    f = jnp.dot(h.astype(mxu_dtype), w2_ref[...],
                preferred_element_type=jnp.float32) + b2_ref[...]
    s = f + x                                              # residual
    mean = jnp.mean(s, axis=-1, keepdims=True)
    var = jnp.mean(jnp.square(s - mean), axis=-1, keepdims=True)
    y = (s - mean) * jax.lax.rsqrt(var + eps)
    o_ref[...] = (y * g_ref[...] + be_ref[...]).astype(o_ref.dtype)


def ffn_add_ln(x, w1, b1, w2, b2, gamma, beta, *, mxu_dtype=jnp.bfloat16, eps=1e-5):
    N, L, E = x.shape
    H = w1.shape[0]
    NL = N * L
    x2 = x.reshape(NL, E)
    tm = NL if NL <= 256 else 256       # row tiles; weights stay resident
    kernel = functools.partial(_ffn_ln_kernel, eps=eps, mxu_dtype=mxu_dtype)
    out = pl.pallas_call(
        kernel,
        out_shape=jax.ShapeDtypeStruct((NL, E), jnp.float32),
        grid=(pl.cdiv(NL, tm),),
        in_specs=[
            pl.BlockSpec((tm, E), lambda i: (i, 0)),
            pl.BlockSpec((E, H), lambda i: (0, 0)),
            pl.BlockSpec((1, H), lambda i: (0, 0)),
            pl.BlockSpec((H, E), lambda i: (0, 0)),
            pl.BlockSpec((1, E), lambda i: (0, 0)),
            pl.BlockSpec((1, E), lambda i: (0, 0)),
            pl.BlockSpec((1, E), lambda i: (0, 0)),
        ],
        out_specs=pl.BlockSpec((tm, E), lambda i: (i, 0)),
        compiler_params=pltpu.CompilerParams(
            dimension_semantics=("parallel",), vmem_limit_bytes=_VMEM_LIMIT),
    )(x2,
      w1.T.astype(mxu_dtype), b1.reshape(1, H).astype(jnp.float32),
      w2.T.astype(mxu_dtype), b2.reshape(1, E).astype(jnp.float32),
      gamma.reshape(1, E).astype(jnp.float32), beta.reshape(1, E).astype(jnp.float32))
    return out.reshape(N, L, E)


# ----------------------------------------------------------------------------
# Decoderblock forward (glue in plain JAX; hot paths fused in Pallas)
# ----------------------------------------------------------------------------
@functools.partial(jax.jit, static_argnames=("heads", "mxu_dtype"))
def decoder_block(x, value, key, src_mask, tar_mask, params, heads,
                  mxu_dtype=jnp.bfloat16):
    p = params
    # query = dropout(norm(selfattention(x, x, x, tar_mask) + x))  (dropout = id)
    query = mha_add_ln(x, x, x, tar_mask,
                       p["dec_wq"], p["dec_wk"], p["dec_wv"],
                       p["norm_g"], p["norm_b"], heads,
                       self_attn=True, mxu_dtype=mxu_dtype)
    # Transformerblock:  attn = selfattention(value, key, query, src_mask)
    #                    x2   = dropout(norm1(attn + query))
    x2 = mha_add_ln(query, key, value, src_mask,
                    p["tb_wq"], p["tb_wk"], p["tb_wv"],
                    p["norm1_g"], p["norm1_b"], heads,
                    self_attn=False, mxu_dtype=mxu_dtype)
    # out = dropout(norm2(feed_forward(x2) + x2))
    out = ffn_add_ln(x2, p["ff_w1"], p["ff_b1"], p["ff_w2"], p["ff_b2"],
                     p["norm2_g"], p["norm2_b"], mxu_dtype=mxu_dtype)
    return out


# ----------------------------------------------------------------------------
# Pure-JAX reference (correctness check)
# ----------------------------------------------------------------------------
def _ref_attention(values, keys, queries, mask, wv, wk, wq, heads):
    N, Lq, E = queries.shape
    D = E // heads
    v = (values @ wv.T).reshape(N, -1, heads, D)
    k = (keys @ wk.T).reshape(N, -1, heads, D)
    q = (queries @ wq.T).reshape(N, Lq, heads, D)
    s = jnp.einsum("nqhd,nkhd->nhqk", q, k)
    s = jnp.where(mask == 0, -1e20, s)
    a = jax.nn.softmax(s / (D ** 0.5), axis=3)
    return jnp.einsum("nhqk,nkhd->nqhd", a, v).reshape(N, Lq, E)


def _ref_add_ln(a, b, g, be, eps=1e-5):
    s = a + b
    mu = s.mean(-1, keepdims=True)
    var = ((s - mu) ** 2).mean(-1, keepdims=True)
    return (s - mu) / jnp.sqrt(var + eps) * g + be


def _ref_block(x, value, key, src_mask, tar_mask, p, heads):
    a1 = _ref_attention(x, x, x, tar_mask,
                        p["dec_wv"], p["dec_wk"], p["dec_wq"], heads)
    q = _ref_add_ln(a1, x, p["norm_g"], p["norm_b"])
    a2 = _ref_attention(value, key, q, src_mask,
                        p["tb_wv"], p["tb_wk"], p["tb_wq"], heads)
    x2 = _ref_add_ln(a2, q, p["norm1_g"], p["norm1_b"])
    h = jnp.maximum(x2 @ p["ff_w1"].T + p["ff_b1"], 0.0)
    f = h @ p["ff_w2"].T + p["ff_b2"]
    return _ref_add_ln(f, x2, p["norm2_g"], p["norm2_b"])


if __name__ == "__main__":
    N = 2
    L_dec, L_enc = 8, 16
    embed_size, heads, forward_expansion = 256, 2, 2     # head_dim = 128 (lane-aligned)
    hidden = forward_expansion * embed_size

    root = jax.random.PRNGKey(0)
    ks = jax.random.split(root, 16)

    def w(k, shape, scale=0.05):
        return scale * jax.random.normal(k, shape, dtype=jnp.float32)

    params = {
        # decoder self-attention projections (fc_out unused by the reference forward)
        "dec_wq": w(ks[0], (embed_size, embed_size)),
        "dec_wk": w(ks[1], (embed_size, embed_size)),
        "dec_wv": w(ks[2], (embed_size, embed_size)),
        "norm_g": jnp.ones((embed_size,), jnp.float32),
        "norm_b": jnp.zeros((embed_size,), jnp.float32),
        # transformer-block cross-attention
        "tb_wq": w(ks[3], (embed_size, embed_size)),
        "tb_wk": w(ks[4], (embed_size, embed_size)),
        "tb_wv": w(ks[5], (embed_size, embed_size)),
        "norm1_g": jnp.ones((embed_size,), jnp.float32),
        "norm1_b": jnp.zeros((embed_size,), jnp.float32),
        "norm2_g": jnp.ones((embed_size,), jnp.float32),
        "norm2_b": jnp.zeros((embed_size,), jnp.float32),
        # feed forward
        "ff_w1": w(ks[6], (hidden, embed_size)),
        "ff_b1": w(ks[7], (hidden,)),
        "ff_w2": w(ks[8], (embed_size, hidden)),
        "ff_b2": w(ks[9], (embed_size,)),
    }

    x = jax.random.normal(ks[10], (N, L_dec, embed_size), dtype=jnp.float32)
    value = jax.random.normal(ks[11], (N, L_enc, embed_size), dtype=jnp.float32)
    key_in = jax.random.normal(ks[12], (N, L_enc, embed_size), dtype=jnp.float32)

    # target mask: causal over decoder tokens; source mask: all valid
    tar_mask = jnp.tril(jnp.ones((L_dec, L_dec), jnp.float32))[None, None].repeat(N, 0)
    src_mask = jnp.ones((N, 1, L_dec, L_enc), jnp.float32)

    ref = _ref_block(x, value, key_in, src_mask, tar_mask, params, heads)

    # f32 MXU path: tight check against the pure-JAX reference.
    out_f32 = decoder_block(x, value, key_in, src_mask, tar_mask, params,
                            heads=heads, mxu_dtype=jnp.float32)
    out_f32 = jax.block_until_ready(out_f32)
    np.testing.assert_allclose(np.asarray(out_f32), np.asarray(ref),
                               atol=1e-3, rtol=1e-3)

    # bf16 MXU operands (default fast path; f32 accumulation): looser tolerance.
    out_bf16 = decoder_block(x, value, key_in, src_mask, tar_mask, params,
                             heads=heads, mxu_dtype=jnp.bfloat16)
    out_bf16 = jax.block_until_ready(out_bf16)
    np.testing.assert_allclose(np.asarray(out_bf16), np.asarray(ref),
                               atol=5e-2, rtol=5e-2)

    print("KERNEL_OK")
</pallas_src>

<mosaic_0001>
module attributes {stable_mosaic.version = 11 : i64} {
  func.func @kernel(%arg0: i32, %arg1: memref<1x8x256xf32, #tpu.memory_space<vmem>>, %arg2: memref<1x1x8x8xf32, #tpu.memory_space<vmem>>, %arg3: memref<256x768xf32, #tpu.memory_space<vmem>>, %arg4: memref<1x256xf32, #tpu.memory_space<vmem>>, %arg5: memref<1x256xf32, #tpu.memory_space<vmem>>, %arg6: memref<1x8x256xf32, #tpu.memory_space<vmem>>) attributes {dimension_semantics = [#tpu.dimension_semantics<parallel>], iteration_bounds = array<i64: 2>, scalar_prefetch = 0 : i64, scratch_operands = 0 : i64, tpu.core_type = #tpu.core_type<tc>, window_params = [{transform_indices = @transform_0, window_bounds = array<i64: 1, 8, 256>}, {transform_indices = @transform_1, window_bounds = array<i64: 1, 1, 8, 8>}, {pipeline_mode = #tpu.pipeline_mode<synchronous>, transform_indices = @transform_2, window_bounds = array<i64: 256, 768>}, {pipeline_mode = #tpu.pipeline_mode<synchronous>, transform_indices = @transform_3, window_bounds = array<i64: 1, 256>}, {pipeline_mode = #tpu.pipeline_mode<synchronous>, transform_indices = @transform_4, window_bounds = array<i64: 1, 256>}, {transform_indices = @transform_5, window_bounds = array<i64: 1, 8, 256>}]} {
    %c0 = arith.constant 0 : index
    %c0_0 = arith.constant 0 : index
    %c0_1 = arith.constant 0 : index
    %0 = vector.load %arg1[%c0, %c0_0, %c0_1] : memref<1x8x256xf32, #tpu.memory_space<vmem>>, vector<1x8x256xf32>
    %1 = vector.shape_cast %0 : vector<1x8x256xf32> to vector<8x256xf32>
    %c0_2 = arith.constant 0 : index
    %c0_3 = arith.constant 0 : index
    %c0_4 = arith.constant 0 : index
    %c0_5 = arith.constant 0 : index
    %2 = vector.load %arg2[%c0_2, %c0_3, %c0_4, %c0_5] : memref<1x1x8x8xf32, #tpu.memory_space<vmem>>, vector<1x1x8x8xf32>
    %3 = vector.shape_cast %2 : vector<1x1x8x8xf32> to vector<8x8xf32>
    %cst = arith.constant 0.000000e+00 : f32
    %4 = vector.broadcast %cst : f32 to vector<8x8xf32>
    %5 = arith.cmpf oeq, %3, %4 : vector<8x8xf32>
    %cst_6 = arith.constant -1.000000e+20 : f32
    %cst_7 = arith.constant 0.000000e+00 : f32
    %6 = vector.broadcast %cst_6 : f32 to vector<8x8xf32>
    %7 = vector.broadcast %cst_7 : f32 to vector<8x8xf32>
    %8 = arith.select %5, %6, %7 : vector<8x8xi1>, vector<8x8xf32>
    %c0_8 = arith.constant 0 : index
    %c0_9 = arith.constant 0 : index
    %9 = vector.load %arg3[%c0_8, %c0_9] : memref<256x768xf32, #tpu.memory_space<vmem>>, vector<256x768xf32>
    %cst_10 = arith.constant dense<0.000000e+00> : vector<8x768xf32>
    %10 = tpu.matmul %1, %9, %cst_10 {dimension_numbers = #tpu.dot_dimension_numbers<[1], [0], [0], [1], [0, 0, 1, 1], [], []>} : vector<8x256xf32>, vector<256x768xf32>, vector<8x768xf32> -> vector<8x768xf32>
    %11 = vector.extract_strided_slice %10 {offsets = [0, 0], sizes = [8, 256], strides = [1, 1]} : vector<8x768xf32> to vector<8x256xf32>
    %12 = vector.extract_strided_slice %10 {offsets = [0, 256], sizes = [8, 256], strides = [1, 1]} : vector<8x768xf32> to vector<8x256xf32>
    %13 = vector.extract_strided_slice %10 {offsets = [0, 512], sizes = [8, 256], strides = [1, 1]} : vector<8x768xf32> to vector<8x256xf32>
    %cst_11 = arith.constant 0.0883883461 : f32
    %14 = vector.broadcast %cst_11 : f32 to vector<8x256xf32>
    %15 = arith.mulf %11, %14 : vector<8x256xf32>
    %16 = vector.shape_cast %15 : vector<8x256xf32> to vector<8x2x128xf32>
    %17 = tpu.transpose %16, [1, 0, 2] : vector<8x2x128xf32> -> vector<2x8x128xf32>
    %18 = vector.shape_cast %12 : vector<8x256xf32> to vector<8x2x128xf32>
    %19 = tpu.transpose %18, [1, 0, 2] : vector<8x2x128xf32> -> vector<2x8x128xf32>
    %20 = vector.shape_cast %13 : vector<8x256xf32> to vector<8x2x128xf32>
    %21 = tpu.transpose %20, [1, 0, 2] : vector<8x2x128xf32> -> vector<2x8x128xf32>
    "tpu.trace_start"() <{level = 10 : i32, message = "hqd,hkd->hqk"}> : () -> ()
    %cst_12 = arith.constant dense<0.000000e+00> : vector<2x8x8xf32>
    %22 = tpu.matmul %17, %19, %cst_12 {dimension_numbers = #tpu.dot_dimension_numbers<[2], [2], [1], [1], [0, 0, 0, 1, 1, 1], [0], [0]>} : vector<2x8x128xf32>, vector<2x8x128xf32>, vector<2x8x8xf32> -> vector<2x8x8xf32>
    "tpu.trace_stop"() : () -> ()
    %23 = vector.shape_cast %8 : vector<8x8xf32> to vector<1x8x8xf32>
    %24 = vector.broadcast %23 : vector<1x8x8xf32> to vector<2x8x8xf32>
    %25 = arith.addf %22, %24 : vector<2x8x8xf32>
    %cst_13 = arith.constant dense<0xFF800000> : vector<2x8xf32>
    %26 = vector.multi_reduction <maximumf>, %25, %cst_13 [2] : vector<2x8x8xf32> to vector<2x8xf32>
    %27 = vector.shape_cast %26 : vector<2x8xf32> to vector<2x8x1xf32>
    %28 = vector.broadcast %27 : vector<2x8x1xf32> to vector<2x8x8xf32>
    %29 = arith.subf %25, %28 : vector<2x8x8xf32>
    %30 = math.exp %29 : vector<2x8x8xf32>
    %cst_14 = arith.constant dense<0.000000e+00> : vector<2x8xf32>
    %31 = vector.multi_reduction <add>, %30, %cst_14 [2] : vector<2x8x8xf32> to vector<2x8xf32>
    %32 = vector.shape_cast %31 : vector<2x8xf32> to vector<2x8x1xf32>
    %33 = vector.broadcast %32 : vector<2x8x1xf32> to vector<2x8x8xf32>
    %34 = arith.divf %30, %33 : vector<2x8x8xf32>
    "tpu.trace_start"() <{level = 10 : i32, message = "hqk,hkd->hqd"}> : () -> ()
    %cst_15 = arith.constant dense<0.000000e+00> : vector<2x8x128xf32>
    %35 = tpu.matmul %34, %21, %cst_15 {dimension_numbers = #tpu.dot_dimension_numbers<[2], [1], [1], [2], [0, 0, 0, 1, 1, 2], [0], [0]>} : vector<2x8x8xf32>, vector<2x8x128xf32>, vector<2x8x128xf32> -> vector<2x8x128xf32>
    "tpu.trace_stop"() : () -> ()
    %36 = tpu.transpose %35, [1, 0, 2] : vector<2x8x128xf32> -> vector<8x2x128xf32>
    %37 = vector.shape_cast %36 : vector<8x2x128xf32> to vector<8x256xf32>
    %38 = arith.addf %37, %1 : vector<8x256xf32>
    %cst_16 = arith.constant dense<0.000000e+00> : vector<8xf32>
    %39 = vector.multi_reduction <add>, %38, %cst_16 [1] : vector<8x256xf32> to vector<8xf32>
    %40 = vector.shape_cast %39 : vector<8xf32> to vector<8x1xf32>
    %cst_17 = arith.constant 2.560000e+02 : f32
    %41 = vector.broadcast %cst_17 : f32 to vector<8x1xf32>
    %42 = arith.divf %40, %41 : vector<8x1xf32>
    %43 = vector.broadcast %42 : vector<8x1xf32> to vector<8x256xf32>
    %44 = arith.subf %38, %43 : vector<8x256xf32>
    %45 = arith.mulf %44, %44 : vector<8x256xf32>
    %cst_18 = arith.constant dense<0.000000e+00> : vector<8xf32>
    %46 = vector.multi_reduction <add>, %45, %cst_18 [1] : vector<8x256xf32> to vector<8xf32>
    %47 = vector.shape_cast %46 : vector<8xf32> to vector<8x1xf32>
    %cst_19 = arith.constant 2.560000e+02 : f32
    %48 = vector.broadcast %cst_19 : f32 to vector<8x1xf32>
    %49 = arith.divf %47, %48 : vector<8x1xf32>
    %50 = vector.broadcast %42 : vector<8x1xf32> to vector<8x256xf32>
    %51 = arith.subf %38, %50 : vector<8x256xf32>
    %cst_20 = arith.constant 9.99999974E-6 : f32
    %52 = vector.broadcast %cst_20 : f32 to vector<8x1xf32>
    %53 = arith.addf %49, %52 : vector<8x1xf32>
    %54 = math.rsqrt %53 : vector<8x1xf32>
    %55 = vector.broadcast %54 : vector<8x1xf32> to vector<8x256xf32>
    %56 = arith.mulf %51, %55 : vector<8x256xf32>
    %c0_21 = arith.constant 0 : index
    %c0_22 = arith.constant 0 : index
    %57 = vector.load %arg4[%c0_21, %c0_22] : memref<1x256xf32, #tpu.memory_space<vmem>>, vector<1x256xf32>
    %58 = vector.broadcast %57 : vector<1x256xf32> to vector<8x256xf32>
    %59 = arith.mulf %56, %58 : vector<8x256xf32>
    %c0_23 = arith.constant 0 : index
    %c0_24 = arith.constant 0 : index
    %60 = vector.load %arg5[%c0_23, %c0_24] : memref<1x256xf32, #tpu.memory_space<vmem>>, vector<1x256xf32>
    %61 = vector.broadcast %60 : vector<1x256xf32> to vector<8x256xf32>
    %62 = arith.addf %59, %61 : vector<8x256xf32>
    %c0_25 = arith.constant 0 : index
    %c0_26 = arith.constant 0 : index
    %c0_27 = arith.constant 0 : index
    %63 = vector.load %arg6[%c0_25, %c0_26, %c0_27] : memref<1x8x256xf32, #tpu.memory_space<vmem>>, vector<1x8x256xf32>
    %64 = vector.shape_cast %63 : vector<1x8x256xf32> to vector<8x256xf32>
    %65 = vector.shape_cast %62 : vector<8x256xf32> to vector<1x8x256xf32>
    tpu.vector_store %arg6[%c0_25, %c0_26, %c0_27], %65 {strides = array<i32>} : memref<1x8x256xf32, #tpu.memory_space<vmem>>, vector<1x8x256xf32>,
    return
  }
  func.func @transform_0(%arg0: i32) -> (i32, i32, i32) {
    %c0_i32 = arith.constant 0 : i32
    %c0_i32_0 = arith.constant 0 : i32
    %c0_i32_1 = arith.constant 0 : i32
    return %arg0, %c0_i32, %c0_i32_0 : i32, i32, i32
  }
  func.func @transform_1(%arg0: i32) -> (i32, i32, i32, i32) {
    %c0_i32 = arith.constant 0 : i32
    %c0_i32_0 = arith.constant 0 : i32
    %c0_i32_1 = arith.constant 0 : i32
    %c0_i32_2 = arith.constant 0 : i32
    return %arg0, %c0_i32, %c0_i32_0, %c0_i32_1 : i32, i32, i32, i32
  }
  func.func @transform_2(%arg0: i32) -> (i32, i32) {
    %c0_i32 = arith.constant 0 : i32
    %c0_i32_0 = arith.constant 0 : i32
    %c0_i32_1 = arith.constant 0 : i32
    return %c0_i32, %c0_i32_0 : i32, i32
  }
  func.func @transform_3(%arg0: i32) -> (i32, i32) {
    %c0_i32 = arith.constant 0 : i32
    %c0_i32_0 = arith.constant 0 : i32
    %c0_i32_1 = arith.constant 0 : i32
    return %c0_i32, %c0_i32_0 : i32, i32
  }
  func.func @transform_4(%arg0: i32) -> (i32, i32) {
    %c0_i32 = arith.constant 0 : i32
    %c0_i32_0 = arith.constant 0 : i32
    %c0_i32_1 = arith.constant 0 : i32
    return %c0_i32, %c0_i32_0 : i32, i32
  }
  func.func @transform_5(%arg0: i32) -> (i32, i32, i32) {
    %c0_i32 = arith.constant 0 : i32
    %c0_i32_0 = arith.constant 0 : i32
    %c0_i32_1 = arith.constant 0 : i32
    return %arg0, %c0_i32, %c0_i32_0 : i32, i32, i32
  }
}

module attributes {stable_mosaic.version = 11 : i64} {
  func.func @kernel(%arg0: i32, %arg1: i32, %arg2: memref<1x8x256xf32, #tpu.memory_space<vmem>>, %arg3: memref<1x16x256xf32, #tpu.memory_space<vmem>>, %arg4: memref<1x16x256xf32, #tpu.memory_space<vmem>>, %arg5: memref<1x1x8x16xf32, #tpu.memory_space<vmem>>, %arg6: memref<256x768xf32, #tpu.memory_space<vmem>>, %arg7: memref<1x256xf32, #tpu.memory_space<vmem>>, %arg8: memref<1x256xf32, #tpu.memory_space<vmem>>, %arg9: memref<1x8x256xf32, #tpu.memory_space<vmem>>) attributes {dimension_semantics = [#tpu.dimension_semantics<parallel>, #tpu.dimension_semantics<parallel>], iteration_bounds = array<i64: 2, 1>, scalar_prefetch = 0 : i64, scratch_operands = 0 : i64, tpu.core_type = #tpu.core_type<tc>, window_params = [{transform_indices = @transform_0, window_bounds = array<i64: 1, 8, 256>}, {transform_indices = @transform_1, window_bounds = array<i64: 1, 16, 256>}, {transform_indices = @transform_2, window_bounds = array<i64: 1, 16, 256>}, {transform_indices = @transform_3, window_bounds = array<i64: 1, 1, 8, 16>}, {pipeline_mode = #tpu.pipeline_mode<synchronous>, transform_indices = @transform_4, window_bounds = array<i64: 256, 768>}, {pipeline_mode = #tpu.pipeline_mode<synchronous>, transform_indices = @transform_5, window_bounds = array<i64: 1, 256>}, {pipeline_mode = #tpu.pipeline_mode<synchronous>, transform_indices = @transform_6, window_bounds = array<i64: 1, 256>}, {transform_indices = @transform_7, window_bounds = array<i64: 1, 8, 256>}]} {
    %c0 = arith.constant 0 : index
    %c0_0 = arith.constant 0 : index
    %c0_1 = arith.constant 0 : index
    %0 = vector.load %arg2[%c0, %c0_0, %c0_1] : memref<1x8x256xf32, #tpu.memory_space<vmem>>, vector<1x8x256xf32>
    %1 = vector.shape_cast %0 : vector<1x8x256xf32> to vector<8x256xf32>
    %c0_2 = arith.constant 0 : index
    %c0_3 = arith.constant 0 : index
    %c0_4 = arith.constant 0 : index
    %c0_5 = arith.constant 0 : index
    %2 = vector.load %arg5[%c0_2, %c0_3, %c0_4, %c0_5] : memref<1x1x8x16xf32, #tpu.memory_space<vmem>>, vector<1x1x8x16xf32>
    %3 = vector.shape_cast %2 : vector<1x1x8x16xf32> to vector<8x16xf32>
    %cst = arith.constant 0.000000e+00 : f32
    %4 = vector.broadcast %cst : f32 to vector<8x16xf32>
    %5 = arith.cmpf oeq, %3, %4 : vector<8x16xf32>
    %cst_6 = arith.constant -1.000000e+20 : f32
    %cst_7 = arith.constant 0.000000e+00 : f32
    %6 = vector.broadcast %cst_6 : f32 to vector<8x16xf32>
    %7 = vector.broadcast %cst_7 : f32 to vector<8x16xf32>
    %8 = arith.select %5, %6, %7 : vector<8x16xi1>, vector<8x16xf32>
    %c0_8 = arith.constant 0 : index
    %c0_9 = arith.constant 0 : index
    %9 = vector.load %arg6[%c0_8, %c0_9] : memref<256x768xf32, #tpu.memory_space<vmem>>, vector<256x768xf32>
    %c0_10 = arith.constant 0 : index
    %c0_11 = arith.constant 0 : index
    %c0_12 = arith.constant 0 : index
    %10 = vector.load %arg3[%c0_10, %c0_11, %c0_12] : memref<1x16x256xf32, #tpu.memory_space<vmem>>, vector<1x16x256xf32>
    %11 = vector.shape_cast %10 : vector<1x16x256xf32> to vector<16x256xf32>
    %c0_13 = arith.constant 0 : index
    %c0_14 = arith.constant 0 : index
    %c0_15 = arith.constant 0 : index
    %12 = vector.load %arg4[%c0_13, %c0_14, %c0_15] : memref<1x16x256xf32, #tpu.memory_space<vmem>>, vector<1x16x256xf32>
    %13 = vector.shape_cast %12 : vector<1x16x256xf32> to vector<16x256xf32>
    %14 = vector.extract_strided_slice %9 {offsets = [0, 0], sizes = [256, 256], strides = [1, 1]} : vector<256x768xf32> to vector<256x256xf32>
    %cst_16 = arith.constant dense<0.000000e+00> : vector<8x256xf32>
    %15 = tpu.matmul %1, %14, %cst_16 {dimension_numbers = #tpu.dot_dimension_numbers<[1], [0], [0], [1], [0, 0, 1, 1], [], []>} : vector<8x256xf32>, vector<256x256xf32>, vector<8x256xf32> -> vector<8x256xf32>
    %16 = vector.extract_strided_slice %9 {offsets = [0, 256], sizes = [256, 256], strides = [1, 1]} : vector<256x768xf32> to vector<256x256xf32>
    %cst_17 = arith.constant dense<0.000000e+00> : vector<16x256xf32>
    %17 = tpu.matmul %11, %16, %cst_17 {dimension_numbers = #tpu.dot_dimension_numbers<[1], [0], [0], [1], [0, 0, 1, 1], [], []>} : vector<16x256xf32>, vector<256x256xf32>, vector<16x256xf32> -> vector<16x256xf32>
    %18 = vector.extract_strided_slice %9 {offsets = [0, 512], sizes = [256, 256], strides = [1, 1]} : vector<256x768xf32> to vector<256x256xf32>
    %cst_18 = arith.constant dense<0.000000e+00> : vector<16x256xf32>
    %19 = tpu.matmul %13, %18, %cst_18 {dimension_numbers = #tpu.dot_dimension_numbers<[1], [0], [0], [1], [0, 0, 1, 1], [], []>} : vector<16x256xf32>, vector<256x256xf32>, vector<16x256xf32> -> vector<16x256xf32>
    %cst_19 = arith.constant 0.0883883461 : f32
    %20 = vector.broadcast %cst_19 : f32 to vector<8x256xf32>
    %21 = arith.mulf %15, %20 : vector<8x256xf32>
    %22 = vector.shape_cast %21 : vector<8x256xf32> to vector<8x2x128xf32>
    %23 = tpu.transpose %22, [1, 0, 2] : vector<8x2x128xf32> -> vector<2x8x128xf32>
    %24 = vector.shape_cast %17 : vector<16x256xf32> to vector<16x2x128xf32>
    %25 = tpu.transpose %24, [1, 0, 2] : vector<16x2x128xf32> -> vector<2x16x128xf32>
    %26 = vector.shape_cast %19 : vector<16x256xf32> to vector<16x2x128xf32>
    %27 = tpu.transpose %26, [1, 0, 2] : vector<16x2x128xf32> -> vector<2x16x128xf32>
    "tpu.trace_start"() <{level = 10 : i32, message = "hqd,hkd->hqk"}> : () -> ()
    %cst_20 = arith.constant dense<0.000000e+00> : vector<2x8x16xf32>
    %28 = tpu.matmul %23, %25, %cst_20 {dimension_numbers = #tpu.dot_dimension_numbers<[2], [2], [1], [1], [0, 0, 0, 1, 1, 1], [0], [0]>} : vector<2x8x128xf32>, vector<2x16x128xf32>, vector<2x8x16xf32> -> vector<2x8x16xf32>
    "tpu.trace_stop"() : () -> ()
    %29 = vector.shape_cast %8 : vector<8x16xf32> to vector<1x8x16xf32>
    %30 = vector.broadcast %29 : vector<1x8x16xf32> to vector<2x8x16xf32>
    %31 = arith.addf %28, %30 : vector<2x8x16xf32>
    %cst_21 = arith.constant dense<0xFF800000> : vector<2x8xf32>
    %32 = vector.multi_reduction <maximumf>, %31, %cst_21 [2] : vector<2x8x16xf32> to vector<2x8xf32>
    %33 = vector.shape_cast %32 : vector<2x8xf32> to vector<2x8x1xf32>
    %34 = vector.broadcast %33 : vector<2x8x1xf32> to vector<2x8x16xf32>
    %35 = arith.subf %31, %34 : vector<2x8x16xf32>
    %36 = math.exp %35 : vector<2x8x16xf32>
    %cst_22 = arith.constant dense<0.000000e+00> : vector<2x8xf32>
    %37 = vector.multi_reduction <add>, %36, %cst_22 [2] : vector<2x8x16xf32> to vector<2x8xf32>
    %38 = vector.shape_cast %37 : vector<2x8xf32> to vector<2x8x1xf32>
    %39 = vector.broadcast %38 : vector<2x8x1xf32> to vector<2x8x16xf32>
    %40 = arith.divf %36, %39 : vector<2x8x16xf32>
    "tpu.trace_start"() <{level = 10 : i32, message = "hqk,hkd->hqd"}> : () -> ()
    %cst_23 = arith.constant dense<0.000000e+00> : vector<2x8x128xf32>
    %41 = tpu.matmul %40, %27, %cst_23 {dimension_numbers = #tpu.dot_dimension_numbers<[2], [1], [1], [2], [0, 0, 0, 1, 1, 2], [0], [0]>} : vector<2x8x16xf32>, vector<2x16x128xf32>, vector<2x8x128xf32> -> vector<2x8x128xf32>
    "tpu.trace_stop"() : () -> ()
    %42 = tpu.transpose %41, [1, 0, 2] : vector<2x8x128xf32> -> vector<8x2x128xf32>
    %43 = vector.shape_cast %42 : vector<8x2x128xf32> to vector<8x256xf32>
    %44 = arith.addf %43, %1 : vector<8x256xf32>
    %cst_24 = arith.constant dense<0.000000e+00> : vector<8xf32>
    %45 = vector.multi_reduction <add>, %44, %cst_24 [1] : vector<8x256xf32> to vector<8xf32>
    %46 = vector.shape_cast %45 : vector<8xf32> to vector<8x1xf32>
    %cst_25 = arith.constant 2.560000e+02 : f32
    %47 = vector.broadcast %cst_25 : f32 to vector<8x1xf32>
    %48 = arith.divf %46, %47 : vector<8x1xf32>
    %49 = vector.broadcast %48 : vector<8x1xf32> to vector<8x256xf32>
    %50 = arith.subf %44, %49 : vector<8x256xf32>
    %51 = arith.mulf %50, %50 : vector<8x256xf32>
    %cst_26 = arith.constant dense<0.000000e+00> : vector<8xf32>
    %52 = vector.multi_reduction <add>, %51, %cst_26 [1] : vector<8x256xf32> to vector<8xf32>
    %53 = vector.shape_cast %52 : vector<8xf32> to vector<8x1xf32>
    %cst_27 = arith.constant 2.560000e+02 : f32
    %54 = vector.broadcast %cst_27 : f32 to vector<8x1xf32>
    %55 = arith.divf %53, %54 : vector<8x1xf32>
    %56 = vector.broadcast %48 : vector<8x1xf32> to vector<8x256xf32>
    %57 = arith.subf %44, %56 : vector<8x256xf32>
    %cst_28 = arith.constant 9.99999974E-6 : f32
    %58 = vector.broadcast %cst_28 : f32 to vector<8x1xf32>
    %59 = arith.addf %55, %58 : vector<8x1xf32>
    %60 = math.rsqrt %59 : vector<8x1xf32>
    %61 = vector.broadcast %60 : vector<8x1xf32> to vector<8x256xf32>
    %62 = arith.mulf %57, %61 : vector<8x256xf32>
    %c0_29 = arith.constant 0 : index
    %c0_30 = arith.constant 0 : index
    %63 = vector.load %arg7[%c0_29, %c0_30] : memref<1x256xf32, #tpu.memory_space<vmem>>, vector<1x256xf32>
    %64 = vector.broadcast %63 : vector<1x256xf32> to vector<8x256xf32>
    %65 = arith.mulf %62, %64 : vector<8x256xf32>
    %c0_31 = arith.constant 0 : index
    %c0_32 = arith.constant 0 : index
    %66 = vector.load %arg8[%c0_31, %c0_32] : memref<1x256xf32, #tpu.memory_space<vmem>>, vector<1x256xf32>
    %67 = vector.broadcast %66 : vector<1x256xf32> to vector<8x256xf32>
    %68 = arith.addf %65, %67 : vector<8x256xf32>
    %c0_33 = arith.constant 0 : index
    %c0_34 = arith.constant 0 : index
    %c0_35 = arith.constant 0 : index
    %69 = vector.load %arg9[%c0_33, %c0_34, %c0_35] : memref<1x8x256xf32, #tpu.memory_space<vmem>>, vector<1x8x256xf32>
    %70 = vector.shape_cast %69 : vector<1x8x256xf32> to vector<8x256xf32>
    %71 = vector.shape_cast %68 : vector<8x256xf32> to vector<1x8x256xf32>
    tpu.vector_store %arg9[%c0_33, %c0_34, %c0_35], %71 {strides = array<i32>} : memref<1x8x256xf32, #tpu.memory_space<vmem>>, vector<1x8x256xf32>,
    return
  }
  func.func @transform_0(%arg0: i32, %arg1: i32) -> (i32, i32, i32) {
    %c0_i32 = arith.constant 0 : i32
    %c0_i32_0 = arith.constant 0 : i32
    return %arg0, %arg1, %c0_i32 : i32, i32, i32
  }
  func.func @transform_1(%arg0: i32, %arg1: i32) -> (i32, i32, i32) {
    %c0_i32 = arith.constant 0 : i32
    %c0_i32_0 = arith.constant 0 : i32
    %c0_i32_1 = arith.constant 0 : i32
    return %arg0, %c0_i32, %c0_i32_0 : i32, i32, i32
  }
  func.func @transform_2(%arg0: i32, %arg1: i32) -> (i32, i32, i32) {
    %c0_i32 = arith.constant 0 : i32
    %c0_i32_0 = arith.constant 0 : i32
    %c0_i32_1 = arith.constant 0 : i32
    return %arg0, %c0_i32, %c0_i32_0 : i32, i32, i32
  }
  func.func @transform_3(%arg0: i32, %arg1: i32) -> (i32, i32, i32, i32) {
    %c0_i32 = arith.constant 0 : i32
    %c0_i32_0 = arith.constant 0 : i32
    %c0_i32_1 = arith.constant 0 : i32
    return %arg0, %c0_i32, %arg1, %c0_i32_0 : i32, i32, i32, i32
  }
  func.func @transform_4(%arg0: i32, %arg1: i32) -> (i32, i32) {
    %c0_i32 = arith.constant 0 : i32
    %c0_i32_0 = arith.constant 0 : i32
    %c0_i32_1 = arith.constant 0 : i32
    return %c0_i32, %c0_i32_0 : i32, i32
  }
  func.func @transform_5(%arg0: i32, %arg1: i32) -> (i32, i32) {
    %c0_i32 = arith.constant 0 : i32
    %c0_i32_0 = arith.constant 0 : i32
    %c0_i32_1 = arith.constant 0 : i32
    return %c0_i32, %c0_i32_0 : i32, i32
  }
  func.func @transform_6(%arg0: i32, %arg1: i32) -> (i32, i32) {
    %c0_i32 = arith.constant 0 : i32
    %c0_i32_0 = arith.constant 0 : i32
    %c0_i32_1 = arith.constant 0 : i32
    return %c0_i32, %c0_i32_0 : i32, i32
  }
  func.func @transform_7(%arg0: i32, %arg1: i32) -> (i32, i32, i32) {
    %c0_i32 = arith.constant 0 : i32
    %c0_i32_0 = arith.constant 0 : i32
    return %arg0, %arg1, %c0_i32 : i32, i32, i32
  }
}

module attributes {stable_mosaic.version = 11 : i64} {
  func.func @_ffn_ln_kernel(%arg0: i32, %arg1: memref<16x256xf32, #tpu.memory_space<vmem>>, %arg2: memref<256x512xf32, #tpu.memory_space<vmem>>, %arg3: memref<1x512xf32, #tpu.memory_space<vmem>>, %arg4: memref<512x256xf32, #tpu.memory_space<vmem>>, %arg5: memref<1x256xf32, #tpu.memory_space<vmem>>, %arg6: memref<1x256xf32, #tpu.memory_space<vmem>>, %arg7: memref<1x256xf32, #tpu.memory_space<vmem>>, %arg8: memref<16x256xf32, #tpu.memory_space<vmem>>) attributes {dimension_semantics = [#tpu.dimension_semantics<parallel>], iteration_bounds = array<i64: 1>, scalar_prefetch = 0 : i64, scratch_operands = 0 : i64, tpu.core_type = #tpu.core_type<tc>, window_params = [{transform_indices = @transform_0, window_bounds = array<i64: 16, 256>}, {pipeline_mode = #tpu.pipeline_mode<synchronous>, transform_indices = @transform_1, window_bounds = array<i64: 256, 512>}, {pipeline_mode = #tpu.pipeline_mode<synchronous>, transform_indices = @transform_2, window_bounds = array<i64: 1, 512>}, {pipeline_mode = #tpu.pipeline_mode<synchronous>, transform_indices = @transform_3, window_bounds = array<i64: 512, 256>}, {pipeline_mode = #tpu.pipeline_mode<synchronous>, transform_indices = @transform_4, window_bounds = array<i64: 1, 256>}, {pipeline_mode = #tpu.pipeline_mode<synchronous>, transform_indices = @transform_5, window_bounds = array<i64: 1, 256>}, {pipeline_mode = #tpu.pipeline_mode<synchronous>, transform_indices = @transform_6, window_bounds = array<i64: 1, 256>}, {transform_indices = @transform_7, window_bounds = array<i64: 16, 256>}]} {
    %c0 = arith.constant 0 : index
    %c0_0 = arith.constant 0 : index
    %0 = vector.load %arg1[%c0, %c0_0] : memref<16x256xf32, #tpu.memory_space<vmem>>, vector<16x256xf32>
    %c0_1 = arith.constant 0 : index
    %c0_2 = arith.constant 0 : index
    %1 = vector.load %arg2[%c0_1, %c0_2] : memref<256x512xf32, #tpu.memory_space<vmem>>, vector<256x512xf32>
    %cst = arith.constant dense<0.000000e+00> : vector<16x512xf32>
    %2 = tpu.matmul %0, %1, %cst {dimension_numbers = #tpu.dot_dimension_numbers<[1], [0], [0], [1], [0, 0, 1, 1], [], []>} : vector<16x256xf32>, vector<256x512xf32>, vector<16x512xf32> -> vector<16x512xf32>
    %c0_3 = arith.constant 0 : index
    %c0_4 = arith.constant 0 : index
    %3 = vector.load %arg3[%c0_3, %c0_4] : memref<1x512xf32, #tpu.memory_space<vmem>>, vector<1x512xf32>
    %4 = vector.broadcast %3 : vector<1x512xf32> to vector<16x512xf32>
    %5 = arith.addf %2, %4 : vector<16x512xf32>
    %cst_5 = arith.constant 0.000000e+00 : f32
    %6 = vector.broadcast %cst_5 : f32 to vector<16x512xf32>
    %7 = arith.maximumf %5, %6 : vector<16x512xf32>
    %c0_6 = arith.constant 0 : index
    %c0_7 = arith.constant 0 : index
    %8 = vector.load %arg4[%c0_6, %c0_7] : memref<512x256xf32, #tpu.memory_space<vmem>>, vector<512x256xf32>
    %cst_8 = arith.constant dense<0.000000e+00> : vector<16x256xf32>
    %9 = tpu.matmul %7, %8, %cst_8 {dimension_numbers = #tpu.dot_dimension_numbers<[1], [0], [0], [1], [0, 0, 1, 1], [], []>} : vector<16x512xf32>, vector<512x256xf32>, vector<16x256xf32> -> vector<16x256xf32>
    %c0_9 = arith.constant 0 : index
    %c0_10 = arith.constant 0 : index
    %10 = vector.load %arg5[%c0_9, %c0_10] : memref<1x256xf32, #tpu.memory_space<vmem>>, vector<1x256xf32>
    %11 = vector.broadcast %10 : vector<1x256xf32> to vector<16x256xf32>
    %12 = arith.addf %9, %11 : vector<16x256xf32>
    %13 = arith.addf %12, %0 : vector<16x256xf32>
    %cst_11 = arith.constant dense<0.000000e+00> : vector<16xf32>
    %14 = vector.multi_reduction <add>, %13, %cst_11 [1] : vector<16x256xf32> to vector<16xf32>
    %15 = vector.shape_cast %14 : vector<16xf32> to vector<16x1xf32>
    %cst_12 = arith.constant 2.560000e+02 : f32
    %16 = vector.broadcast %cst_12 : f32 to vector<16x1xf32>
    %17 = arith.divf %15, %16 : vector<16x1xf32>
    %18 = vector.broadcast %17 : vector<16x1xf32> to vector<16x256xf32>
    %19 = arith.subf %13, %18 : vector<16x256xf32>
    %20 = arith.mulf %19, %19 : vector<16x256xf32>
    %cst_13 = arith.constant dense<0.000000e+00> : vector<16xf32>
    %21 = vector.multi_reduction <add>, %20, %cst_13 [1] : vector<16x256xf32> to vector<16xf32>
    %22 = vector.shape_cast %21 : vector<16xf32> to vector<16x1xf32>
    %cst_14 = arith.constant 2.560000e+02 : f32
    %23 = vector.broadcast %cst_14 : f32 to vector<16x1xf32>
    %24 = arith.divf %22, %23 : vector<16x1xf32>
    %25 = vector.broadcast %17 : vector<16x1xf32> to vector<16x256xf32>
    %26 = arith.subf %13, %25 : vector<16x256xf32>
    %cst_15 = arith.constant 9.99999974E-6 : f32
    %27 = vector.broadcast %cst_15 : f32 to vector<16x1xf32>
    %28 = arith.addf %24, %27 : vector<16x1xf32>
    %29 = math.rsqrt %28 : vector<16x1xf32>
    %30 = vector.broadcast %29 : vector<16x1xf32> to vector<16x256xf32>
    %31 = arith.mulf %26, %30 : vector<16x256xf32>
    %c0_16 = arith.constant 0 : index
    %c0_17 = arith.constant 0 : index
    %32 = vector.load %arg6[%c0_16, %c0_17] : memref<1x256xf32, #tpu.memory_space<vmem>>, vector<1x256xf32>
    %33 = vector.broadcast %32 : vector<1x256xf32> to vector<16x256xf32>
    %34 = arith.mulf %31, %33 : vector<16x256xf32>
    %c0_18 = arith.constant 0 : index
    %c0_19 = arith.constant 0 : index
    %35 = vector.load %arg7[%c0_18, %c0_19] : memref<1x256xf32, #tpu.memory_space<vmem>>, vector<1x256xf32>
    %36 = vector.broadcast %35 : vector<1x256xf32> to vector<16x256xf32>
    %37 = arith.addf %34, %36 : vector<16x256xf32>
    %c0_20 = arith.constant 0 : index
    %c0_21 = arith.constant 0 : index
    %38 = vector.load %arg8[%c0_20, %c0_21] : memref<16x256xf32, #tpu.memory_space<vmem>>, vector<16x256xf32>
    tpu.vector_store %arg8[%c0_20, %c0_21], %37 {strides = array<i32>} : memref<16x256xf32, #tpu.memory_space<vmem>>, vector<16x256xf32>,
    return
  }
  func.func @transform_0(%arg0: i32) -> (i32, i32) {
    %c0_i32 = arith.constant 0 : i32
    %c0_i32_0 = arith.constant 0 : i32
    return %arg0, %c0_i32 : i32, i32
  }
  func.func @transform_1(%arg0: i32) -> (i32, i32) {
    %c0_i32 = arith.constant 0 : i32
    %c0_i32_0 = arith.constant 0 : i32
    %c0_i32_1 = arith.constant 0 : i32
    return %c0_i32, %c0_i32_0 : i32, i32
  }
  func.func @transform_2(%arg0: i32) -> (i32, i32) {
    %c0_i32 = arith.constant 0 : i32
    %c0_i32_0 = arith.constant 0 : i32
    %c0_i32_1 = arith.constant 0 : i32
    return %c0_i32, %c0_i32_0 : i32, i32
  }
  func.func @transform_3(%arg0: i32) -> (i32, i32) {
    %c0_i32 = arith.constant 0 : i32
    %c0_i32_0 = arith.constant 0 : i32
    %c0_i32_1 = arith.constant 0 : i32
    return %c0_i32, %c0_i32_0 : i32, i32
  }
  func.func @transform_4(%arg0: i32) -> (i32, i32) {
    %c0_i32 = arith.constant 0 : i32
    %c0_i32_0 = arith.constant 0 : i32
    %c0_i32_1 = arith.constant 0 : i32
    return %c0_i32, %c0_i32_0 : i32, i32
  }
  func.func @transform_5(%arg0: i32) -> (i32, i32) {
    %c0_i32 = arith.constant 0 : i32
    %c0_i32_0 = arith.constant 0 : i32
    %c0_i32_1 = arith.constant 0 : i32
    return %c0_i32, %c0_i32_0 : i32, i32
  }
  func.func @transform_6(%arg0: i32) -> (i32, i32) {
    %c0_i32 = arith.constant 0 : i32
    %c0_i32_0 = arith.constant 0 : i32
    %c0_i32_1 = arith.constant 0 : i32
    return %c0_i32, %c0_i32_0 : i32, i32
  }
  func.func @transform_7(%arg0: i32) -> (i32, i32) {
    %c0_i32 = arith.constant 0 : i32
    %c0_i32_0 = arith.constant 0 : i32
    return %arg0, %c0_i32 : i32, i32
  }
}

</mosaic_0001>

<bundles_post_ra>
// kernel: decoder_block.3
= control target key start
LH: loop header
LB: loop body
LE: loop exit
PB: predicated region body
PF: predicated region fallthrough
CT: control target
= control target key end

     0   :  { %s1851_s18 = smov 0   ;;  %s2580_s0 = inlined_call_operand.vmem [shape: f32[2,8,256], index: 0, kind: input, shape index: {}]   ;;  %s2581_s1 = inlined_call_operand.vmem [shape: f32[2,1,8,8], index: 1, kind: input, shape index: {}]   ;;  %s2582_s2 = inlined_call_operand.vmem [shape: f32[256,768], index: 2, kind: input, shape index: {}]   ;;  %s2583_s3 = inlined_call_operand.vmem [shape: f32[1,256], index: 3, kind: input, shape index: {}]   ;;  %s2584_s4 = inlined_call_operand.vmem [shape: f32[1,256], index: 4, kind: input, shape index: {}]   ;;  %s2585_s5 = inlined_call_operand.vmem [shape: f32[2,8,256], index: 5, kind: output, shape index: {}]  }
   0x1 LB: > { %s1543_s19 = sadd.s32 4294967295, %s1815_s18   ;;  %p1547_p0 = scmp.ge.s32.totalorder %s1815_s18, 1  ;;  %s1815_s18 = sphi %s1851_s18, %s15_s18  }
   0x2   : > { %p196_p1 = scmp.lt.s32.totalorder %s1815_s18, 3 }
   0x4   : > { %p197_p2 = pnand %p1547_p0, %p196_p1 }
   0x5   : > { %v248_v0 = vld [vmem:[%s2582_s2 + $0x8] sm:$0xff] (!%p197_p2)  ;;  %v254_v1 = vld [vmem:[%s2582_s2 + $0x38] sm:$0xff] (!%p197_p2)  ;;  %v247_v5 = vld [vmem:[%s2582_s2] sm:$0xff] (!%p197_p2)  ;;  %p2065_p3 = scmp.lt.s32.totalorder (!%p197_p2), %s1543_s19, 1  ;;  %vm1818_vm0 = vmmov (!%p197_p2), 0   ;;  %vm1142_vm2 = vcmask (!%p197_p2), 64512  }
   0x6   : > { %200 = sbr.rel (%p197_p2) target bundleno = 1387 (0x56b), region = 40  ;;  %v250_v2 = vld [vmem:[%s2582_s2 + $0x18] sm:$0xff] (!%p197_p2)  ;;  %v1595_v3 = vpack.c.bf16 (!%p197_p2), %v254_v1, %v248_v0  ;;  %v256_v4 = vld [vmem:[%s2582_s2 + $0x48] sm:$0xff] (!%p197_p2)  ;;  %v253_v6 = vld [vmem:[%s2582_s2 + $0x30] sm:$0xff] (!%p197_p2) }
   0x7   : > { %v1659_v7 = vpack.c.bf16 (!%p197_p2), %v256_v4, %v250_v2  ;;  %v1597_v8 = vpack.c.bf16 (!%p197_p2), %v253_v6, %v247_v5  ;;  %v249_v9 = vld [vmem:[%s2582_s2 + $0x10] sm:$0xff] (!%p197_p2)  ;;  %v255_v10 = vld [vmem:[%s2582_s2 + $0x40] sm:$0xff] (!%p197_p2)  ;;  %v260_v11 = vld [vmem:[%s2582_s2 + $0x68] sm:$0xff] (!%p197_p2) }
   0x8   : > { %1596 = vmatprep.subr.bf16.mxu0 (!%p197_p2), %v1595_v3  ;;  %v1661_v12 = vpack.c.bf16 (!%p197_p2), %v255_v10, %v249_v9  ;;  %v266_v13 = vld [vmem:[%s2582_s2 + $0x98] sm:$0xff] (!%p197_p2)  ;;  %v268_v15 = vld [vmem:[%s2582_s2 + $0xa8] sm:$0xff] (!%p197_p2)  ;;  %v259_v18 = vld [vmem:[%s2582_s2 + $0x60] sm:$0xff] (!%p197_p2) }
   0x9   : > { %v262_v14 = vld [vmem:[%s2582_s2 + $0x78] sm:$0xff] (!%p197_p2)  ;;  %1660 = vmatprep.subr.bf16.mxu1 (!%p197_p2), %v1659_v7  ;;  %1598 = vmatpush1.bf16.msra.mxu0 (!%p197_p2), %v1597_v8  ;;  %v1599_v16 = vpack.c.bf16 (!%p197_p2), %v266_v13, %v260_v11  ;;  %v265_v19 = vld [vmem:[%s2582_s2 + $0x90] sm:$0xff] (!%p197_p2)  ;;  %v267_v22 = vld [vmem:[%s2582_s2 + $0xa0] sm:$0xff] (!%p197_p2) }
   0xa   : > { %v1663_v17 = vpack.c.bf16 (!%p197_p2), %v268_v15, %v262_v14  ;;  %v261_v20 = vld [vmem:[%s2582_s2 + $0x70] sm:$0xff] (!%p197_p2)  ;;  %1662 = vmatpush1.bf16.msra.mxu1 (!%p197_p2), %v1661_v12  ;;  %v1601_v21 = vpack.c.bf16 (!%p197_p2), %v265_v19, %v259_v18  ;;  %v272_v23 = vld [vmem:[%s2582_s2 + $0xc8] sm:$0xff] (!%p197_p2)  ;;  %v278_v24 = vld [vmem:[%s2582_s2 + $0xf8] sm:$0xff] (!%p197_p2) }
   0xb   : > { %1600 = vmatprep.subr.bf16.mxu0 (!%p197_p2), %v1599_v16  ;;  %v1665_v25 = vpack.c.bf16 (!%p197_p2), %v267_v22, %v261_v20  ;;  %v1603_v26 = vpack.c.bf16 (!%p197_p2), %v278_v24, %v272_v23  ;;  %v274_v27 = vld [vmem:[%s2582_s2 + $0xd8] sm:$0xff] (!%p197_p2)  ;;  %v280_v28 = vld [vmem:[%s2582_s2 + $0x108] sm:$0xff] (!%p197_p2)  ;;  %v271_v29 = vld [vmem:[%s2582_s2 + $0xc0] sm:$0xff] (!%p197_p2) }
   0xc   : > { %1664 = vmatprep.subr.bf16.mxu1 (!%p197_p2), %v1663_v17  ;;  %v1667_v30 = vpack.c.bf16 (!%p197_p2), %v280_v28, %v274_v27  ;;  %v277_v31 = vld [vmem:[%s2582_s2 + $0xf0] sm:$0xff] (!%p197_p2)  ;;  %v279_v33 = vld [vmem:[%s2582_s2 + $0x100] sm:$0xff] (!%p197_p2)  ;;  %v284_v35 = vld [vmem:[%s2582_s2 + $0x128] sm:$0xff] (!%p197_p2) }
   0xd   : > { %v273_v32 = vld [vmem:[%s2582_s2 + $0xd0] sm:$0xff]  ;;  %1602 = vmatpush1.bf16.msra.mxu0 %v1601_v21  ;;  %v1605_v34 = vpack.c.bf16 %v277_v31, %v271_v29  ;;  %v290_v36 = vld [vmem:[%s2582_s2 + $0x158] sm:$0xff]  ;;  %v292_v40 = vld [vmem:[%s2582_s2 + $0x168] sm:$0xff]  ;;  %s2588_s19 = smov (!%p2065_p3, %s1543_s19), 1 }
   0xe   : > { %v286_v37 = vld [vmem:[%s2582_s2 + $0x138] sm:$0xff]  ;;  %1666 = vmatpush1.bf16.msra.mxu1 %v1665_v25  ;;  %1604 = vmatprep.subr.bf16.mxu0 %v1603_v26  ;;  %v1669_v38 = vpack.c.bf16 %v279_v33, %v273_v32  ;;  %v1607_v39 = vpack.c.bf16 %v290_v36, %v284_v35  ;;  %v283_v41 = vld [vmem:[%s2582_s2 + $0x120] sm:$0xff]  ;;  %v289_v42 = vld [vmem:[%s2582_s2 + $0x150] sm:$0xff]  ;;  %s1565_s28 = sshll.u32 %s2588_s19, 4  ;;  %s1550_s6 = sshll.u32 %s2588_s19, 3 }
   0xf   : > { %1668 = vmatprep.subr.bf16.mxu1 %v1667_v30  ;;  %v1671_v43 = vpack.c.bf16 %v292_v40, %v286_v37  ;;  %v285_v44 = vld [vmem:[%s2582_s2 + $0x130] sm:$0xff]  ;;  %v291_v45 = vld [vmem:[%s2582_s2 + $0x160] sm:$0xff]  ;;  %v296_v46 = vld [vmem:[%s2582_s2 + $0x188] sm:$0xff]  ;;  %v1609_v50 = vpack.c.bf16 %v289_v42, %v283_v41  ;;  %s2153_s24 = scalar_lea.vmem %s2580_s0, %s1565_s28  ;;  %s236_s9 = scalar_lea.vmem %s2581_s1, %s1550_s6 }
  0x10   : > { %v302_v47 = vld [vmem:[%s2582_s2 + $0x1b8] sm:$0xff]  ;;  %v304_v49 = vld [vmem:[%s2582_s2 + $0x1c8] sm:$0xff]  ;;  %v1673_v51 = vpack.c.bf16 %v291_v45, %v285_v44  ;;  %v295_v53 = vld [vmem:[%s2582_s2 + $0x180] sm:$0xff]  ;;  %s241_s15 = scalar_lea.vmem %s2585_s5, %s1565_s28 }
  0x11   : > { %v298_v48 = vld [vmem:[%s2582_s2 + $0x198] sm:$0xff]  ;;  %1606 = vmatpush1.bf16.msra.mxu0 %v1605_v34  ;;  %v1611_v52 = vpack.c.bf16 %v302_v47, %v296_v46  ;;  %v301_v54 = vld [vmem:[%s2582_s2 + $0x1b0] sm:$0xff]  ;;  %v303_v57 = vld [vmem:[%s2582_s2 + $0x1c0] sm:$0xff] }
  0x12   : > { %1670 = vmatpush1.bf16.msra.mxu1 %v1669_v38  ;;  %1608 = vmatprep.subr.bf16.mxu0 %v1607_v39  ;;  %v297_v55 = vld [vmem:[%s2582_s2 + $0x190] sm:$0xff]  ;;  %v1675_v56 = vpack.c.bf16 %v304_v49, %v298_v48  ;;  %v308_v58 = vld [vmem:[%s2582_s2 + $0x1e8] sm:$0xff]  ;;  %v314_v59 = vld [vmem:[%s2582_s2 + $0x218] sm:$0xff]  ;;  %v1613_v62 = vpack.c.bf16 %v301_v54, %v295_v53 }
  0x13   : > { %1672 = vmatprep.subr.bf16.mxu1 %v1671_v43  ;;  %v310_v60 = vld [vmem:[%s2582_s2 + $0x1f8] sm:$0xff]  ;;  %v316_v61 = vld [vmem:[%s2582_s2 + $0x228] sm:$0xff]  ;;  %v1677_v63 = vpack.c.bf16 %v303_v57, %v297_v55  ;;  %v1615_v0 = vpack.c.bf16 %v314_v59, %v308_v58  ;;  %v307_v1 = vld [vmem:[%s2582_s2 + $0x1e0] sm:$0xff] }
  0x14   : > { %v313_v2 = vld [vmem:[%s2582_s2 + $0x210] sm:$0xff]  ;;  %v1679_v4 = vpack.c.bf16 %v316_v61, %v310_v60  ;;  %v315_v5 = vld [vmem:[%s2582_s2 + $0x220] sm:$0xff]  ;;  %v320_v6 = vld [vmem:[%s2582_s2 + $0x248] sm:$0xff] }
  0x15   : > { %1610 = vmatpush1.bf16.msra.mxu0 %v1609_v50  ;;  %v309_v3 = vld [vmem:[%s2582_s2 + $0x1f0] sm:$0xff]  ;;  %v326_v7 = vld [vmem:[%s2582_s2 + $0x278] sm:$0xff]  ;;  %v328_v9 = vld [vmem:[%s2582_s2 + $0x288] sm:$0xff]  ;;  %v1617_v10 = vpack.c.bf16 %v313_v2, %v307_v1 }
  0x16   : > { %1674 = vmatpush1.bf16.msra.mxu1 %v1673_v51  ;;  %1612 = vmatprep.subr.bf16.mxu0 %v1611_v52  ;;  %v322_v8 = vld [vmem:[%s2582_s2 + $0x258] sm:$0xff]  ;;  %v1681_v11 = vpack.c.bf16 %v315_v5, %v309_v3  ;;  %v1619_v12 = vpack.c.bf16 %v326_v7, %v320_v6  ;;  %v319_v13 = vld [vmem:[%s2582_s2 + $0x240] sm:$0xff]  ;;  %v325_v14 = vld [vmem:[%s2582_s2 + $0x270] sm:$0xff] }
  0x17   : > { %1676 = vmatprep.subr.bf16.mxu1 %v1675_v56  ;;  %v321_v15 = vld [vmem:[%s2582_s2 + $0x250] sm:$0xff]  ;;  %v1683_v16 = vpack.c.bf16 %v328_v9, %v322_v8  ;;  %v327_v17 = vld [vmem:[%s2582_s2 + $0x280] sm:$0xff]  ;;  %v332_v18 = vld [vmem:[%s2582_s2 + $0x2a8] sm:$0xff]  ;;  %v1621_v22 = vpack.c.bf16 %v325_v14, %v319_v13 }
  0x18   : > { %v338_v19 = vld [vmem:[%s2582_s2 + $0x2d8] sm:$0xff]  ;;  %v340_v21 = vld [vmem:[%s2582_s2 + $0x2e8] sm:$0xff]  ;;  %v1685_v23 = vpack.c.bf16 %v327_v17, %v321_v15  ;;  %v331_v25 = vld [vmem:[%s2582_s2 + $0x2a0] sm:$0xff] }
  0x19   : > { %1614 = vmatpush1.bf16.msra.mxu0 %v1613_v62  ;;  %v334_v20 = vld [vmem:[%s2582_s2 + $0x2b8] sm:$0xff]  ;;  %v1623_v24 = vpack.c.bf16 %v338_v19, %v332_v18  ;;  %v337_v26 = vld [vmem:[%s2582_s2 + $0x2d0] sm:$0xff]  ;;  %v339_v29 = vld [vmem:[%s2582_s2 + $0x2e0] sm:$0xff] }
  0x1a   : > { %1678 = vmatpush1.bf16.msra.mxu1 %v1677_v63  ;;  %1616 = vmatprep.subr.bf16.mxu0 %v1615_v0  ;;  %v333_v27 = vld [vmem:[%s2582_s2 + $0x2b0] sm:$0xff]  ;;  %v1687_v28 = vpack.c.bf16 %v340_v21, %v334_v20  ;;  %v344_v30 = vld [vmem:[%s2582_s2 + $0x308] sm:$0xff]  ;;  %v350_v31 = vld [vmem:[%s2582_s2 + $0x338] sm:$0xff]  ;;  %v1625_v34 = vpack.c.bf16 %v337_v26, %v331_v25 }
  0x1b   : > { %1680 = vmatprep.subr.bf16.mxu1 %v1679_v4  ;;  %v346_v32 = vld [vmem:[%s2582_s2 + $0x318] sm:$0xff]  ;;  %v352_v33 = vld [vmem:[%s2582_s2 + $0x348] sm:$0xff]  ;;  %v1689_v35 = vpack.c.bf16 %v339_v29, %v333_v27  ;;  %v1627_v36 = vpack.c.bf16 %v350_v31, %v344_v30  ;;  %v343_v37 = vld [vmem:[%s2582_s2 + $0x300] sm:$0xff] }
  0x1c   : > { %v349_v38 = vld [vmem:[%s2582_s2 + $0x330] sm:$0xff]  ;;  %v1691_v40 = vpack.c.bf16 %v352_v33, %v346_v32  ;;  %v351_v41 = vld [vmem:[%s2582_s2 + $0x340] sm:$0xff]  ;;  %v356_v42 = vld [vmem:[%s2582_s2 + $0x368] sm:$0xff] }
  0x1d   : > { %1618 = vmatpush1.bf16.msra.mxu0 %v1617_v10  ;;  %v345_v39 = vld [vmem:[%s2582_s2 + $0x310] sm:$0xff]  ;;  %v362_v43 = vld [vmem:[%s2582_s2 + $0x398] sm:$0xff]  ;;  %v364_v45 = vld [vmem:[%s2582_s2 + $0x3a8] sm:$0xff]  ;;  %v1629_v46 = vpack.c.bf16 %v349_v38, %v343_v37 }
  0x1e   : > { %1682 = vmatpush1.bf16.msra.mxu1 %v1681_v11  ;;  %1620 = vmatprep.subr.bf16.mxu0 %v1619_v12  ;;  %v358_v44 = vld [vmem:[%s2582_s2 + $0x378] sm:$0xff]  ;;  %v1693_v47 = vpack.c.bf16 %v351_v41, %v345_v39  ;;  %v1631_v48 = vpack.c.bf16 %v362_v43, %v356_v42  ;;  %v355_v49 = vld [vmem:[%s2582_s2 + $0x360] sm:$0xff]  ;;  %v361_v50 = vld [vmem:[%s2582_s2 + $0x390] sm:$0xff] }
  0x1f   : > { %1684 = vmatprep.subr.bf16.mxu1 %v1683_v16  ;;  %v357_v51 = vld [vmem:[%s2582_s2 + $0x370] sm:$0xff]  ;;  %v1695_v52 = vpack.c.bf16 %v364_v45, %v358_v44  ;;  %v363_v53 = vld [vmem:[%s2582_s2 + $0x3a0] sm:$0xff]  ;;  %v368_v54 = vld [vmem:[%s2582_s2 + $0x3c8] sm:$0xff]  ;;  %v1633_v58 = vpack.c.bf16 %v361_v50, %v355_v49 }
  0x20   : > { %v374_v55 = vld [vmem:[%s2582_s2 + $0x3f8] sm:$0xff]  ;;  %v376_v57 = vld [vmem:[%s2582_s2 + $0x408] sm:$0xff]  ;;  %v1697_v59 = vpack.c.bf16 %v363_v53, %v357_v51  ;;  %v367_v61 = vld [vmem:[%s2582_s2 + $0x3c0] sm:$0xff] }
  0x21   : > { %1622 = vmatpush1.bf16.msra.mxu0 %v1621_v22  ;;  %v370_v56 = vld [vmem:[%s2582_s2 + $0x3d8] sm:$0xff]  ;;  %v1635_v60 = vpack.c.bf16 %v374_v55, %v368_v54  ;;  %v373_v62 = vld [vmem:[%s2582_s2 + $0x3f0] sm:$0xff]  ;;  %v375_v1 = vld [vmem:[%s2582_s2 + $0x400] sm:$0xff] }
  0x22   : > { %1686 = vmatpush1.bf16.msra.mxu1 %v1685_v23  ;;  %1624 = vmatprep.subr.bf16.mxu0 %v1623_v24  ;;  %v369_v63 = vld [vmem:[%s2582_s2 + $0x3d0] sm:$0xff]  ;;  %v1699_v0 = vpack.c.bf16 %v376_v57, %v370_v56  ;;  %v380_v2 = vld [vmem:[%s2582_s2 + $0x428] sm:$0xff]  ;;  %v386_v3 = vld [vmem:[%s2582_s2 + $0x458] sm:$0xff]  ;;  %v1637_v6 = vpack.c.bf16 %v373_v62, %v367_v61 }
  0x23   : > { %1688 = vmatprep.subr.bf16.mxu1 %v1687_v28  ;;  %v382_v4 = vld [vmem:[%s2582_s2 + $0x438] sm:$0xff]  ;;  %v388_v5 = vld [vmem:[%s2582_s2 + $0x468] sm:$0xff]  ;;  %v379_v7 = vld [vmem:[%s2582_s2 + $0x420] sm:$0xff]  ;;  %v1701_v8 = vpack.c.bf16 %v375_v1, %v369_v63  ;;  %v1639_v9 = vpack.c.bf16 %v386_v3, %v380_v2  ;;  %v1817_v2 = vmov 0.0   ;;  %v1819_v3 = vmov 1983009808  }
  0x24   : > { %v385_v10 = vld [vmem:[%s2582_s2 + $0x450] sm:$0xff]  ;;  %v387_v12 = vld [vmem:[%s2582_s2 + $0x460] sm:$0xff]  ;;  %v1703_v13 = vpack.c.bf16 %v388_v5, %v382_v4  ;;  %v392_v14 = vld [vmem:[%s2582_s2 + $0x488] sm:$0xff]  ;;  %v656_v4 = vunpack.c.l.s4 %v1819_v3  ;;  %v658_v5 = vlaneseq }
  0x25   : > { %1626 = vmatpush1.bf16.msra.mxu0 %v1625_v34  ;;  %v381_v11 = vld [vmem:[%s2582_s2 + $0x430] sm:$0xff]  ;;  %v398_v15 = vld [vmem:[%s2582_s2 + $0x4b8] sm:$0xff]  ;;  %v2174_v16 = vld [vmem:[%s2153_s24 + $0x8] sm:$0xff]  ;;  %v1641_v19 = vpack.c.bf16 %v385_v10, %v379_v7 }
  0x26   : > { %1690 = vmatpush1.bf16.msra.mxu1 %v1689_v35  ;;  %1628 = vmatprep.subr.bf16.mxu0 %v1627_v36  ;;  %v394_v17 = vld [vmem:[%s2582_s2 + $0x498] sm:$0xff]  ;;  %v400_v18 = vld [vmem:[%s2582_s2 + $0x4c8] sm:$0xff]  ;;  %v1705_v20 = vpack.c.bf16 %v387_v12, %v381_v11  ;;  %v1643_v21 = vpack.c.bf16 %v398_v15, %v392_v14  ;;  %v391_v22 = vld [vmem:[%s2582_s2 + $0x480] sm:$0xff]  ;;  %v2277_v7 = vshrl.u32 %v658_v5, 7 }
  0x27   : > { %1692 = vmatprep.subr.bf16.mxu1 %v1691_v40  ;;  %503 = vmatprep.mubr.f32.mxu0 %v2174_v16  ;;  %v397_v23 = vld [vmem:[%s2582_s2 + $0x4b0] sm:$0xff]  ;;  %v1707_v25 = vpack.c.bf16 %v400_v18, %v394_v17  ;;  %v399_v26 = vld [vmem:[%s2582_s2 + $0x4c0] sm:$0xff]  ;;  %v404_v27 = vld [vmem:[%s2582_s2 + $0x4e8] sm:$0xff] }
  0x28   : > { %574 = vmatprep.mubr.f32.mxu1 %v2174_v16  ;;  %v393_v24 = vld [vmem:[%s2582_s2 + $0x490] sm:$0xff]  ;;  %v410_v28 = vld [vmem:[%s2582_s2 + $0x518] sm:$0xff]  ;;  %v412_v30 = vld [vmem:[%s2582_s2 + $0x528] sm:$0xff]  ;;  %v1645_v31 = vpack.c.bf16 %v397_v23, %v391_v22 }
  0x29   : > { %1630 = vmatpush1.bf16.msra.mxu0 %v1629_v46  ;;  %v406_v29 = vld [vmem:[%s2582_s2 + $0x4f8] sm:$0xff]  ;;  %v1709_v32 = vpack.c.bf16 %v399_v26, %v393_v24  ;;  %v1647_v33 = vpack.c.bf16 %v410_v28, %v404_v27  ;;  %v403_v34 = vld [vmem:[%s2582_s2 + $0x4e0] sm:$0xff]  ;;  %v409_v35 = vld [vmem:[%s2582_s2 + $0x510] sm:$0xff] }
  0x2a   : > { %1694 = vmatpush1.bf16.msra.mxu1 %v1693_v47  ;;  %1632 = vmatprep.subr.bf16.mxu0 %v1631_v48  ;;  %v405_v36 = vld [vmem:[%s2582_s2 + $0x4f0] sm:$0xff]  ;;  %v1711_v37 = vpack.c.bf16 %v412_v30, %v406_v29  ;;  %v411_v38 = vld [vmem:[%s2582_s2 + $0x520] sm:$0xff]  ;;  %v416_v39 = vld [vmem:[%s2582_s2 + $0x548] sm:$0xff]  ;;  %v1649_v43 = vpack.c.bf16 %v409_v35, %v403_v34 }
  0x2b   : > { %1696 = vmatprep.subr.bf16.mxu1 %v1695_v52  ;;  %v422_v40 = vld [vmem:[%s2582_s2 + $0x578] sm:$0xff]  ;;  %v424_v42 = vld [vmem:[%s2582_s2 + $0x588] sm:$0xff]  ;;  %v1713_v44 = vpack.c.bf16 %v411_v38, %v405_v36  ;;  %v415_v46 = vld [vmem:[%s2582_s2 + $0x540] sm:$0xff] }
  0x2c   : > { %v418_v41 = vld [vmem:[%s2582_s2 + $0x558] sm:$0xff]  ;;  %v1651_v45 = vpack.c.bf16 %v422_v40, %v416_v39  ;;  %v421_v47 = vld [vmem:[%s2582_s2 + $0x570] sm:$0xff]  ;;  %v423_v50 = vld [vmem:[%s2582_s2 + $0x580] sm:$0xff] }
  0x2d   : > { %1634 = vmatpush1.bf16.msra.mxu0 %v1633_v58  ;;  %v417_v48 = vld [vmem:[%s2582_s2 + $0x550] sm:$0xff]  ;;  %v1715_v49 = vpack.c.bf16 %v424_v42, %v418_v41  ;;  %v428_v51 = vld [vmem:[%s2582_s2 + $0x5a8] sm:$0xff]  ;;  %v434_v52 = vld [vmem:[%s2582_s2 + $0x5d8] sm:$0xff]  ;;  %v1653_v55 = vpack.c.bf16 %v421_v47, %v415_v46 }
  0x2e   : > { %1698 = vmatpush1.bf16.msra.mxu1 %v1697_v59  ;;  %1636 = vmatprep.subr.bf16.mxu0 %v1635_v60  ;;  %v430_v53 = vld [vmem:[%s2582_s2 + $0x5b8] sm:$0xff]  ;;  %v436_v54 = vld [vmem:[%s2582_s2 + $0x5e8] sm:$0xff]  ;;  %v1717_v56 = vpack.c.bf16 %v423_v50, %v417_v48  ;;  %v1655_v57 = vpack.c.bf16 %v434_v52, %v428_v51  ;;  %v427_v58 = vld [vmem:[%s2582_s2 + $0x5a0] sm:$0xff] }
  0x2f   : > { %1700 = vmatprep.subr.bf16.mxu1 %v1699_v0  ;;  %v433_v59 = vld [vmem:[%s2582_s2 + $0x5d0] sm:$0xff]  ;;  %v1719_v60 = vpack.c.bf16 %v436_v54, %v430_v53  ;;  %v435_v62 = vld [vmem:[%s2582_s2 + $0x5e0] sm:$0xff] }
  0x30   : > { %v429_v61 = vld [vmem:[%s2582_s2 + $0x5b0] sm:$0xff]  ;;  %v1657_v63 = vpack.c.bf16 %v433_v59, %v427_v58  ;;  %v2269_v1 = vld [vmem:[%s2153_s24] sm:$0xff] }
  0x31   : > { %1638 = vmatpush1.bf16.msra.mxu0 %v1637_v6  ;;  %v1721_v0 = vpack.c.bf16 %v435_v62, %v429_v61  ;;  %v657_v6 = vunpack.c.0.s8 %v656_v4 }
  0x32   : > { %1702 = vmatpush1.bf16.msra.mxu1 %v1701_v8  ;;  %1640 = vmatprep.subr.bf16.mxu0 %v1639_v9  ;;  %v1820_v8 = vmov 1934713408  }
  0x33   : > { %1704 = vmatprep.subr.bf16.mxu1 %v1703_v13  ;;  %v687_v9 = vunpack.c.l.s4 %v1820_v8  ;;  %v2280_v10 = vsub.s32 %v657_v6, %v2277_v7 }
  0x35   : > { %1642 = vmatpush1.bf16.msra.mxu0 %v1641_v19  ;;  %v688_v11 = vunpack.c.0.s8 %v687_v9 }
  0x36   : > { %1706 = vmatpush1.bf16.msra.mxu1 %v1705_v20  ;;  %1644 = vmatprep.subr.bf16.mxu0 %v1643_v21 }
  0x37   : > { %1708 = vmatprep.subr.bf16.mxu1 %v1707_v25  ;;  %v2285_v20 = vsub.s32 %v688_v11, %v2277_v7 }
  0x39   : > { %1646 = vmatpush1.bf16.msra.mxu0 %v1645_v31 }
  0x3a   : > { %1710 = vmatpush1.bf16.msra.mxu1 %v1709_v32  ;;  %1648 = vmatprep.subr.bf16.mxu0 %v1647_v33 }
  0x3b   : > { %1712 = vmatprep.subr.bf16.mxu1 %v1711_v37 }
  0x3d   : > { %1650 = vmatpush1.bf16.msra.mxu0 %v1649_v43 }
  0x3e   : > { %1714 = vmatpush1.bf16.msra.mxu1 %v1713_v44  ;;  %1652 = vmatprep.subr.bf16.mxu0 %v1651_v45 }
  0x3f   : > { %1716 = vmatprep.subr.bf16.mxu1 %v1715_v49 }
  0x41   : > { %1654 = vmatpush1.bf16.msra.mxu0 %v1653_v55 }
  0x42   : > { %1718 = vmatpush1.bf16.msra.mxu1 %v1717_v56  ;;  %1656 = vmatprep.subr.bf16.mxu0 %v1655_v57 }
  0x43   : > { %1720 = vmatprep.subr.bf16.mxu1 %v1719_v60 }
  0x45   : > { %1658 = vmatpush1.bf16.msra.mxu0 %v1657_v63 }
  0x46   : > { %1722 = vmatpush1.bf16.msra.mxu1 %v1721_v0 }
  0x47   : > { %1575 = vmatprep.subr.mxu1 %v1817_v2 }
  0x48   : > { %504 = vmatmul.mubr.f32.vlgmr.msra.gmra.mrb[0].mxu0 %v2269_v1 }
  0x49   : > { %575 = vmatmul.mubr.f32.vlgmr.msra.gmra.mrb[0].mxu1 %v2269_v1  ;;  %645 = vmatprep.mubr.f32.mxu0 %v2174_v16 }
  0x4a   : > { %1577 = vmatprep.mubr.msk.f32.mxu1 %vm1818_vm0, %v1817_v2 }
 0x11b   : > { %v505_v12 = vpop.f32.mrb[0].mxu0 }
 0x11c   : > { %v652_v13 = vmul.f32 0.088388346, %v505_v12  ;;  %v576_v14 = vpop.f32.mrb[0].mxu1  ;;  %v507_v15 = vpop.f32.mrb[1].mxu0 }
 0x11d   : > { %v770_v17 = vcombine.high %v576_v14, %v1817_v2  ;;  %v777_v18 = vrot.slane %v576_v14, %v2280_v10  ;;  %v653_v19 = vmul.f32 0.088388346, %v507_v15  ;;  %v578_v21 = vpop.f32.mrb[1].mxu1 }
 0x11e   : > { %v654_v22 = vcombine.high %v652_v13, %v1817_v2  ;;  %v661_v23 = vrot.slane %v652_v13, %v2280_v10  ;;  %v785_v24 = vcombine.high %v578_v21, %v1817_v2  ;;  %v792_v25 = vrot.slane %v578_v21, %v2280_v10 }
 0x11f   : > { %v784_v26 = vrot.slane %v770_v17, %v2280_v10  ;;  %v669_v27 = vcombine.high %v653_v19, %v1817_v2  ;;  %v676_v28 = vrot.slane %v653_v19, %v2280_v10  ;;  %v252_v17 = vld [vmem:[%s2582_s2 + $0x28] sm:$0xff]  ;;  %v251_v19 = vld [vmem:[%s2582_s2 + $0x20] sm:$0xff] }
 0x120   : > { %v668_v29 = vrot.slane %v654_v22, %v2280_v10  ;;  %v799_v30 = vrot.slane %v785_v24, %v2280_v10  ;;  %v800_v31 = vcombine.low %v777_v18, %v792_v25  ;;  %v801_v32 = vcombine.high %v777_v18, %v792_v25  ;;  %v258_v18 = vld [vmem:[%s2582_s2 + $0x58] sm:$0xff]  ;;  %v257_v22 = vld [vmem:[%s2582_s2 + $0x50] sm:$0xff] }
 0x121   : > { %v683_v33 = vrot.slane %v669_v27, %v2280_v10  ;;  %v684_v34 = vcombine.low %v661_v23, %v676_v28  ;;  %v685_v35 = vcombine.high %v661_v23, %v676_v28  ;;  %v1723_v21 = vpack.c.bf16 %v258_v18, %v252_v17  ;;  %v264_v23 = vld [vmem:[%s2582_s2 + $0x88] sm:$0xff]  ;;  %v270_v24 = vld [vmem:[%s2582_s2 + $0xb8] sm:$0xff]  ;;  %v263_v27 = vld [vmem:[%s2582_s2 + $0x80] sm:$0xff] }
 0x122   : > { %v808_v36 = vrot.slane %v800_v31, %v2285_v20  ;;  %v815_v37 = vrot.slane %v801_v32, %v2285_v20  ;;  %v816_v38 = vcombine.low %v784_v26, %v799_v30  ;;  %v817_v39 = vcombine.high %v784_v26, %v799_v30  ;;  %v269_v28 = vld [vmem:[%s2582_s2 + $0xb0] sm:$0xff]  ;;  %v282_v30 = vld [vmem:[%s2582_s2 + $0x118] sm:$0xff]  ;;  %v372_v18 = vld [vmem:[%s2582_s2 + $0x3e8] sm:$0xff] }
 0x123   : > { %v692_v40 = vrot.slane %v684_v34, %v2285_v20  ;;  %v699_v41 = vrot.slane %v685_v35, %v2285_v20  ;;  %v700_v42 = vcombine.low %v668_v29, %v683_v33  ;;  %v701_v43 = vcombine.high %v668_v29, %v683_v33  ;;  %v276_v29 = vld [vmem:[%s2582_s2 + $0xe8] sm:$0xff]  ;;  %1724 = vmatprep.subr.bf16.mxu0 %v1723_v21  ;;  %v275_v33 = vld [vmem:[%s2582_s2 + $0xe0] sm:$0xff]  ;;  %v281_v34 = vld [vmem:[%s2582_s2 + $0x110] sm:$0xff] }
 0x124   : > { %v824_v44 = vrot.slane %v816_v38, %v2285_v20  ;;  %v831_v45 = vrot.slane %v817_v39, %v2285_v20  ;;  %v836_v46 = vcombine.low %v808_v36, %v815_v37  ;;  %v1555_v47 = vcombine.high %v808_v36, %v815_v37  ;;  %v288_v35 = vld [vmem:[%s2582_s2 + $0x148] sm:$0xff]  ;;  %v294_v36 = vld [vmem:[%s2582_s2 + $0x178] sm:$0xff]  ;;  %v287_v39 = vld [vmem:[%s2582_s2 + $0x140] sm:$0xff] }
 0x125   : > { %v708_v48 = vrot.slane %v700_v42, %v2285_v20  ;;  %v715_v49 = vrot.slane %v701_v43, %v2285_v20  ;;  %v720_v50 = vcombine.low %v692_v40, %v699_v41  ;;  %v1553_v51 = vcombine.high %v692_v40, %v699_v41  ;;  %v293_v40 = vld [vmem:[%s2582_s2 + $0x170] sm:$0xff]  ;;  %v300_v41 = vld [vmem:[%s2582_s2 + $0x1a8] sm:$0xff]  ;;  %v306_v42 = vld [vmem:[%s2582_s2 + $0x1d8] sm:$0xff] }
 0x126   : > { %v843_v52 = vrot.slane %v836_v46, %v2280_v10  ;;  %v851_v53 = vrot.slane %v1555_v47, %v2280_v10  ;;  %v852_v54 = vcombine.low %v824_v44, %v831_v45  ;;  %v1556_v55 = vcombine.high %v824_v44, %v831_v45  ;;  %v299_v45 = vld [vmem:[%s2582_s2 + $0x1a0] sm:$0xff]  ;;  %v305_v46 = vld [vmem:[%s2582_s2 + $0x1d0] sm:$0xff]  ;;  %v312_v47 = vld [vmem:[%s2582_s2 + $0x208] sm:$0xff] }
 0x127   : > { %v727_v56 = vrot.slane %v720_v50, %v2280_v10  ;;  %v735_v57 = vrot.slane %v1553_v51, %v2280_v10  ;;  %v736_v58 = vcombine.low %v708_v48, %v715_v49  ;;  %v1554_v59 = vcombine.high %v708_v48, %v715_v49  ;;  %v318_v48 = vld [vmem:[%s2582_s2 + $0x238] sm:$0xff]  ;;  %v311_v51 = vld [vmem:[%s2582_s2 + $0x200] sm:$0xff]  ;;  %v365_v17 = vld [vmem:[%s2582_s2 + $0x3b0] sm:$0xff] }
 0x128   : > { %v859_v60 = vrot.slane %v852_v54, %v2280_v10  ;;  %v867_v61 = vrot.slane %v1556_v55, %v2280_v10  ;;  %v868_v62 = vcombine.low %v843_v52, %v851_v53  ;;  %v1725_v25 = vpack.c.bf16 %v257_v22, %v251_v19  ;;  %v317_v52 = vld [vmem:[%s2582_s2 + $0x230] sm:$0xff]  ;;  %v324_v53 = vld [vmem:[%s2582_s2 + $0x268] sm:$0xff]  ;;  %v330_v54 = vld [vmem:[%s2582_s2 + $0x298] sm:$0xff] }
 0x129   : > { %v743_v63 = vrot.slane %v736_v58, %v2280_v10  ;;  %v751_v0 = vrot.slane %v1554_v59, %v2280_v10  ;;  %v752_v3 = vcombine.low %v727_v56, %v735_v57  ;;  %v1727_v26 = vpack.c.bf16 %v270_v24, %v264_v23  ;;  %v323_v57 = vld [vmem:[%s2582_s2 + $0x260] sm:$0xff]  ;;  %v329_v58 = vld [vmem:[%s2582_s2 + $0x290] sm:$0xff]  ;;  %v336_v59 = vld [vmem:[%s2582_s2 + $0x2c8] sm:$0xff] }
 0x12a   : > { %v876_v4 = vcombine.low %v859_v60, %v867_v61  ;;  %v875_v6 = vrot.slane %v868_v62, %v2285_v20  ;;  %1726 = vmatpush1.bf16.msra.mxu0 %v1725_v25  ;;  %v1729_v31 = vpack.c.bf16 %v269_v28, %v263_v27  ;;  %v1731_v32 = vpack.c.bf16 %v282_v30, %v276_v29  ;;  %v342_v60 = vld [vmem:[%s2582_s2 + $0x2f8] sm:$0xff]  ;;  %v371_v23 = vld [vmem:[%s2582_s2 + $0x3e0] sm:$0xff]  ;;  %v377_v24 = vld [vmem:[%s2582_s2 + $0x410] sm:$0xff] }
 0x12b   : > { %v760_v5 = vcombine.low %v743_v63, %v751_v0  ;;  %v759_v9 = vrot.slane %v752_v3, %v2285_v20  ;;  %1728 = vmatprep.subr.bf16.mxu0 %v1727_v26  ;;  %v1733_v37 = vpack.c.bf16 %v281_v34, %v275_v33  ;;  %v1735_v38 = vpack.c.bf16 %v294_v36, %v288_v35  ;;  %v335_v63 = vld [vmem:[%s2582_s2 + $0x2c0] sm:$0xff]  ;;  %v341_v0 = vld [vmem:[%s2582_s2 + $0x2f0] sm:$0xff]  ;;  %v348_v3 = vld [vmem:[%s2582_s2 + $0x328] sm:$0xff] }
 0x12c   : > { %v883_v8 = vrot.slane %v876_v4, %v2285_v20  ;;  %v1737_v43 = vpack.c.bf16 %v293_v40, %v287_v39  ;;  %v1739_v44 = vpack.c.bf16 %v306_v42, %v300_v41  ;;  %v1741_v49 = vpack.c.bf16 %v305_v46, %v299_v45  ;;  %v354_v4 = vld [vmem:[%s2582_s2 + $0x358] sm:$0xff]  ;;  %v384_v25 = vld [vmem:[%s2582_s2 + $0x448] sm:$0xff]  ;;  %v383_v29 = vld [vmem:[%s2582_s2 + $0x440] sm:$0xff] }
 0x12d   : > { %v767_v11 = vrot.slane %v760_v5, %v2285_v20  ;;  %v1743_v50 = vpack.c.bf16 %v318_v48, %v312_v47  ;;  %v1745_v55 = vpack.c.bf16 %v317_v52, %v311_v51  ;;  %v1747_v56 = vpack.c.bf16 %v330_v54, %v324_v53  ;;  %v378_v19 = vld [vmem:[%s2582_s2 + $0x418] sm:$0xff]  ;;  %v389_v30 = vld [vmem:[%s2582_s2 + $0x470] sm:$0xff]  ;;  %v395_v35 = vld [vmem:[%s2582_s2 + $0x4a0] sm:$0xff] }
 0x12e   : > { %v884_v12 = vcombine.low %v875_v6, %v883_v8  ;;  %v885_v13 = vcombine.high %v875_v6, %v883_v8  ;;  %1730 = vmatpush1.bf16.msra.mxu0 %v1729_v31  ;;  %v1749_v61 = vpack.c.bf16 %v329_v58, %v323_v57  ;;  %v1751_v62 = vpack.c.bf16 %v342_v60, %v336_v59  ;;  %v347_v8 = vld [vmem:[%s2582_s2 + $0x320] sm:$0xff]  ;;  %v390_v26 = vld [vmem:[%s2582_s2 + $0x478] sm:$0xff]  ;;  %v396_v31 = vld [vmem:[%s2582_s2 + $0x4a8] sm:$0xff] }
 0x12f   : > { %v768_v14 = vcombine.low %v759_v9, %v767_v11  ;;  %v769_v15 = vcombine.high %v759_v9, %v767_v11  ;;  %1732 = vmatprep.subr.bf16.mxu0 %v1731_v32  ;;  %v1753_v5 = vpack.c.bf16 %v341_v0, %v335_v63  ;;  %v1755_v6 = vpack.c.bf16 %v354_v4, %v348_v3  ;;  %v353_v9 = vld [vmem:[%s2582_s2 + $0x350] sm:$0xff]  ;;  %v360_v11 = vld [vmem:[%s2582_s2 + $0x388] sm:$0xff]  ;;  %v402_v32 = vld [vmem:[%s2582_s2 + $0x4d8] sm:$0xff] }
 0x130   : > { %1576 = vmatpush3.xpose.msra.mxu1 %v884_v12  ;;  %v366_v12 = vld [vmem:[%s2582_s2 + $0x3b8] sm:$0xff]  ;;  %v1763_v22 = vpack.c.bf16 %v378_v19, %v372_v18  ;;  %v1765_v27 = vpack.c.bf16 %v377_v24, %v371_v23  ;;  %v1767_v28 = vpack.c.bf16 %v390_v26, %v384_v25  ;;  %v1769_v33 = vpack.c.bf16 %v389_v30, %v383_v29  ;;  %v401_v36 = vld [vmem:[%s2582_s2 + $0x4d0] sm:$0xff]  ;;  %v407_v41 = vld [vmem:[%s2582_s2 + $0x500] sm:$0xff] }
 0x131   : > { %1580 = vmatprep.subr.mxu1 %v1817_v2  ;;  %v1771_v34 = vpack.c.bf16 %v402_v32, %v396_v31  ;;  %v1773_v39 = vpack.c.bf16 %v401_v36, %v395_v35  ;;  %v413_v42 = vld [vmem:[%s2582_s2 + $0x530] sm:$0xff]  ;;  %v419_v47 = vld [vmem:[%s2582_s2 + $0x560] sm:$0xff] }
 0x132   : > { %1734 = vmatpush1.bf16.msra.mxu0 %v1733_v37  ;;  %v408_v37 = vld [vmem:[%s2582_s2 + $0x508] sm:$0xff]  ;;  %v1777_v45 = vpack.c.bf16 %v413_v42, %v407_v41  ;;  %v425_v48 = vld [vmem:[%s2582_s2 + $0x590] sm:$0xff]  ;;  %v431_v53 = vld [vmem:[%s2582_s2 + $0x5c0] sm:$0xff] }
 0x133   : > { %1578 = vmatmul.mubr.f32.vlgmr.msra.gmra.mrb[2].mxu1 %v768_v14  ;;  %1736 = vmatprep.subr.bf16.mxu0 %v1735_v38  ;;  %v1759_v14 = vpack.c.bf16 %v366_v12, %v360_v11  ;;  %v414_v38 = vld [vmem:[%s2582_s2 + $0x538] sm:$0xff]  ;;  %v1781_v51 = vpack.c.bf16 %v425_v48, %v419_v47  ;;  %v437_v54 = vld [vmem:[%s2582_s2 + $0x5f0] sm:$0xff] }
 0x134   : > { %1581 = vmatpush3.xpose.msra.mxu1 %v885_v13  ;;  %1582 = vmatprep.mubr.msk.f32.mxu1 %vm1818_vm0, %v1817_v2  ;;  %v1757_v13 = vpack.c.bf16 %v353_v9, %v347_v8  ;;  %v1775_v40 = vpack.c.bf16 %v414_v38, %v408_v37 }
 0x135   : > { %1585 = vmatprep.subr.mxu1 %v1817_v2 }
 0x136   : > { %1738 = vmatpush1.bf16.msra.mxu0 %v1737_v43  ;;  %v420_v43 = vld [vmem:[%s2582_s2 + $0x568] sm:$0xff] }
 0x137   : > { %1583 = vmatmul.mubr.f32.vlgmr.msra.gmra.mrb[4].mxu1 %v769_v15  ;;  %1740 = vmatprep.subr.bf16.mxu0 %v1739_v44  ;;  %v359_v15 = vld [vmem:[%s2582_s2 + $0x380] sm:$0xff]  ;;  %v426_v44 = vld [vmem:[%s2582_s2 + $0x598] sm:$0xff] }
 0x138   : > { %1587 = vmatprep.mubr.msk.f32.mxu1 %vm1818_vm0, %v1817_v2  ;;  %v1761_v21 = vpack.c.bf16 %v365_v17, %v359_v15  ;;  %v1779_v46 = vpack.c.bf16 %v426_v44, %v420_v43 }
 0x13a   : > { %1742 = vmatpush1.bf16.msra.mxu0 %v1741_v49  ;;  %v432_v49 = vld [vmem:[%s2582_s2 + $0x5c8] sm:$0xff] }
 0x13b   : > { %1744 = vmatprep.subr.bf16.mxu0 %v1743_v50  ;;  %v438_v50 = vld [vmem:[%s2582_s2 + $0x5f8] sm:$0xff] }
 0x13c   : > { %v1783_v52 = vpack.c.bf16 %v438_v50, %v432_v49 }
 0x13e   : > { %1746 = vmatpush1.bf16.msra.mxu0 %v1745_v55  ;;  %v1785_v55 = vpack.c.bf16 %v437_v54, %v431_v53 }
 0x13f   : > { %1748 = vmatprep.subr.bf16.mxu0 %v1747_v56  ;;  %v244_v56 = vld [vmem:[%s236_s9] sm:$0xff] }
 0x140   : > { %vm245_vm1 = vcmp.eq.f32.partialorder %v244_v56, 0.0 }
 0x141   : > { %v246_v57 = vsel %vm245_vm1, -1e+20, %v1817_v2 }
 0x142   : > { %1750 = vmatpush1.bf16.msra.mxu0 %v1749_v61 }
 0x143   : > { %1752 = vmatprep.subr.bf16.mxu0 %v1751_v62 }
 0x146   : > { %1754 = vmatpush1.bf16.msra.mxu0 %v1753_v5 }
 0x147   : > { %1756 = vmatprep.subr.bf16.mxu0 %v1755_v6 }
 0x14a   : > { %1758 = vmatpush1.bf16.msra.mxu0 %v1757_v13 }
 0x14b   : > { %1760 = vmatprep.subr.bf16.mxu0 %v1759_v14 }
 0x14e   : > { %1762 = vmatpush1.bf16.msra.mxu0 %v1761_v21 }
 0x14f   : > { %1764 = vmatprep.subr.bf16.mxu0 %v1763_v22 }
 0x152   : > { %1766 = vmatpush1.bf16.msra.mxu0 %v1765_v27 }
 0x153   : > { %1768 = vmatprep.subr.bf16.mxu0 %v1767_v28 }
 0x156   : > { %1770 = vmatpush1.bf16.msra.mxu0 %v1769_v33 }
 0x157   : > { %1772 = vmatprep.subr.bf16.mxu0 %v1771_v34 }
 0x15a   : > { %1774 = vmatpush1.bf16.msra.mxu0 %v1773_v39 }
 0x15b   : > { %1776 = vmatprep.subr.bf16.mxu0 %v1775_v40 }
 0x15e   : > { %1778 = vmatpush1.bf16.msra.mxu0 %v1777_v45 }
 0x15f   : > { %1780 = vmatprep.subr.bf16.mxu0 %v1779_v46 }
 0x162   : > { %1782 = vmatpush1.bf16.msra.mxu0 %v1781_v51 }
 0x163   : > { %1784 = vmatprep.subr.bf16.mxu0 %v1783_v52 }
 0x166   : > { %1786 = vmatpush1.bf16.msra.mxu0 %v1785_v55 }
 0x169   : > { %646 = vmatmul.mubr.f32.vlgmr.msra.gmra.mrb[2].mxu0 %v2269_v1 }
 0x206   : > { %v1068_v58 = vpop.f32.mrb[2].mxu1 }
 0x207   : > { %v1069_v59 = vadd.f32 %v1068_v58, %v246_v57  ;;  %v1579_v60 = vpop.f32.mrb[3].mxu1 }
 0x209   : > { %v1143_v61 = vsel %vm1142_vm2, %v1069_v59, -inf }
 0x20a   : > { %1144 = vmax.xlane.f32.xlu0 %v1143_v61  ;;  %v1138_v62 = vpop.f32.mrb[4].mxu1 }
 0x20b   : > { %v1139_v63 = vadd.f32 %v1138_v62, %v246_v57  ;;  %v1584_v0 = vpop.f32.mrb[5].mxu1 }
 0x20d   : > { %v1146_v3 = vsel %vm1142_vm2, %v1139_v63, -inf }
 0x20e   : > { %1147 = vmax.xlane.f32.xlu0 %v1146_v3 }
 0x23c   : > { %v647_v12 = vpop.f32.mrb[2].mxu0 }
 0x23d   : > { %v886_v13 = vcombine.high %v647_v12, %v1817_v2  ;;  %v893_v14 = vrot.slane %v647_v12, %v2280_v10  ;;  %v649_v15 = vpop.f32.mrb[3].mxu0 }
 0x23e   : > { %v901_v18 = vcombine.high %v649_v15, %v1817_v2  ;;  %v908_v19 = vrot.slane %v649_v15, %v2280_v10 }
 0x23f   : > { %v900_v22 = vrot.slane %v886_v13, %v2280_v10 }
 0x240   : > { %v915_v23 = vrot.slane %v901_v18, %v2280_v10  ;;  %v916_v24 = vcombine.low %v893_v14, %v908_v19  ;;  %v917_v25 = vcombine.high %v893_v14, %v908_v19 }
 0x242   : > { %v924_v27 = vrot.slane %v916_v24, %v2285_v20  ;;  %v931_v28 = vrot.slane %v917_v25, %v2285_v20  ;;  %v932_v29 = vcombine.low %v900_v22, %v915_v23  ;;  %v933_v30 = vcombine.high %v900_v22, %v915_v23 }
 0x244   : > { %v940_v32 = vrot.slane %v932_v29, %v2285_v20  ;;  %v947_v33 = vrot.slane %v933_v30, %v2285_v20  ;;  %v952_v34 = vcombine.low %v924_v27, %v931_v28  ;;  %v1557_v35 = vcombine.high %v924_v27, %v931_v28 }
 0x246   : > { %v959_v36 = vrot.slane %v952_v34, %v2280_v10  ;;  %v967_v37 = vrot.slane %v1557_v35, %v2280_v10  ;;  %v968_v38 = vcombine.low %v940_v32, %v947_v33  ;;  %v1558_v39 = vcombine.high %v940_v32, %v947_v33 }
 0x248   : > { %v984_v40 = vcombine.low %v959_v36, %v967_v37  ;;  %v975_v41 = vrot.slane %v968_v38, %v2280_v10  ;;  %v983_v42 = vrot.slane %v1558_v39, %v2280_v10  ;;  %v1450_v38 = vsub.s32 0, %v2277_v7  ;;  %v1460_v39 = vld [vmem:[%s2584_s4] sm:$0x3] }
 0x24a   : > { %v992_v43 = vcombine.low %v975_v41, %v983_v42  ;;  %v991_v44 = vrot.slane %v984_v40, %v2285_v20 }
 0x24c   : > { %v999_v45 = vrot.slane %v992_v43, %v2285_v20  ;;  %v1465_v43 = vrot.slane %v1460_v39, %v1450_v38 }
 0x24e   : > { %v1000_v46 = vcombine.low %v991_v44, %v999_v45  ;;  %v1001_v47 = vcombine.high %v991_v44, %v999_v45 }
 0x250   : > { %1586 = vmatpush3.msra.mxu1 %v1000_v46 }
 0x251   : > { %1590 = vmatprep.subr.mxu1 %v1817_v2 }
 0x297   : > { %v1145_v4 = vpop.xlane.xlu0 %1144 }
 0x298   : > { %v1149_v5 = vsub.f32 %v1069_v59, %v1145_v4 }
 0x29a   : > { %v1151_v6 = vmul.f32 1.442695, %v1149_v5 }
 0x29b   : > { %v1148_v8 = vpop.xlane.xlu0 %1147 }
 0x29c   : > { %1799 = vpow2.f32 %v1151_v6  ;;  %v1150_v9 = vsub.f32 %v1139_v63, %v1148_v8 }
 0x29e   : > { %v1153_v11 = vmul.f32 1.442695, %v1150_v9 }
 0x2a0   : > { %1801 = vpow2.f32 %v1153_v11 }
 0x2a6   : > { %v1800_v17 = vpop.eup %1799 }
 0x2a7   : > { %v1155_v21 = vsel %vm1142_vm2, %v1800_v17, 0.0 }
 0x2a8   : > { %1156 = vadd.xlane.f32.xlu1 %v1155_v21 }
 0x2aa   : > { %v1802_v26 = vpop.eup %1801 }
 0x2ab   : > { %v1158_v31 = vsel %vm1142_vm2, %v1802_v26, 0.0 }
 0x2ac   : > { %1159 = vadd.xlane.f32.xlu1 %v1158_v31 }
 0x335   : > { %v1157_v48 = vpop.xlane.xlu1 %1156 }
 0x336   : > { %1803 = vrcp.f32 %v1157_v48 }
 0x339   : > { %v1160_v49 = vpop.xlane.xlu1 %1159 }
 0x33a   : > { %1805 = vrcp.f32 %v1160_v49 }
 0x340   : > { %v1804_v50 = vpop.eup %1803 }
 0x341   : > { %v1162_v51 = vmul.f32 %v1804_v50, %v1800_v17 }
 0x343   : > { %1588 = vmatmul.mubr.msk.f32.vlgmr.msra.gmra.mrb[6].mxu1 %vm1142_vm2, %v1162_v51 }
 0x344   : > { %v1806_v52 = vpop.eup %1805  ;;  %1591 = vmatpush3.msra.mxu1 %v1001_v47  ;;  %1592 = vmatprep.mubr.msk.f32.mxu1 %vm1818_vm0, %v1817_v2 }
 0x345   : > { %v1164_v53 = vmul.f32 %v1806_v52, %v1802_v26 }
 0x347   : > { %1593 = vmatmul.mubr.msk.f32.vlgmr.msra.gmra.mrb[8].mxu1 %vm1142_vm2, %v1164_v53 }
 0x416   : > { %v1234_v54 = vpop.f32.mrb[6].mxu1 }
 0x417   : > { %v1589_v55 = vpop.f32.mrb[7].mxu1  ;;  %v1311_v56 = vcombine.high %v1234_v54, %v1817_v2  ;;  %v1318_v58 = vrot.slane %v1234_v54, %v2280_v10 }
 0x419   : > { %v1325_v62 = vrot.slane %v1311_v56, %v2280_v10 }
 0x41a   : > { %v1307_v57 = vpop.f32.mrb[8].mxu1 }
 0x41b   : > { %v1326_v59 = vcombine.high %v1307_v57, %v1817_v2  ;;  %v1333_v60 = vrot.slane %v1307_v57, %v2280_v10  ;;  %v1594_v61 = vpop.f32.mrb[9].mxu1 }
 0x41d   : > { %v1340_v63 = vrot.slane %v1326_v59, %v2280_v10  ;;  %v1341_v0 = vcombine.low %v1318_v58, %v1333_v60  ;;  %v1342_v3 = vcombine.high %v1318_v58, %v1333_v60 }
 0x41f   : > { %v1349_v4 = vrot.slane %v1341_v0, %v2285_v20  ;;  %v1356_v5 = vrot.slane %v1342_v3, %v2285_v20  ;;  %v1357_v6 = vcombine.low %v1325_v62, %v1340_v63  ;;  %v1358_v8 = vcombine.high %v1325_v62, %v1340_v63 }
 0x421   : > { %v1365_v9 = vrot.slane %v1357_v6, %v2285_v20  ;;  %v1372_v11 = vrot.slane %v1358_v8, %v2285_v20  ;;  %v1377_v2 = vcombine.low %v1349_v4, %v1356_v5  ;;  %v1561_v12 = vcombine.high %v1349_v4, %v1356_v5 }
 0x423   : > { %v1384_v13 = vrot.slane %v1377_v2, %v2280_v10  ;;  %v1392_v14 = vrot.slane %v1561_v12, %v2280_v10  ;;  %v1393_v15 = vcombine.low %v1365_v9, %v1372_v11  ;;  %v1562_v17 = vcombine.high %v1365_v9, %v1372_v11 }
 0x425   : > { %v1400_v18 = vrot.slane %v1393_v15, %v2280_v10  ;;  %v1408_v19 = vrot.slane %v1562_v17, %v2280_v10  ;;  %v1409_v21 = vcombine.low %v1384_v13, %v1392_v14 }
 0x427   : > { %v1417_v22 = vcombine.low %v1400_v18, %v1408_v19  ;;  %v1416_v23 = vrot.slane %v1409_v21, %v2285_v20 }
 0x429   : > { %v1424_v24 = vrot.slane %v1417_v22, %v2285_v20 }
 0x42b   : > { %v1425_v25 = vcombine.low %v1416_v23, %v1424_v24  ;;  %v1426_v26 = vcombine.high %v1416_v23, %v1424_v24 }
 0x42d   : > { %v1427_v27 = vadd.f32 %v1425_v25, %v2269_v1  ;;  %v1428_v28 = vadd.f32 %v1426_v26, %v2174_v16  ;;  %v1454_v1 = vsub.s32 1, %v2277_v7  ;;  %v1446_v16 = vld [vmem:[%s2583_s3] sm:$0x3] }
 0x42e   : > { %v1451_v40 = vrot.slane %v1446_v16, %v1450_v38 }
 0x42f   : > { %v1429_v29 = vadd.f32 %v1428_v28, %v1427_v27  ;;  %v1455_v41 = vrot.slane %v1446_v16, %v1454_v1  ;;  %v1469_v44 = vrot.slane %v1460_v39, %v1454_v1 }
 0x431   : > { %1430 = vadd.xlane.f32.xlu0 %v1429_v29 }
 0x4be   : > { %v1431_v30 = vpop.xlane.xlu0 %1430 }
 0x4bf   : > { %v1433_v31 = vmul.f32 0.00390625, %v1431_v30 }
 0x4c1   : > { %v1434_v32 = vsub.f32 %v1427_v27, %v1433_v31  ;;  %v1435_v33 = vsub.f32 %v1428_v28, %v1433_v31 }
 0x4c3   : > { %v1436_v34 = vmul.f32 %v1434_v32, %v1434_v32  ;;  %v1437_v10 = vmul.f32 %v1435_v33, %v1435_v33 }
 0x4c5   : > { %v1438_v35 = vadd.f32 %v1437_v10, %v1436_v34 }
 0x4c7   : > { %1439 = vadd.xlane.f32.xlu1 %v1438_v35 }
 0x554   : > { %v1440_v36 = vpop.xlane.xlu1 %1439 }
 0x555   : > { %v1441_v37 = vmul.f32 0.00390625, %v1440_v36 }
 0x557   : > { %v1442_v20 = vadd.f32 1e-05, %v1441_v37 }
 0x559   : > { %1807 = vrsqrt.f32 %v1442_v20 }
 0x563   : > { %v1808_v42 = vpop.eup %1807 }
 0x564   : > { %v1444_v45 = vmul.f32 %v1808_v42, %v1434_v32  ;;  %v1445_v46 = vmul.f32 %v1808_v42, %v1435_v33 }
 0x566   : > { %v1458_v47 = vmul.f32 %v1451_v40, %v1444_v45  ;;  %v1459_v48 = vmul.f32 %v1455_v41, %v1445_v46 }
 0x568   : > { %v1472_v7 = vadd.f32 %v1465_v43, %v1458_v47  ;;  %v1473_v49 = vadd.f32 %v1469_v44, %v1459_v48 }
 0x56a   : > { %1474 = vst [vmem:[%s241_s15] sm:$0xff] %v1472_v7  ;;  %1475 = vst [vmem:[%s241_s15 + $0x8] sm:$0xff] %v1473_v49 }
 0x56b PF: > { %s15_s18 = sadd.s32 1, %s1815_s18  }
 0x56c   : > { %p12_p4 = scmp.ge.s32.totalorder %s15_s18, 4  }
 0x56e   :  { %14 = sbr.rel (!%p12_p4) target bundleno = 1 (0x1), region = 73 }

// kernel: decoder_block.4
= control target key start
LH: loop header
LB: loop body
LE: loop exit
PB: predicated region body
PF: predicated region fallthrough
CT: control target
= control target key end

     0   :  { %s2386_s24 = smov 0   ;;  %s2388_s25 = smov 0   ;;  %s3182_s0 = inlined_call_operand.vmem [shape: f32[2,8,256], index: 0, kind: input, shape index: {}]   ;;  %s3183_s1 = inlined_call_operand.vmem [shape: f32[2,16,256], index: 1, kind: input, shape index: {}]   ;;  %s3184_s2 = inlined_call_operand.vmem [shape: f32[2,16,256], index: 2, kind: input, shape index: {}]   ;;  %s3185_s3 = inlined_call_operand.vmem [shape: f32[2,1,8,16], index: 3, kind: input, shape index: {}]   ;;  %s3186_s4 = inlined_call_operand.vmem [shape: f32[256,768], index: 4, kind: input, shape index: {}]   ;;  %s3187_s5 = inlined_call_operand.vmem [shape: f32[1,256], index: 5, kind: input, shape index: {}]   ;;  %s3188_s6 = inlined_call_operand.vmem [shape: f32[1,256], index: 6, kind: input, shape index: {}]   ;;  %s3189_s7 = inlined_call_operand.vmem [shape: f32[2,8,256], index: 7, kind: output, shape index: {}]  }
   0x1   :  { %s2390_s26 = smov 0  }
   0x2 LB: > { %s29_s27 = sadd.s32 1, %s2335_s25  ;;  %p2004_p0 = scmp.ge.s32.totalorder %s2339_s26, 1  ;;  %s2339_s26 = sphi %s2390_s26, %s17_s26   ;;  %s2335_s25 = sphi %s2388_s25, %s3191_s25   ;;  %s2331_s24 = sphi %s2386_s24, %s3190_s24  }
   0x3   : > { %p31_p1 = scmp.ge.s32.totalorder %s29_s27, 2  ;;  %p291_p2 = scmp.lt.s32.totalorder %s2339_s26, 3 }
   0x5   : > { %s3193_s27 = smov (%p31_p1, %s29_s27), 0  ;;  %p292_p3 = pnand %p2004_p0, %p291_p2 }
   0x6   : > { %v391_v0 = vld [vmem:[%s3186_s4 + $0x18] sm:$0xff] (!%p292_p3)  ;;  %v397_v1 = vld [vmem:[%s3186_s4 + $0x48] sm:$0xff] (!%p292_p3)  ;;  %v390_v2 = vld [vmem:[%s3186_s4 + $0x10] sm:$0xff] (!%p292_p3)  ;;  %p348_p4 = scmp.lt.s32.totalorder (!%p292_p3), %s2331_s24, 1  ;;  %vm2342_vm0 = vmmov (!%p292_p3), 0   ;;  %vm1535_vm2 = vcmask (!%p292_p3), 130048  }
   0x7   : > { %295 = sbr.rel (%p292_p3) target bundleno = 1402 (0x57a), region = 48  ;;  %v2138_v3 = vpack.c.bf16 (!%p292_p3), %v397_v1, %v391_v0  ;;  %v396_v4 = vld [vmem:[%s3186_s4 + $0x40] sm:$0xff] (!%p292_p3)  ;;  %v403_v5 = vld [vmem:[%s3186_s4 + $0x78] sm:$0xff] (!%p292_p3)  ;;  %v409_v6 = vld [vmem:[%s3186_s4 + $0xa8] sm:$0xff] (!%p292_p3) }
   0x8   : > { %v2140_v7 = vpack.c.bf16 (!%p292_p3), %v396_v4, %v390_v2  ;;  %v2142_v8 = vpack.c.bf16 (!%p292_p3), %v409_v6, %v403_v5  ;;  %v402_v9 = vld [vmem:[%s3186_s4 + $0x70] sm:$0xff] (!%p292_p3)  ;;  %v408_v10 = vld [vmem:[%s3186_s4 + $0xa0] sm:$0xff] (!%p292_p3)  ;;  %v415_v11 = vld [vmem:[%s3186_s4 + $0xd8] sm:$0xff] (!%p292_p3) }
   0x9   : > { %2139 = vmatprep.subr.bf16.mxu1 (!%p292_p3), %v2138_v3  ;;  %v421_v12 = vld [vmem:[%s3186_s4 + $0x108] sm:$0xff] (!%p292_p3)  ;;  %v395_v14 = vld [vmem:[%s3186_s4 + $0x38] sm:$0xff] (!%p292_p3)  ;;  %v2144_v15 = vpack.c.bf16 (!%p292_p3), %v408_v10, %v402_v9  ;;  %v414_v17 = vld [vmem:[%s3186_s4 + $0xd0] sm:$0xff] (!%p292_p3) }
   0xa   : > { %v389_v13 = vld [vmem:[%s3186_s4 + $0x8] sm:$0xff] (!%p292_p3)  ;;  %2141 = vmatpush1.bf16.msra.mxu1 (!%p292_p3), %v2140_v7  ;;  %v388_v18 = vld [vmem:[%s3186_s4] sm:$0xff] (!%p292_p3)  ;;  %v2146_v19 = vpack.c.bf16 (!%p292_p3), %v421_v12, %v415_v11  ;;  %v394_v21 = vld [vmem:[%s3186_s4 + $0x30] sm:$0xff] (!%p292_p3) }
   0xb   : > { %v2074_v16 = vpack.c.bf16 (!%p292_p3), %v395_v14, %v389_v13  ;;  %2143 = vmatprep.subr.bf16.mxu1 (!%p292_p3), %v2142_v8  ;;  %v420_v20 = vld [vmem:[%s3186_s4 + $0x100] sm:$0xff] (!%p292_p3)  ;;  %v427_v22 = vld [vmem:[%s3186_s4 + $0x138] sm:$0xff] (!%p292_p3)  ;;  %v2076_v23 = vpack.c.bf16 (!%p292_p3), %v394_v21, %v388_v18  ;;  %v433_v24 = vld [vmem:[%s3186_s4 + $0x168] sm:$0xff] (!%p292_p3) }
   0xc   : > { %v401_v25 = vld [vmem:[%s3186_s4 + $0x68] sm:$0xff] (!%p292_p3)  ;;  %v407_v26 = vld [vmem:[%s3186_s4 + $0x98] sm:$0xff] (!%p292_p3)  ;;  %v400_v28 = vld [vmem:[%s3186_s4 + $0x60] sm:$0xff] (!%p292_p3)  ;;  %v2148_v30 = vpack.c.bf16 (!%p292_p3), %v420_v20, %v414_v17  ;;  %v2150_v34 = vpack.c.bf16 (!%p292_p3), %v433_v24, %v427_v22 }
   0xd   : > { %2075 = vmatprep.subr.bf16.mxu0 (!%p292_p3), %v2074_v16  ;;  %v2078_v27 = vpack.c.bf16 (!%p292_p3), %v407_v26, %v401_v25  ;;  %v406_v29 = vld [vmem:[%s3186_s4 + $0x90] sm:$0xff] (!%p292_p3)  ;;  %v413_v33 = vld [vmem:[%s3186_s4 + $0xc8] sm:$0xff] (!%p292_p3)  ;;  %v432_v35 = vld [vmem:[%s3186_s4 + $0x160] sm:$0xff] (!%p292_p3) }
   0xe   : > { %2145 = vmatpush1.bf16.msra.mxu1 %v2144_v15  ;;  %2077 = vmatpush1.bf16.msra.mxu0 %v2076_v23  ;;  %v426_v31 = vld [vmem:[%s3186_s4 + $0x130] sm:$0xff]  ;;  %v2080_v32 = vpack.c.bf16 %v406_v29, %v400_v28  ;;  %v439_v36 = vld [vmem:[%s3186_s4 + $0x198] sm:$0xff]  ;;  %v445_v38 = vld [vmem:[%s3186_s4 + $0x1c8] sm:$0xff]  ;;  %s3195_s24 = smov (!%p348_p4, %s2331_s24), 1 }
   0xf   : > { %2147 = vmatprep.subr.bf16.mxu1 %v2146_v19  ;;  %2079 = vmatprep.subr.bf16.mxu0 %v2078_v27  ;;  %v419_v37 = vld [vmem:[%s3186_s4 + $0xf8] sm:$0xff]  ;;  %v412_v40 = vld [vmem:[%s3186_s4 + $0xc0] sm:$0xff]  ;;  %v418_v41 = vld [vmem:[%s3186_s4 + $0xf0] sm:$0xff]  ;;  %v2152_v44 = vpack.c.bf16 %v432_v35, %v426_v31  ;;  %v2154_v48 = vpack.c.bf16 %v445_v38, %v439_v36  ;;  %s2031_s13 = sshll.u32 %s3195_s24, 5  ;;  %s2030_s15 = sshll.u32 %s3195_s24, 4 }
  0x10   : > { %v2082_v39 = vpack.c.bf16 %v419_v37, %v413_v33  ;;  %v425_v42 = vld [vmem:[%s3186_s4 + $0x128] sm:$0xff]  ;;  %v431_v43 = vld [vmem:[%s3186_s4 + $0x158] sm:$0xff]  ;;  %v438_v45 = vld [vmem:[%s3186_s4 + $0x190] sm:$0xff]  ;;  %v2084_v47 = vpack.c.bf16 %v418_v41, %v412_v40  ;;  %s2673_s30 = scalar_lea.vmem %s3183_s1, %s2031_s13  ;;  %s2706_s10 = scalar_lea.vmem %s3182_s0, %s2030_s15 }
  0x11   : > { %v444_v46 = vld [vmem:[%s3186_s4 + $0x1c0] sm:$0xff]  ;;  %v451_v49 = vld [vmem:[%s3186_s4 + $0x1f8] sm:$0xff]  ;;  %v2086_v50 = vpack.c.bf16 %v431_v43, %v425_v42  ;;  %v430_v52 = vld [vmem:[%s3186_s4 + $0x150] sm:$0xff]  ;;  %s2972_s28 = scalar_lea.vmem %s3184_s2, %s2031_s13  ;;  %s2011_s13 = sshll.u32 %s3195_s24, 3 }
  0x12   : > { %2149 = vmatpush1.bf16.msra.mxu1 %v2148_v30  ;;  %2081 = vmatpush1.bf16.msra.mxu0 %v2080_v32  ;;  %v424_v51 = vld [vmem:[%s3186_s4 + $0x120] sm:$0xff]  ;;  %v457_v53 = vld [vmem:[%s3186_s4 + $0x228] sm:$0xff]  ;;  %v443_v55 = vld [vmem:[%s3186_s4 + $0x1b8] sm:$0xff]  ;;  %v2156_v56 = vpack.c.bf16 %v444_v46, %v438_v45  ;;  %s373_s20 = scalar_lea.vmem %s3185_s3, %s2011_s13  ;;  %s382_s29 = scalar_lea.vmem %s3189_s7, %s2030_s15 }
  0x13   : > { %2151 = vmatprep.subr.bf16.mxu1 %v2150_v34  ;;  %2083 = vmatprep.subr.bf16.mxu0 %v2082_v39  ;;  %v437_v54 = vld [vmem:[%s3186_s4 + $0x188] sm:$0xff]  ;;  %v450_v57 = vld [vmem:[%s3186_s4 + $0x1f0] sm:$0xff]  ;;  %v456_v58 = vld [vmem:[%s3186_s4 + $0x220] sm:$0xff]  ;;  %v2088_v59 = vpack.c.bf16 %v430_v52, %v424_v51  ;;  %v2158_v60 = vpack.c.bf16 %v457_v53, %v451_v49 }
  0x14   : > { %v463_v61 = vld [vmem:[%s3186_s4 + $0x258] sm:$0xff]  ;;  %v2090_v62 = vpack.c.bf16 %v443_v55, %v437_v54  ;;  %v436_v63 = vld [vmem:[%s3186_s4 + $0x180] sm:$0xff]  ;;  %v442_v0 = vld [vmem:[%s3186_s4 + $0x1b0] sm:$0xff]  ;;  %v2160_v4 = vpack.c.bf16 %v456_v58, %v450_v57 }
  0x15   : > { %v469_v1 = vld [vmem:[%s3186_s4 + $0x288] sm:$0xff]  ;;  %v455_v3 = vld [vmem:[%s3186_s4 + $0x218] sm:$0xff]  ;;  %v462_v5 = vld [vmem:[%s3186_s4 + $0x250] sm:$0xff]  ;;  %v2092_v7 = vpack.c.bf16 %v442_v0, %v436_v63 }
  0x16   : > { %2153 = vmatpush1.bf16.msra.mxu1 %v2152_v44  ;;  %2085 = vmatpush1.bf16.msra.mxu0 %v2084_v47  ;;  %v449_v2 = vld [vmem:[%s3186_s4 + $0x1e8] sm:$0xff]  ;;  %v468_v6 = vld [vmem:[%s3186_s4 + $0x280] sm:$0xff]  ;;  %v2162_v8 = vpack.c.bf16 %v469_v1, %v463_v61  ;;  %v475_v9 = vld [vmem:[%s3186_s4 + $0x2b8] sm:$0xff] }
  0x17   : > { %2155 = vmatprep.subr.bf16.mxu1 %v2154_v48  ;;  %2087 = vmatprep.subr.bf16.mxu0 %v2086_v50  ;;  %v2094_v10 = vpack.c.bf16 %v455_v3, %v449_v2  ;;  %v448_v11 = vld [vmem:[%s3186_s4 + $0x1e0] sm:$0xff]  ;;  %v454_v12 = vld [vmem:[%s3186_s4 + $0x210] sm:$0xff]  ;;  %v481_v13 = vld [vmem:[%s3186_s4 + $0x2e8] sm:$0xff]  ;;  %v2164_v16 = vpack.c.bf16 %v468_v6, %v462_v5 }
  0x18   : > { %v461_v14 = vld [vmem:[%s3186_s4 + $0x248] sm:$0xff]  ;;  %v467_v15 = vld [vmem:[%s3186_s4 + $0x278] sm:$0xff]  ;;  %v474_v17 = vld [vmem:[%s3186_s4 + $0x2b0] sm:$0xff]  ;;  %v2096_v19 = vpack.c.bf16 %v454_v12, %v448_v11  ;;  %v2166_v20 = vpack.c.bf16 %v481_v13, %v475_v9 }
  0x19   : > { %v480_v18 = vld [vmem:[%s3186_s4 + $0x2e0] sm:$0xff]  ;;  %v487_v21 = vld [vmem:[%s3186_s4 + $0x318] sm:$0xff]  ;;  %v2098_v22 = vpack.c.bf16 %v467_v15, %v461_v14  ;;  %v466_v24 = vld [vmem:[%s3186_s4 + $0x270] sm:$0xff] }
  0x1a   : > { %2157 = vmatpush1.bf16.msra.mxu1 %v2156_v56  ;;  %2089 = vmatpush1.bf16.msra.mxu0 %v2088_v59  ;;  %v460_v23 = vld [vmem:[%s3186_s4 + $0x240] sm:$0xff]  ;;  %v493_v25 = vld [vmem:[%s3186_s4 + $0x348] sm:$0xff]  ;;  %v479_v27 = vld [vmem:[%s3186_s4 + $0x2d8] sm:$0xff]  ;;  %v2168_v28 = vpack.c.bf16 %v480_v18, %v474_v17 }
  0x1b   : > { %2159 = vmatprep.subr.bf16.mxu1 %v2158_v60  ;;  %2091 = vmatprep.subr.bf16.mxu0 %v2090_v62  ;;  %v473_v26 = vld [vmem:[%s3186_s4 + $0x2a8] sm:$0xff]  ;;  %v486_v29 = vld [vmem:[%s3186_s4 + $0x310] sm:$0xff]  ;;  %v492_v30 = vld [vmem:[%s3186_s4 + $0x340] sm:$0xff]  ;;  %v2100_v31 = vpack.c.bf16 %v466_v24, %v460_v23  ;;  %v2170_v32 = vpack.c.bf16 %v493_v25, %v487_v21 }
  0x1c   : > { %v499_v33 = vld [vmem:[%s3186_s4 + $0x378] sm:$0xff]  ;;  %v2102_v34 = vpack.c.bf16 %v479_v27, %v473_v26  ;;  %v472_v35 = vld [vmem:[%s3186_s4 + $0x2a0] sm:$0xff]  ;;  %v478_v36 = vld [vmem:[%s3186_s4 + $0x2d0] sm:$0xff]  ;;  %v2172_v40 = vpack.c.bf16 %v492_v30, %v486_v29 }
  0x1d   : > { %v505_v37 = vld [vmem:[%s3186_s4 + $0x3a8] sm:$0xff]  ;;  %v491_v39 = vld [vmem:[%s3186_s4 + $0x338] sm:$0xff]  ;;  %v498_v41 = vld [vmem:[%s3186_s4 + $0x370] sm:$0xff]  ;;  %v2104_v43 = vpack.c.bf16 %v478_v36, %v472_v35 }
  0x1e   : > { %2161 = vmatpush1.bf16.msra.mxu1 %v2160_v4  ;;  %2093 = vmatpush1.bf16.msra.mxu0 %v2092_v7  ;;  %v485_v38 = vld [vmem:[%s3186_s4 + $0x308] sm:$0xff]  ;;  %v504_v42 = vld [vmem:[%s3186_s4 + $0x3a0] sm:$0xff]  ;;  %v2174_v44 = vpack.c.bf16 %v505_v37, %v499_v33  ;;  %v511_v45 = vld [vmem:[%s3186_s4 + $0x3d8] sm:$0xff] }
  0x1f   : > { %2163 = vmatprep.subr.bf16.mxu1 %v2162_v8  ;;  %2095 = vmatprep.subr.bf16.mxu0 %v2094_v10  ;;  %v2106_v46 = vpack.c.bf16 %v491_v39, %v485_v38  ;;  %v484_v47 = vld [vmem:[%s3186_s4 + $0x300] sm:$0xff]  ;;  %v490_v48 = vld [vmem:[%s3186_s4 + $0x330] sm:$0xff]  ;;  %v517_v49 = vld [vmem:[%s3186_s4 + $0x408] sm:$0xff]  ;;  %v2176_v52 = vpack.c.bf16 %v504_v42, %v498_v41 }
  0x20   : > { %v497_v50 = vld [vmem:[%s3186_s4 + $0x368] sm:$0xff]  ;;  %v503_v51 = vld [vmem:[%s3186_s4 + $0x398] sm:$0xff]  ;;  %v510_v53 = vld [vmem:[%s3186_s4 + $0x3d0] sm:$0xff]  ;;  %v2108_v55 = vpack.c.bf16 %v490_v48, %v484_v47  ;;  %v2178_v56 = vpack.c.bf16 %v517_v49, %v511_v45 }
  0x21   : > { %v516_v54 = vld [vmem:[%s3186_s4 + $0x400] sm:$0xff]  ;;  %v523_v57 = vld [vmem:[%s3186_s4 + $0x438] sm:$0xff]  ;;  %v2110_v58 = vpack.c.bf16 %v503_v51, %v497_v50  ;;  %v502_v60 = vld [vmem:[%s3186_s4 + $0x390] sm:$0xff] }
  0x22   : > { %2165 = vmatpush1.bf16.msra.mxu1 %v2164_v16  ;;  %2097 = vmatpush1.bf16.msra.mxu0 %v2096_v19  ;;  %v496_v59 = vld [vmem:[%s3186_s4 + $0x360] sm:$0xff]  ;;  %v529_v61 = vld [vmem:[%s3186_s4 + $0x468] sm:$0xff]  ;;  %v515_v63 = vld [vmem:[%s3186_s4 + $0x3f8] sm:$0xff]  ;;  %v2180_v0 = vpack.c.bf16 %v516_v54, %v510_v53 }
  0x23   : > { %2167 = vmatprep.subr.bf16.mxu1 %v2166_v20  ;;  %2099 = vmatprep.subr.bf16.mxu0 %v2098_v22  ;;  %v509_v62 = vld [vmem:[%s3186_s4 + $0x3c8] sm:$0xff]  ;;  %v522_v1 = vld [vmem:[%s3186_s4 + $0x430] sm:$0xff]  ;;  %v528_v2 = vld [vmem:[%s3186_s4 + $0x460] sm:$0xff]  ;;  %v2112_v3 = vpack.c.bf16 %v502_v60, %v496_v59  ;;  %v2182_v5 = vpack.c.bf16 %v529_v61, %v523_v57 }
  0x24   : > { %v581_v4 = vld [vmem:[%s2673_s30 + $0x8] sm:$0xff]  ;;  %v535_v6 = vld [vmem:[%s3186_s4 + $0x498] sm:$0xff]  ;;  %v2114_v7 = vpack.c.bf16 %v515_v63, %v509_v62  ;;  %v508_v8 = vld [vmem:[%s3186_s4 + $0x3c0] sm:$0xff]  ;;  %v2184_v13 = vpack.c.bf16 %v528_v2, %v522_v1 }
  0x25   : > { %v514_v9 = vld [vmem:[%s3186_s4 + $0x3f0] sm:$0xff]  ;;  %v541_v10 = vld [vmem:[%s3186_s4 + $0x4c8] sm:$0xff]  ;;  %v527_v12 = vld [vmem:[%s3186_s4 + $0x458] sm:$0xff]  ;;  %723 = vmatprep.mubr.f32.mxu1 %v581_v4 }
  0x26   : > { %2169 = vmatpush1.bf16.msra.mxu1 %v2168_v28  ;;  %2101 = vmatpush1.bf16.msra.mxu0 %v2100_v31  ;;  %v521_v11 = vld [vmem:[%s3186_s4 + $0x428] sm:$0xff]  ;;  %v534_v14 = vld [vmem:[%s3186_s4 + $0x490] sm:$0xff]  ;;  %v540_v15 = vld [vmem:[%s3186_s4 + $0x4c0] sm:$0xff]  ;;  %v2116_v16 = vpack.c.bf16 %v514_v9, %v508_v8  ;;  %v2186_v18 = vpack.c.bf16 %v541_v10, %v535_v6  ;;  %v2341_v6 = vmov 0.0|0.0   ;;  %v2344_v8 = vmov 1983009808  }
  0x27   : > { %2171 = vmatprep.subr.bf16.mxu1 %v2170_v32  ;;  %2103 = vmatprep.subr.bf16.mxu0 %v2102_v34  ;;  %v2724_v17 = vld [vmem:[%s2706_s10 + $0x8] sm:$0xff]  ;;  %v547_v19 = vld [vmem:[%s3186_s4 + $0x4f8] sm:$0xff]  ;;  %v2118_v20 = vpack.c.bf16 %v527_v12, %v521_v11  ;;  %v520_v21 = vld [vmem:[%s3186_s4 + $0x420] sm:$0xff]  ;;  %v2188_v26 = vpack.c.bf16 %v540_v15, %v534_v14  ;;  %v817_v9 = vunpack.c.l.s4 %v2344_v8  ;;  %v819_v10 = vlaneseq }
  0x28   : > { %v526_v22 = vld [vmem:[%s3186_s4 + $0x450] sm:$0xff]  ;;  %v553_v23 = vld [vmem:[%s3186_s4 + $0x528] sm:$0xff]  ;;  %v539_v25 = vld [vmem:[%s3186_s4 + $0x4b8] sm:$0xff]  ;;  %652 = vmatprep.mubr.f32.mxu0 %v2724_v17 }
  0x29   : > { %v533_v24 = vld [vmem:[%s3186_s4 + $0x488] sm:$0xff]  ;;  %v546_v27 = vld [vmem:[%s3186_s4 + $0x4f0] sm:$0xff]  ;;  %v552_v28 = vld [vmem:[%s3186_s4 + $0x520] sm:$0xff]  ;;  %v2120_v29 = vpack.c.bf16 %v526_v22, %v520_v21  ;;  %v2190_v30 = vpack.c.bf16 %v553_v23, %v547_v19  ;;  %v818_v11 = vunpack.c.0.s8 %v817_v9  ;;  %v2827_v12 = vshrl.u32 %v819_v10, 7 }
  0x2a   : > { %2173 = vmatpush1.bf16.msra.mxu1 %v2172_v40  ;;  %2105 = vmatpush1.bf16.msra.mxu0 %v2104_v43  ;;  %v559_v31 = vld [vmem:[%s3186_s4 + $0x558] sm:$0xff]  ;;  %v2122_v32 = vpack.c.bf16 %v539_v25, %v533_v24  ;;  %v532_v33 = vld [vmem:[%s3186_s4 + $0x480] sm:$0xff]  ;;  %v538_v34 = vld [vmem:[%s3186_s4 + $0x4b0] sm:$0xff]  ;;  %v2192_v38 = vpack.c.bf16 %v552_v28, %v546_v27 }
  0x2b   : > { %2175 = vmatprep.subr.bf16.mxu1 %v2174_v44  ;;  %2107 = vmatprep.subr.bf16.mxu0 %v2106_v46  ;;  %v565_v35 = vld [vmem:[%s3186_s4 + $0x588] sm:$0xff]  ;;  %v551_v37 = vld [vmem:[%s3186_s4 + $0x518] sm:$0xff]  ;;  %v558_v39 = vld [vmem:[%s3186_s4 + $0x550] sm:$0xff]  ;;  %v2124_v41 = vpack.c.bf16 %v538_v34, %v532_v33  ;;  %v2830_v15 = vsub.s32 %v818_v11, %v2827_v12 }
  0x2c   : > { %v545_v36 = vld [vmem:[%s3186_s4 + $0x4e8] sm:$0xff]  ;;  %v564_v40 = vld [vmem:[%s3186_s4 + $0x580] sm:$0xff]  ;;  %v2194_v42 = vpack.c.bf16 %v565_v35, %v559_v31  ;;  %v571_v43 = vld [vmem:[%s3186_s4 + $0x5b8] sm:$0xff] }
  0x2d   : > { %v2126_v44 = vpack.c.bf16 %v551_v37, %v545_v36  ;;  %v544_v45 = vld [vmem:[%s3186_s4 + $0x4e0] sm:$0xff]  ;;  %v550_v46 = vld [vmem:[%s3186_s4 + $0x510] sm:$0xff]  ;;  %v577_v47 = vld [vmem:[%s3186_s4 + $0x5e8] sm:$0xff]  ;;  %v2196_v50 = vpack.c.bf16 %v564_v40, %v558_v39 }
  0x2e   : > { %2177 = vmatpush1.bf16.msra.mxu1 %v2176_v52  ;;  %2109 = vmatpush1.bf16.msra.mxu0 %v2108_v55  ;;  %v557_v48 = vld [vmem:[%s3186_s4 + $0x548] sm:$0xff]  ;;  %v563_v49 = vld [vmem:[%s3186_s4 + $0x578] sm:$0xff]  ;;  %v570_v51 = vld [vmem:[%s3186_s4 + $0x5b0] sm:$0xff]  ;;  %v2128_v52 = vpack.c.bf16 %v550_v46, %v544_v45  ;;  %v2198_v53 = vpack.c.bf16 %v577_v47, %v571_v43 }
  0x2f   : > { %2179 = vmatprep.subr.bf16.mxu1 %v2178_v56  ;;  %2111 = vmatprep.subr.bf16.mxu0 %v2110_v58  ;;  %v576_v54 = vld [vmem:[%s3186_s4 + $0x5e0] sm:$0xff]  ;;  %v2130_v55 = vpack.c.bf16 %v563_v49, %v557_v48  ;;  %v562_v57 = vld [vmem:[%s3186_s4 + $0x570] sm:$0xff]  ;;  %v569_v58 = vld [vmem:[%s3186_s4 + $0x5a8] sm:$0xff] }
  0x30   : > { %v556_v56 = vld [vmem:[%s3186_s4 + $0x540] sm:$0xff]  ;;  %v575_v59 = vld [vmem:[%s3186_s4 + $0x5d8] sm:$0xff]  ;;  %v2200_v60 = vpack.c.bf16 %v576_v54, %v570_v51  ;;  %v582_v4 = vld [vmem:[%s2673_s30 + $0x10] sm:$0xff] }
  0x31   : > { %v2132_v61 = vpack.c.bf16 %v562_v57, %v556_v56  ;;  %v2134_v62 = vpack.c.bf16 %v575_v59, %v569_v58  ;;  %v568_v63 = vld [vmem:[%s3186_s4 + $0x5a0] sm:$0xff] }
  0x32   : > { %2181 = vmatpush1.bf16.msra.mxu1 %v2180_v0  ;;  %2113 = vmatpush1.bf16.msra.mxu0 %v2112_v3  ;;  %v574_v0 = vld [vmem:[%s3186_s4 + $0x5d0] sm:$0xff]  ;;  %v580_v1 = vld [vmem:[%s2673_s30] sm:$0xff]  ;;  %v583_v3 = vld [vmem:[%s2673_s30 + $0x18] sm:$0xff] }
  0x33   : > { %2183 = vmatprep.subr.bf16.mxu1 %v2182_v5  ;;  %2115 = vmatprep.subr.bf16.mxu0 %v2114_v7  ;;  %v2136_v2 = vpack.c.bf16 %v574_v0, %v568_v63  ;;  %v2821_v5 = vld [vmem:[%s2706_s10] sm:$0xff]  ;;  %v2343_v7 = vmov 0.0  }
  0x36   : > { %2185 = vmatpush1.bf16.msra.mxu1 %v2184_v13  ;;  %2117 = vmatpush1.bf16.msra.mxu0 %v2116_v16  ;;  %v2345_v13 = vmov 1934713408  }
  0x37   : > { %2187 = vmatprep.subr.bf16.mxu1 %v2186_v18  ;;  %2119 = vmatprep.subr.bf16.mxu0 %v2118_v20  ;;  %v848_v14 = vunpack.c.l.s4 %v2345_v13 }
  0x39   : > { %v849_v16 = vunpack.c.0.s8 %v848_v14 }
  0x3a   : > { %2189 = vmatpush1.bf16.msra.mxu1 %v2188_v26  ;;  %2121 = vmatpush1.bf16.msra.mxu0 %v2120_v29 }
  0x3b   : > { %2191 = vmatprep.subr.bf16.mxu1 %v2190_v30  ;;  %2123 = vmatprep.subr.bf16.mxu0 %v2122_v32  ;;  %v2835_v22 = vsub.s32 %v849_v16, %v2827_v12 }
  0x3e   : > { %2193 = vmatpush1.bf16.msra.mxu1 %v2192_v38  ;;  %2125 = vmatpush1.bf16.msra.mxu0 %v2124_v41 }
  0x3f   : > { %2195 = vmatprep.subr.bf16.mxu1 %v2194_v42  ;;  %2127 = vmatprep.subr.bf16.mxu0 %v2126_v44 }
  0x42   : > { %2197 = vmatpush1.bf16.msra.mxu1 %v2196_v50  ;;  %2129 = vmatpush1.bf16.msra.mxu0 %v2128_v52 }
  0x43   : > { %2199 = vmatprep.subr.bf16.mxu1 %v2198_v53  ;;  %2131 = vmatprep.subr.bf16.mxu0 %v2130_v55 }
  0x46   : > { %2201 = vmatpush1.bf16.msra.mxu1 %v2200_v60  ;;  %2133 = vmatpush1.bf16.msra.mxu0 %v2132_v61 }
  0x47   : > { %2135 = vmatprep.subr.bf16.mxu0 %v2134_v62  ;;  %2266 = vmatprep.subr.bf16.mxu1 %v2341_v6 }
  0x49   : > { %724 = vmatmul.mubr.f32.vlgmr.msra.gmra.mrb[0].mxu1 %v580_v1 }
  0x4a   : > { %729 = vmatprep.mubr.f32.mxu1 %v583_v3  ;;  %2137 = vmatpush1.bf16.msra.mxu0 %v2136_v2 }
  0x4d   : > { %730 = vmatmul.mubr.f32.gmra.mrb[2].mxu1 %v582_v4  ;;  %653 = vmatmul.mubr.f32.vlgmr.msra.gmra.mrb[0].mxu0 %v2821_v5 }
  0x4e   : > { %2050 = vmatprep.mubr.msk.f32.mxu1 %vm2342_vm0, %v2343_v7 }
 0x11c   : > { %v725_v18 = vpop.f32.mrb[0].mxu1 }
 0x11d   : > { %v931_v19 = vcombine.high %v725_v18, %v2343_v7  ;;  %v938_v20 = vrot.slane %v725_v18, %v2830_v15  ;;  %v727_v21 = vpop.f32.mrb[1].mxu1 }
 0x11e   : > { %v946_v23 = vcombine.high %v727_v21, %v2343_v7  ;;  %v953_v24 = vrot.slane %v727_v21, %v2830_v15 }
 0x11f   : > { %v945_v25 = vrot.slane %v931_v19, %v2830_v15 }
 0x120   : > { %v960_v26 = vrot.slane %v946_v23, %v2830_v15  ;;  %v961_v27 = vcombine.low %v938_v20, %v953_v24  ;;  %v962_v28 = vcombine.high %v938_v20, %v953_v24  ;;  %v731_v29 = vpop.f32.mrb[2].mxu1  ;;  %v654_v30 = vpop.f32.mrb[0].mxu0 }
 0x121   : > { %v997_v31 = vcombine.high %v731_v29, %v2343_v7  ;;  %v1004_v32 = vrot.slane %v731_v29, %v2830_v15  ;;  %v733_v33 = vpop.f32.mrb[3].mxu1  ;;  %v813_v34 = vmul.f32 0.088388346, %v654_v30  ;;  %v656_v35 = vpop.f32.mrb[1].mxu0 }
 0x122   : > { %v969_v36 = vrot.slane %v961_v27, %v2835_v22  ;;  %v976_v37 = vrot.slane %v962_v28, %v2835_v22  ;;  %v977_v38 = vcombine.low %v945_v25, %v960_v26  ;;  %v978_v39 = vcombine.high %v945_v25, %v960_v26 }
 0x123   : > { %v1011_v40 = vrot.slane %v997_v31, %v2830_v15  ;;  %v1012_v41 = vcombine.high %v733_v33, %v2343_v7  ;;  %v1019_v42 = vrot.slane %v733_v33, %v2830_v15  ;;  %v815_v50 = vcombine.high %v813_v34, %v2343_v7 }
 0x124   : > { %v985_v43 = vrot.slane %v977_v38, %v2835_v22  ;;  %v992_v44 = vrot.slane %v978_v39, %v2835_v22  ;;  %v1063_v45 = vcombine.low %v969_v36, %v976_v37  ;;  %v2016_v46 = vcombine.high %v969_v36, %v976_v37 }
 0x125   : > { %v1026_v47 = vrot.slane %v1012_v41, %v2830_v15  ;;  %v1027_v48 = vcombine.low %v1004_v32, %v1019_v42  ;;  %v1028_v49 = vcombine.high %v1004_v32, %v1019_v42  ;;  %v822_v2 = vrot.slane %v813_v34, %v2830_v15 }
 0x126   : > { %v1070_v51 = vrot.slane %v1063_v45, %v2830_v15  ;;  %v1078_v52 = vrot.slane %v2016_v46, %v2830_v15  ;;  %v1079_v53 = vcombine.low %v985_v43, %v992_v44  ;;  %v2017_v54 = vcombine.high %v985_v43, %v992_v44 }
 0x127   : > { %v1035_v55 = vrot.slane %v1027_v48, %v2835_v22  ;;  %v1042_v56 = vrot.slane %v1028_v49, %v2835_v22  ;;  %v1043_v57 = vcombine.low %v1011_v40, %v1026_v47  ;;  %v1044_v58 = vcombine.high %v1011_v40, %v1026_v47 }
 0x128   : > { %v1086_v59 = vrot.slane %v1079_v53, %v2830_v15  ;;  %v1094_v60 = vrot.slane %v2017_v54, %v2830_v15  ;;  %v1095_v61 = vcombine.low %v1070_v51, %v1078_v52  ;;  %v829_v3 = vrot.slane %v815_v50, %v2830_v15 }
 0x129   : > { %v1051_v62 = vrot.slane %v1043_v57, %v2835_v22  ;;  %v1058_v63 = vrot.slane %v1044_v58, %v2835_v22  ;;  %v1113_v0 = vcombine.low %v1035_v55, %v1042_v56  ;;  %v2018_v1 = vcombine.high %v1035_v55, %v1042_v56  ;;  %v393_v56 = vld [vmem:[%s3186_s4 + $0x28] sm:$0xff]  ;;  %v399_v57 = vld [vmem:[%s3186_s4 + $0x58] sm:$0xff]  ;;  %v392_v58 = vld [vmem:[%s3186_s4 + $0x20] sm:$0xff] }
 0x12a   : > { %v814_v4 = vmul.f32 0.088388346, %v656_v35  ;;  %v1103_v8 = vcombine.low %v1086_v59, %v1094_v60  ;;  %v1102_v18 = vrot.slane %v1095_v61, %v2835_v22  ;;  %v2202_v59 = vpack.c.bf16 %v399_v57, %v393_v56  ;;  %v398_v60 = vld [vmem:[%s3186_s4 + $0x50] sm:$0xff]  ;;  %v500_v57 = vld [vmem:[%s3186_s4 + $0x380] sm:$0xff] }
 0x12b   : > { %v1120_v9 = vrot.slane %v1113_v0, %v2830_v15  ;;  %v1128_v10 = vrot.slane %v2018_v1, %v2830_v15  ;;  %v1129_v11 = vcombine.low %v1051_v62, %v1058_v63  ;;  %v2019_v13 = vcombine.high %v1051_v62, %v1058_v63  ;;  %v405_v62 = vld [vmem:[%s3186_s4 + $0x88] sm:$0xff]  ;;  %v411_v63 = vld [vmem:[%s3186_s4 + $0xb8] sm:$0xff]  ;;  %v404_v0 = vld [vmem:[%s3186_s4 + $0x80] sm:$0xff] }
 0x12c   : > { %v830_v14 = vcombine.high %v814_v4, %v2343_v7  ;;  %v837_v16 = vrot.slane %v814_v4, %v2830_v15  ;;  %v1110_v19 = vrot.slane %v1103_v8, %v2835_v22  ;;  %v2204_v61 = vpack.c.bf16 %v398_v60, %v392_v58  ;;  %2203 = vmatprep.subr.bf16.mxu0 %v2202_v59  ;;  %v423_v4 = vld [vmem:[%s3186_s4 + $0x118] sm:$0xff]  ;;  %v506_v58 = vld [vmem:[%s3186_s4 + $0x3b0] sm:$0xff]  ;;  %v513_v59 = vld [vmem:[%s3186_s4 + $0x3e8] sm:$0xff] }
 0x12d   : > { %v1136_v20 = vrot.slane %v1129_v11, %v2830_v15  ;;  %v1144_v21 = vrot.slane %v2019_v13, %v2830_v15  ;;  %v1145_v23 = vcombine.low %v1120_v9, %v1128_v10  ;;  %v2206_v1 = vpack.c.bf16 %v411_v63, %v405_v62  ;;  %v416_v10 = vld [vmem:[%s3186_s4 + $0xe0] sm:$0xff]  ;;  %v422_v11 = vld [vmem:[%s3186_s4 + $0x110] sm:$0xff]  ;;  %v429_v13 = vld [vmem:[%s3186_s4 + $0x148] sm:$0xff] }
 0x12e   : > { %v844_v24 = vrot.slane %v830_v14, %v2830_v15  ;;  %v845_v25 = vcombine.low %v822_v2, %v837_v16  ;;  %v846_v26 = vcombine.high %v822_v2, %v837_v16  ;;  %v1111_v27 = vcombine.low %v1102_v18, %v1110_v19  ;;  %2205 = vmatpush1.bf16.msra.mxu0 %v2204_v61  ;;  %v410_v2 = vld [vmem:[%s3186_s4 + $0xb0] sm:$0xff]  ;;  %v435_v14 = vld [vmem:[%s3186_s4 + $0x178] sm:$0xff]  ;;  %v512_v63 = vld [vmem:[%s3186_s4 + $0x3e0] sm:$0xff] }
 0x12f   : > { %v1153_v28 = vcombine.low %v1136_v20, %v1144_v21  ;;  %v1112_v29 = vcombine.high %v1102_v18, %v1110_v19  ;;  %v1152_v34 = vrot.slane %v1145_v23, %v2835_v22  ;;  %v2208_v8 = vpack.c.bf16 %v410_v2, %v404_v0  ;;  %2207 = vmatprep.subr.bf16.mxu0 %v2206_v1  ;;  %v428_v19 = vld [vmem:[%s3186_s4 + $0x140] sm:$0xff]  ;;  %v434_v20 = vld [vmem:[%s3186_s4 + $0x170] sm:$0xff]  ;;  %v441_v21 = vld [vmem:[%s3186_s4 + $0x1a8] sm:$0xff] }
 0x130   : > { %v853_v30 = vrot.slane %v845_v25, %v2835_v22  ;;  %v860_v31 = vrot.slane %v846_v26, %v2835_v22  ;;  %v861_v32 = vcombine.low %v829_v3, %v844_v24  ;;  %v862_v33 = vcombine.high %v829_v3, %v844_v24  ;;  %v417_v3 = vld [vmem:[%s3186_s4 + $0xe8] sm:$0xff]  ;;  %v447_v23 = vld [vmem:[%s3186_s4 + $0x1d8] sm:$0xff]  ;;  %v440_v26 = vld [vmem:[%s3186_s4 + $0x1a0] sm:$0xff] }
 0x131   : > { %v1160_v35 = vrot.slane %v1153_v28, %v2835_v22  ;;  %v2210_v9 = vpack.c.bf16 %v423_v4, %v417_v3  ;;  %v2212_v16 = vpack.c.bf16 %v422_v11, %v416_v10  ;;  %v2214_v18 = vpack.c.bf16 %v435_v14, %v429_v13  ;;  %v453_v28 = vld [vmem:[%s3186_s4 + $0x208] sm:$0xff]  ;;  %v519_v60 = vld [vmem:[%s3186_s4 + $0x418] sm:$0xff]  ;;  %v518_v0 = vld [vmem:[%s3186_s4 + $0x410] sm:$0xff] }
 0x132   : > { %v869_v36 = vrot.slane %v861_v32, %v2835_v22  ;;  %v876_v37 = vrot.slane %v862_v33, %v2835_v22  ;;  %v881_v38 = vcombine.low %v853_v30, %v860_v31  ;;  %v2014_v39 = vcombine.high %v853_v30, %v860_v31  ;;  %2209 = vmatpush1.bf16.msra.mxu0 %v2208_v8  ;;  %v452_v32 = vld [vmem:[%s3186_s4 + $0x200] sm:$0xff]  ;;  %v458_v33 = vld [vmem:[%s3186_s4 + $0x230] sm:$0xff]  ;;  %v525_v1 = vld [vmem:[%s3186_s4 + $0x448] sm:$0xff] }
 0x133   : > { %v1161_v40 = vcombine.low %v1152_v34, %v1160_v35  ;;  %v1162_v41 = vcombine.high %v1152_v34, %v1160_v35  ;;  %2211 = vmatprep.subr.bf16.mxu0 %v2210_v9  ;;  %v2216_v24 = vpack.c.bf16 %v434_v20, %v428_v19  ;;  %v2218_v25 = vpack.c.bf16 %v447_v23, %v441_v21  ;;  %v465_v34 = vld [vmem:[%s3186_s4 + $0x268] sm:$0xff]  ;;  %v471_v35 = vld [vmem:[%s3186_s4 + $0x298] sm:$0xff]  ;;  %v524_v8 = vld [vmem:[%s3186_s4 + $0x440] sm:$0xff] }
 0x134   : > { %v888_v42 = vrot.slane %v881_v38, %v2830_v15  ;;  %v896_v43 = vrot.slane %v2014_v39, %v2830_v15  ;;  %v897_v44 = vcombine.low %v869_v36, %v876_v37  ;;  %v2015_v45 = vcombine.high %v869_v36, %v876_v37  ;;  %v464_v38 = vld [vmem:[%s3186_s4 + $0x260] sm:$0xff]  ;;  %v470_v39 = vld [vmem:[%s3186_s4 + $0x290] sm:$0xff]  ;;  %v531_v2 = vld [vmem:[%s3186_s4 + $0x478] sm:$0xff] }
 0x135   : > { %v2267_v46 = vpack.c.bf16 %v1161_v40, %v1111_v27  ;;  %v2270_v47 = vpack.c.bf16 %v1162_v41, %v1112_v29  ;;  %v446_v27 = vld [vmem:[%s3186_s4 + $0x1d0] sm:$0xff]  ;;  %v459_v29 = vld [vmem:[%s3186_s4 + $0x238] sm:$0xff]  ;;  %v2224_v36 = vpack.c.bf16 %v458_v33, %v452_v32  ;;  %v2226_v37 = vpack.c.bf16 %v471_v35, %v465_v34  ;;  %v477_v40 = vld [vmem:[%s3186_s4 + $0x2c8] sm:$0xff] }
 0x136   : > { %v904_v48 = vrot.slane %v897_v44, %v2830_v15  ;;  %v912_v49 = vrot.slane %v2015_v45, %v2830_v15  ;;  %v913_v50 = vcombine.low %v888_v42, %v896_v43  ;;  %2213 = vmatpush1.bf16.msra.mxu0 %v2212_v16  ;;  %v2220_v30 = vpack.c.bf16 %v446_v27, %v440_v26  ;;  %v483_v41 = vld [vmem:[%s3186_s4 + $0x2f8] sm:$0xff]  ;;  %v585_v42 = vld [vmem:[%s2972_s28 + $0x8] sm:$0xff]  ;;  %v476_v45 = vld [vmem:[%s3186_s4 + $0x2c0] sm:$0xff] }
 0x137   : > { %2268 = vmatpush3.bf16.xpose.msra.mxu1 %v2267_v46  ;;  %2215 = vmatprep.subr.bf16.mxu0 %v2214_v18  ;;  %v2222_v31 = vpack.c.bf16 %v459_v29, %v453_v28  ;;  %v2228_v43 = vpack.c.bf16 %v470_v39, %v464_v38  ;;  %v2230_v44 = vpack.c.bf16 %v483_v41, %v477_v40  ;;  %v482_v46 = vld [vmem:[%s3186_s4 + $0x2f0] sm:$0xff]  ;;  %v537_v10 = vld [vmem:[%s3186_s4 + $0x4a8] sm:$0xff]  ;;  %v543_v11 = vld [vmem:[%s3186_s4 + $0x4d8] sm:$0xff] }
 0x138   : > { %v921_v51 = vcombine.low %v904_v48, %v912_v49  ;;  %v920_v52 = vrot.slane %v913_v50, %v2835_v22  ;;  %2269 = vmatprep.subr.bf16.mxu1 %v2341_v6  ;;  %800 = vmatprep.mubr.f32.mxu0 %v585_v42  ;;  %v495_v48 = vld [vmem:[%s3186_s4 + $0x358] sm:$0xff]  ;;  %v2232_v49 = vpack.c.bf16 %v482_v46, %v476_v45  ;;  %v530_v9 = vld [vmem:[%s3186_s4 + $0x470] sm:$0xff]  ;;  %v536_v16 = vld [vmem:[%s3186_s4 + $0x4a0] sm:$0xff] }
 0x139   : > { %v2240_v61 = vpack.c.bf16 %v506_v58, %v500_v57  ;;  %v2242_v62 = vpack.c.bf16 %v519_v60, %v513_v59  ;;  %v2244_v3 = vpack.c.bf16 %v518_v0, %v512_v63  ;;  %v2246_v4 = vpack.c.bf16 %v531_v2, %v525_v1  ;;  %v542_v18 = vld [vmem:[%s3186_s4 + $0x4d0] sm:$0xff]  ;;  %v549_v19 = vld [vmem:[%s3186_s4 + $0x508] sm:$0xff]  ;;  %v555_v20 = vld [vmem:[%s3186_s4 + $0x538] sm:$0xff] }
 0x13a   : > { %v928_v53 = vrot.slane %v921_v51, %v2835_v22  ;;  %2217 = vmatpush1.bf16.msra.mxu0 %v2216_v24  ;;  %v488_v51 = vld [vmem:[%s3186_s4 + $0x320] sm:$0xff]  ;;  %v2248_v13 = vpack.c.bf16 %v530_v9, %v524_v8  ;;  %v2250_v14 = vpack.c.bf16 %v543_v11, %v537_v10  ;;  %v2252_v21 = vpack.c.bf16 %v542_v18, %v536_v16  ;;  %v561_v26 = vld [vmem:[%s3186_s4 + $0x568] sm:$0xff]  ;;  %v567_v27 = vld [vmem:[%s3186_s4 + $0x598] sm:$0xff] }
 0x13b   : > { %2219 = vmatprep.subr.bf16.mxu0 %v2218_v25  ;;  %v2254_v23 = vpack.c.bf16 %v555_v20, %v549_v19  ;;  %v548_v24 = vld [vmem:[%s3186_s4 + $0x500] sm:$0xff]  ;;  %v554_v25 = vld [vmem:[%s3186_s4 + $0x530] sm:$0xff]  ;;  %v2258_v29 = vpack.c.bf16 %v567_v27, %v561_v26  ;;  %v573_v32 = vld [vmem:[%s3186_s4 + $0x5c8] sm:$0xff] }
 0x13c   : > { %v929_v54 = vcombine.low %v920_v52, %v928_v53  ;;  %v930_v55 = vcombine.high %v920_v52, %v928_v53  ;;  %v494_v52 = vld [vmem:[%s3186_s4 + $0x350] sm:$0xff]  ;;  %v501_v53 = vld [vmem:[%s3186_s4 + $0x388] sm:$0xff]  ;;  %v2256_v28 = vpack.c.bf16 %v554_v25, %v548_v24  ;;  %v579_v33 = vld [vmem:[%s3186_s4 + $0x5f8] sm:$0xff] }
 0x13d   : > { %v2262_v35 = vpack.c.bf16 %v579_v33, %v573_v32  ;;  %v584_v39 = vld [vmem:[%s2972_s28] sm:$0xff]  ;;  %v587_v40 = vld [vmem:[%s2972_s28 + $0x18] sm:$0xff]  ;;  %v586_v41 = vld [vmem:[%s2972_s28 + $0x10] sm:$0xff] }
 0x13e   : > { %2051 = vmatmul.mubr.f32.vlgmr.msra.gmra.mrb[4].mxu1 %v929_v54  ;;  %2221 = vmatpush1.bf16.msra.mxu0 %v2220_v30  ;;  %v507_v54 = vld [vmem:[%s3186_s4 + $0x3b8] sm:$0xff]  ;;  %v560_v30 = vld [vmem:[%s3186_s4 + $0x560] sm:$0xff] }
 0x13f   : > { %2271 = vmatpush3.bf16.xpose.msra.mxu1 %v2270_v47  ;;  %2057 = vmatprep.mubr.msk.f32.mxu1 %vm2342_vm0, %v2343_v7  ;;  %v489_v47 = vld [vmem:[%s3186_s4 + $0x328] sm:$0xff]  ;;  %v2238_v56 = vpack.c.bf16 %v507_v54, %v501_v53  ;;  %v385_v42 = vld [vmem:[%s373_s20] sm:$0xff] }
 0x140   : > { %2272 = vmatprep.subr.bf16.mxu1 %v2341_v6  ;;  %2223 = vmatprep.subr.bf16.mxu0 %v2222_v31  ;;  %v2234_v50 = vpack.c.bf16 %v495_v48, %v489_v47  ;;  %v566_v31 = vld [vmem:[%s3186_s4 + $0x590] sm:$0xff]  ;;  %vm386_vm1 = vcmp.eq.f32.partialorder %v385_v42, 0.0 }
 0x141   : > { %v2260_v34 = vpack.c.bf16 %v566_v31, %v560_v30 }
 0x142   : > { %2225 = vmatpush1.bf16.msra.mxu0 %v2224_v36  ;;  %v572_v36 = vld [vmem:[%s3186_s4 + $0x5c0] sm:$0xff] }
 0x143   : > { %2227 = vmatprep.subr.bf16.mxu0 %v2226_v37  ;;  %v578_v37 = vld [vmem:[%s3186_s4 + $0x5f0] sm:$0xff] }
 0x144   : > { %v2264_v38 = vpack.c.bf16 %v578_v37, %v572_v36 }
 0x146   : > { %2058 = vmatmul.mubr.f32.vlgmr.msra.gmra.mrb[6].mxu1 %v930_v55  ;;  %2229 = vmatpush1.bf16.msra.mxu0 %v2228_v43  ;;  %v2236_v55 = vpack.c.bf16 %v494_v52, %v488_v51  ;;  %v387_v43 = vsel %vm386_vm1, -1e+20, %v2343_v7 }
 0x147   : > { %2064 = vmatprep.mubr.msk.f32.mxu1 %vm2342_vm0, %v2343_v7  ;;  %2231 = vmatprep.subr.bf16.mxu0 %v2230_v44 }
 0x14a   : > { %2233 = vmatpush1.bf16.msra.mxu0 %v2232_v49 }
 0x14b   : > { %2235 = vmatprep.subr.bf16.mxu0 %v2234_v50 }
 0x14e   : > { %2237 = vmatpush1.bf16.msra.mxu0 %v2236_v55 }
 0x14f   : > { %2239 = vmatprep.subr.bf16.mxu0 %v2238_v56 }
 0x152   : > { %2241 = vmatpush1.bf16.msra.mxu0 %v2240_v61 }
 0x153   : > { %2243 = vmatprep.subr.bf16.mxu0 %v2242_v62 }
 0x156   : > { %2245 = vmatpush1.bf16.msra.mxu0 %v2244_v3 }
 0x157   : > { %2247 = vmatprep.subr.bf16.mxu0 %v2246_v4 }
 0x15a   : > { %2249 = vmatpush1.bf16.msra.mxu0 %v2248_v13 }
 0x15b   : > { %2251 = vmatprep.subr.bf16.mxu0 %v2250_v14 }
 0x15e   : > { %2253 = vmatpush1.bf16.msra.mxu0 %v2252_v21 }
 0x15f   : > { %2255 = vmatprep.subr.bf16.mxu0 %v2254_v23 }
 0x162   : > { %2257 = vmatpush1.bf16.msra.mxu0 %v2256_v28 }
 0x163   : > { %2259 = vmatprep.subr.bf16.mxu0 %v2258_v29 }
 0x166   : > { %2261 = vmatpush1.bf16.msra.mxu0 %v2260_v34 }
 0x167   : > { %2263 = vmatprep.subr.bf16.mxu0 %v2262_v35 }
 0x16a   : > { %2265 = vmatpush1.bf16.msra.mxu0 %v2264_v38 }
 0x16d   : > { %801 = vmatmul.mubr.f32.vlgmr.msra.gmra.mrb[2].mxu0 %v584_v39 }
 0x16e   : > { %806 = vmatprep.mubr.f32.mxu0 %v587_v40 }
 0x171   : > { %807 = vmatmul.mubr.f32.gmra.mrb[4].mxu0 %v586_v41 }
 0x211   : > { %v1461_v44 = vpop.f32.mrb[4].mxu1 }
 0x212   : > { %v1462_v45 = vadd.f32 %v1461_v44, %v387_v43  ;;  %v2052_v46 = vpop.f32.mrb[5].mxu1 }
 0x214   : > { %v1536_v47 = vsel %vm1535_vm2, %v1462_v45, -inf }
 0x215   : > { %1537 = vmax.xlane.f32.xlu0 %v1536_v47 }
 0x219   : > { %v1531_v48 = vpop.f32.mrb[6].mxu1 }
 0x21a   : > { %v1532_v49 = vadd.f32 %v1531_v48, %v387_v43  ;;  %v2059_v50 = vpop.f32.mrb[7].mxu1 }
 0x21c   : > { %v1539_v51 = vsel %vm1535_vm2, %v1532_v49, -inf }
 0x21d   : > { %1540 = vmax.xlane.f32.xlu0 %v1539_v51 }
 0x240   : > { %v802_v58 = vpop.f32.mrb[2].mxu0 }
 0x241   : > { %v1163_v60 = vcombine.high %v802_v58, %v2343_v7  ;;  %v1170_v61 = vrot.slane %v802_v58, %v2830_v15  ;;  %v804_v62 = vpop.f32.mrb[3].mxu0 }
 0x242   : > { %v1178_v0 = vcombine.high %v804_v62, %v2343_v7  ;;  %v1185_v1 = vrot.slane %v804_v62, %v2830_v15 }
 0x243   : > { %v1177_v2 = vrot.slane %v1163_v60, %v2830_v15 }
 0x244   : > { %v1192_v3 = vrot.slane %v1178_v0, %v2830_v15  ;;  %v1193_v4 = vcombine.low %v1170_v61, %v1185_v1  ;;  %v1194_v8 = vcombine.high %v1170_v61, %v1185_v1  ;;  %v808_v9 = vpop.f32.mrb[4].mxu0 }
 0x245   : > { %v1229_v10 = vcombine.high %v808_v9, %v2343_v7  ;;  %v1236_v11 = vrot.slane %v808_v9, %v2830_v15  ;;  %v810_v13 = vpop.f32.mrb[5].mxu0 }
 0x246   : > { %v1201_v14 = vrot.slane %v1193_v4, %v2835_v22  ;;  %v1208_v16 = vrot.slane %v1194_v8, %v2835_v22  ;;  %v1209_v18 = vcombine.low %v1177_v2, %v1192_v3  ;;  %v1210_v19 = vcombine.high %v1177_v2, %v1192_v3 }
 0x247   : > { %v1243_v20 = vrot.slane %v1229_v10, %v2830_v15  ;;  %v1244_v21 = vcombine.high %v810_v13, %v2343_v7  ;;  %v1251_v23 = vrot.slane %v810_v13, %v2830_v15 }
 0x248   : > { %v1217_v24 = vrot.slane %v1209_v18, %v2835_v22  ;;  %v1224_v25 = vrot.slane %v1210_v19, %v2835_v22  ;;  %v1295_v26 = vcombine.low %v1201_v14, %v1208_v16  ;;  %v2020_v27 = vcombine.high %v1201_v14, %v1208_v16 }
 0x249   : > { %v1258_v29 = vrot.slane %v1244_v21, %v2830_v15  ;;  %v1259_v30 = vcombine.low %v1236_v11, %v1251_v23  ;;  %v1260_v31 = vcombine.high %v1236_v11, %v1251_v23 }
 0x24a   : > { %v1302_v33 = vrot.slane %v1295_v26, %v2830_v15  ;;  %v1310_v34 = vrot.slane %v2020_v27, %v2830_v15  ;;  %v1311_v35 = vcombine.low %v1217_v24, %v1224_v25  ;;  %v2021_v36 = vcombine.high %v1217_v24, %v1224_v25 }
 0x24b   : > { %v1267_v37 = vrot.slane %v1259_v30, %v2835_v22  ;;  %v1274_v38 = vrot.slane %v1260_v31, %v2835_v22  ;;  %v1275_v39 = vcombine.low %v1243_v20, %v1258_v29  ;;  %v1276_v41 = vcombine.high %v1243_v20, %v1258_v29 }
 0x24c   : > { %v1327_v40 = vcombine.low %v1302_v33, %v1310_v34  ;;  %v1326_v46 = vrot.slane %v2021_v36, %v2830_v15 }
 0x24d   : > { %v1283_v42 = vrot.slane %v1275_v39, %v2835_v22  ;;  %v1345_v43 = vcombine.low %v1267_v37, %v1274_v38  ;;  %v2022_v44 = vcombine.high %v1267_v37, %v1274_v38  ;;  %v1290_v47 = vrot.slane %v1276_v41, %v2835_v22 }
 0x24f   : > { %v1352_v48 = vrot.slane %v1345_v43, %v2830_v15  ;;  %v1361_v50 = vcombine.low %v1283_v42, %v1290_v47  ;;  %v2023_v51 = vcombine.high %v1283_v42, %v1290_v47 }
 0x2a2   : > { %v1538_v52 = vpop.xlane.xlu0 %1537 }
 0x2a3   : > { %v1542_v53 = vsub.f32 %v1462_v45, %v1538_v52  ;;  %v1318_v45 = vrot.slane %v1311_v35, %v2830_v15 }
 0x2a5   : > { %v1544_v54 = vmul.f32 1.442695, %v1542_v53  ;;  %v1368_v53 = vrot.slane %v1361_v50, %v2830_v15 }
 0x2a7   : > { %2307 = vpow2.f32 %v1544_v54  ;;  %v1376_v54 = vrot.slane %v2023_v51, %v2830_v15 }
 0x2aa   : > { %v1541_v55 = vpop.xlane.xlu0 %1540 }
 0x2ab   : > { %v1543_v56 = vsub.f32 %v1532_v49, %v1541_v55  ;;  %v1360_v49 = vrot.slane %v2022_v44, %v2830_v15  ;;  %v1335_v55 = vcombine.low %v1318_v45, %v1326_v46 }
 0x2ad   : > { %v1546_v57 = vmul.f32 1.442695, %v1543_v56  ;;  %v1377_v52 = vcombine.low %v1352_v48, %v1360_v49  ;;  %v1385_v56 = vcombine.low %v1368_v53, %v1376_v54  ;;  %v1342_v58 = vrot.slane %v1335_v55, %v2835_v22 }
 0x2af   : > { %2309 = vpow2.f32 %v1546_v57  ;;  %v1334_v57 = vrot.slane %v1327_v40, %v2835_v22  ;;  %v1384_v60 = vrot.slane %v1377_v52, %v2835_v22  ;;  %v1392_v62 = vrot.slane %v1385_v56, %v2835_v22 }
 0x2b1   : > { %v3099_v59 = vpop.eup %2307  ;;  %v1343_v61 = vcombine.low %v1334_v57, %v1342_v58  ;;  %v1393_v0 = vcombine.low %v1384_v60, %v1392_v62  ;;  %v1394_v1 = vcombine.high %v1384_v60, %v1392_v62 }
 0x2b2   : > { %v1548_v63 = vsel %vm1535_vm2, %v3099_v59, 0.0 }
 0x2b3   : > { %1549 = vadd.xlane.f32.xlu1 %v1548_v63  ;;  %v1344_v63 = vcombine.high %v1334_v57, %v1342_v58  ;;  %v2273_v2 = vpack.c.bf16 %v1393_v0, %v1343_v61  ;;  %v1843_v57 = vsub.s32 0, %v2827_v12  ;;  %v1853_v58 = vld [vmem:[%s3188_s6] sm:$0x3] }
 0x2b5   : > { %v2276_v3 = vpack.c.bf16 %v1394_v1, %v1344_v63  ;;  %2274 = vmatpush3.bf16.msra.mxu1 %v2273_v2  ;;  %v1858_v63 = vrot.slane %v1853_v58, %v1843_v57 }
 0x2b6   : > { %2275 = vmatprep.subr.bf16.mxu1 %v2341_v6 }
 0x2b9   : > { %v2310_v28 = vpop.eup %2309 }
 0x2ba   : > { %v1551_v32 = vsel %vm1535_vm2, %v2310_v28, 0.0 }
 0x2bb   : > { %1552 = vadd.xlane.f32.xlu1 %v1551_v32 }
 0x340   : > { %v1550_v4 = vpop.xlane.xlu1 %1549 }
 0x341   : > { %2311 = vrcp.f32 %v1550_v4 }
 0x348   : > { %v1553_v8 = vpop.xlane.xlu1 %1552 }
 0x349   : > { %2313 = vrcp.f32 %v1553_v8 }
 0x34b   : > { %v2312_v9 = vpop.eup %2311 }
 0x34c   : > { %v1555_v10 = vmul.f32 %v2312_v9, %v3099_v59 }
 0x34e   : > { %2065 = vmatmul.mubr.msk.f32.vlgmr.msra.gmra.mrb[8].mxu1 %vm1535_vm2, %v1555_v10 }
 0x34f   : > { %2277 = vmatpush3.bf16.msra.mxu1 %v2276_v3  ;;  %2071 = vmatprep.mubr.msk.f32.mxu1 %vm2342_vm0, %v2343_v7 }
 0x353   : > { %v2314_v11 = vpop.eup %2313 }
 0x354   : > { %v1557_v13 = vmul.f32 %v2314_v11, %v2310_v28 }
 0x356   : > { %2072 = vmatmul.mubr.msk.f32.vlgmr.msra.gmra.mrb[10].mxu1 %vm1535_vm2, %v1557_v13 }
 0x421   : > { %v1627_v14 = vpop.f32.mrb[8].mxu1 }
 0x422   : > { %v2066_v16 = vpop.f32.mrb[9].mxu1  ;;  %v1704_v6 = vcombine.high %v1627_v14, %v2343_v7  ;;  %v1711_v19 = vrot.slane %v1627_v14, %v2830_v15 }
 0x424   : > { %v1718_v23 = vrot.slane %v1704_v6, %v2830_v15 }
 0x429   : > { %v1700_v18 = vpop.f32.mrb[10].mxu1 }
 0x42a   : > { %v1719_v20 = vcombine.high %v1700_v18, %v2343_v7  ;;  %v1726_v59 = vrot.slane %v1700_v18, %v2830_v15  ;;  %v2073_v21 = vpop.f32.mrb[11].mxu1 }
 0x42c   : > { %v1733_v24 = vrot.slane %v1719_v20, %v2830_v15  ;;  %v1734_v25 = vcombine.low %v1711_v19, %v1726_v59  ;;  %v1735_v26 = vcombine.high %v1711_v19, %v1726_v59 }
 0x42e   : > { %v1742_v27 = vrot.slane %v1734_v25, %v2835_v22  ;;  %v1749_v28 = vrot.slane %v1735_v26, %v2835_v22  ;;  %v1750_v29 = vcombine.low %v1718_v23, %v1733_v24  ;;  %v1751_v30 = vcombine.high %v1718_v23, %v1733_v24 }
 0x430   : > { %v1758_v31 = vrot.slane %v1750_v29, %v2835_v22  ;;  %v1765_v32 = vrot.slane %v1751_v30, %v2835_v22  ;;  %v1770_v7 = vcombine.low %v1742_v27, %v1749_v28  ;;  %v2026_v33 = vcombine.high %v1742_v27, %v1749_v28 }
 0x432   : > { %v1777_v34 = vrot.slane %v1770_v7, %v2830_v15  ;;  %v1785_v35 = vrot.slane %v2026_v33, %v2830_v15  ;;  %v1786_v36 = vcombine.low %v1758_v31, %v1765_v32  ;;  %v2027_v37 = vcombine.high %v1758_v31, %v1765_v32 }
 0x434   : > { %v1793_v38 = vrot.slane %v1786_v36, %v2830_v15  ;;  %v1801_v39 = vrot.slane %v2027_v37, %v2830_v15  ;;  %v1802_v40 = vcombine.low %v1777_v34, %v1785_v35 }
 0x436   : > { %v1810_v41 = vcombine.low %v1793_v38, %v1801_v39  ;;  %v1809_v42 = vrot.slane %v1802_v40, %v2835_v22 }
 0x438   : > { %v1817_v43 = vrot.slane %v1810_v41, %v2835_v22 }
 0x43a   : > { %v1818_v44 = vcombine.low %v1809_v42, %v1817_v43  ;;  %v1819_v45 = vcombine.high %v1809_v42, %v1817_v43 }
 0x43c   : > { %v1820_v46 = vadd.f32 %v1818_v44, %v2821_v5  ;;  %v1821_v47 = vadd.f32 %v1819_v45, %v2724_v17  ;;  %v1847_v5 = vsub.s32 1, %v2827_v12  ;;  %v1839_v17 = vld [vmem:[%s3187_s5] sm:$0x3] }
 0x43d   : > { %v1844_v60 = vrot.slane %v1839_v17, %v1843_v57 }
 0x43e   : > { %v1822_v48 = vadd.f32 %v1821_v47, %v1820_v46  ;;  %v1848_v61 = vrot.slane %v1839_v17, %v1847_v5  ;;  %v1862_v0 = vrot.slane %v1853_v58, %v1847_v5 }
 0x440   : > { %1823 = vadd.xlane.f32.xlu0 %v1822_v48 }
 0x4cd   : > { %v1824_v49 = vpop.xlane.xlu0 %1823 }
 0x4ce   : > { %v1826_v50 = vmul.f32 0.00390625, %v1824_v49 }
 0x4d0   : > { %v1827_v51 = vsub.f32 %v1820_v46, %v1826_v50  ;;  %v1828_v52 = vsub.f32 %v1821_v47, %v1826_v50 }
 0x4d2   : > { %v1829_v53 = vmul.f32 %v1827_v51, %v1827_v51  ;;  %v1830_v15 = vmul.f32 %v1828_v52, %v1828_v52 }
 0x4d4   : > { %v1831_v54 = vadd.f32 %v1830_v15, %v1829_v53 }
 0x4d6   : > { %1832 = vadd.xlane.f32.xlu1 %v1831_v54 }
 0x563   : > { %v1833_v55 = vpop.xlane.xlu1 %1832 }
 0x564   : > { %v1834_v56 = vmul.f32 0.00390625, %v1833_v55 }
 0x566   : > { %v1835_v22 = vadd.f32 1e-05, %v1834_v56 }
 0x568   : > { %2315 = vrsqrt.f32 %v1835_v22 }
 0x572   : > { %v2316_v62 = vpop.eup %2315 }
 0x573   : > { %v1837_v1 = vmul.f32 %v2316_v62, %v1827_v51  ;;  %v1838_v2 = vmul.f32 %v2316_v62, %v1828_v52 }
 0x575   : > { %v1851_v3 = vmul.f32 %v1844_v60, %v1837_v1  ;;  %v1852_v4 = vmul.f32 %v1848_v61, %v1838_v2 }
 0x577   : > { %v1865_v12 = vadd.f32 %v1858_v63, %v1851_v3  ;;  %v1866_v8 = vadd.f32 %v1862_v0, %v1852_v4 }
 0x579   : > { %1867 = vst [vmem:[%s382_s29] sm:$0xff] %v1865_v12  ;;  %1868 = vst [vmem:[%s382_s29 + $0x8] sm:$0xff] %v1866_v8 }
 0x57a PF: > { %s17_s26 = sadd.s32 1, %s2339_s26   ;;  %s3190_s24 = smov %s2335_s25 }
 0x57b   : > { %p14_p5 = scmp.ge.s32.totalorder %s17_s26, 4   ;;  %s3191_s25 = smov %s3193_s27 }
 0x57d   :  { %16 = sbr.rel (!%p14_p5) target bundleno = 2 (0x2), region = 87 }

// kernel: decoder_block.5
= control target key start
LH: loop header
LB: loop body
LE: loop exit
PB: predicated region body
PF: predicated region fallthrough
CT: control target
= control target key end

     0   :  { %s1915_s0 = inlined_call_operand.vmem [shape: f32[16,256], index: 0, kind: input, shape index: {}]   ;;  %s1916_s1 = inlined_call_operand.vmem [shape: f32[256,512], index: 1, kind: input, shape index: {}]   ;;  %s1917_s2 = inlined_call_operand.vmem [shape: f32[1,512], index: 2, kind: input, shape index: {}]   ;;  %s1918_s3 = inlined_call_operand.vmem [shape: f32[512,256], index: 3, kind: input, shape index: {}]   ;;  %s1919_s4 = inlined_call_operand.vmem [shape: f32[1,256], index: 4, kind: input, shape index: {}]   ;;  %s1920_s5 = inlined_call_operand.vmem [shape: f32[1,256], index: 5, kind: input, shape index: {}]   ;;  %s1921_s6 = inlined_call_operand.vmem [shape: f32[1,256], index: 6, kind: input, shape index: {}]   ;;  %s1922_s7 = inlined_call_operand.hbm [shape: f32[16,256], index: 7, kind: output, shape index: {}]  }
   0x1   :  { %v32_v0 = vld [vmem:[%s1916_s1 + $0x8] sm:$0xff]  ;;  %v31_v2 = vld [vmem:[%s1916_s1] sm:$0xff] }
   0x2   :  { %v36_v1 = vld [vmem:[%s1916_s1 + $0x28] sm:$0xff]  ;;  %v35_v4 = vld [vmem:[%s1916_s1 + $0x20] sm:$0xff] }
   0x3   :  { %v726_v3 = vpack.c.bf16 %v36_v1, %v32_v0  ;;  %v40_v5 = vld [vmem:[%s1916_s1 + $0x48] sm:$0xff]  ;;  %v728_v7 = vpack.c.bf16 %v35_v4, %v31_v2  ;;  %v39_v9 = vld [vmem:[%s1916_s1 + $0x40] sm:$0xff] }
   0x4   :  { %v44_v6 = vld [vmem:[%s1916_s1 + $0x68] sm:$0xff]  ;;  %v43_v10 = vld [vmem:[%s1916_s1 + $0x60] sm:$0xff] }
   0x5   :  { %v730_v8 = vpack.c.bf16 %v44_v6, %v40_v5  ;;  %v48_v11 = vld [vmem:[%s1916_s1 + $0x88] sm:$0xff]  ;;  %727 = vmatprep.subr.bf16.mxu1 %v726_v3  ;;  %v732_v13 = vpack.c.bf16 %v43_v10, %v39_v9  ;;  %v47_v15 = vld [vmem:[%s1916_s1 + $0x80] sm:$0xff] }
   0x6   :  { %v52_v12 = vld [vmem:[%s1916_s1 + $0xa8] sm:$0xff]  ;;  %729 = vmatpush1.bf16.msra.mxu1 %v728_v7  ;;  %v51_v16 = vld [vmem:[%s1916_s1 + $0xa0] sm:$0xff] }
   0x7   :  { %731 = vmatprep.subr.bf16.mxu1 %v730_v8  ;;  %v734_v14 = vpack.c.bf16 %v52_v12, %v48_v11  ;;  %v56_v17 = vld [vmem:[%s1916_s1 + $0xc8] sm:$0xff]  ;;  %v736_v19 = vpack.c.bf16 %v51_v16, %v47_v15  ;;  %v55_v21 = vld [vmem:[%s1916_s1 + $0xc0] sm:$0xff]  ;;  %v346_v16 = vld [vmem:[%s1918_s3 + $0x18] sm:$0xff] }
   0x8   :  { %v60_v18 = vld [vmem:[%s1916_s1 + $0xe8] sm:$0xff]  ;;  %v59_v22 = vld [vmem:[%s1916_s1 + $0xe0] sm:$0xff] }
   0x9   :  { %v738_v20 = vpack.c.bf16 %v60_v18, %v56_v17  ;;  %v64_v23 = vld [vmem:[%s1916_s1 + $0x108] sm:$0xff]  ;;  %v740_v25 = vpack.c.bf16 %v59_v22, %v55_v21  ;;  %v63_v27 = vld [vmem:[%s1916_s1 + $0x100] sm:$0xff]  ;;  %v350_v22 = vld [vmem:[%s1918_s3 + $0x38] sm:$0xff] }
   0xa   :  { %733 = vmatpush1.bf16.msra.mxu1 %v732_v13  ;;  %v68_v24 = vld [vmem:[%s1916_s1 + $0x128] sm:$0xff]  ;;  %v67_v28 = vld [vmem:[%s1916_s1 + $0x120] sm:$0xff] }
   0xb   :  { %735 = vmatprep.subr.bf16.mxu1 %v734_v14  ;;  %v742_v26 = vpack.c.bf16 %v68_v24, %v64_v23  ;;  %v72_v29 = vld [vmem:[%s1916_s1 + $0x148] sm:$0xff]  ;;  %v744_v31 = vpack.c.bf16 %v67_v28, %v63_v27  ;;  %v71_v33 = vld [vmem:[%s1916_s1 + $0x140] sm:$0xff]  ;;  %v354_v28 = vld [vmem:[%s1918_s3 + $0x58] sm:$0xff] }
   0xc   :  { %v76_v30 = vld [vmem:[%s1916_s1 + $0x168] sm:$0xff]  ;;  %v75_v34 = vld [vmem:[%s1916_s1 + $0x160] sm:$0xff] }
   0xd   :  { %v746_v32 = vpack.c.bf16 %v76_v30, %v72_v29  ;;  %v80_v35 = vld [vmem:[%s1916_s1 + $0x188] sm:$0xff]  ;;  %v748_v37 = vpack.c.bf16 %v75_v34, %v71_v33  ;;  %v79_v39 = vld [vmem:[%s1916_s1 + $0x180] sm:$0xff] }
   0xe   :  { %737 = vmatpush1.bf16.msra.mxu1 %v736_v19  ;;  %v84_v36 = vld [vmem:[%s1916_s1 + $0x1a8] sm:$0xff]  ;;  %v83_v40 = vld [vmem:[%s1916_s1 + $0x1a0] sm:$0xff] }
   0xf   :  { %739 = vmatprep.subr.bf16.mxu1 %v738_v20  ;;  %v750_v38 = vpack.c.bf16 %v84_v36, %v80_v35  ;;  %v1152_v41 = vld [vmem:[%s1915_s0 + $0x8] sm:$0xff]  ;;  %v752_v44 = vpack.c.bf16 %v83_v40, %v79_v39  ;;  %v87_v46 = vld [vmem:[%s1916_s1 + $0x1c0] sm:$0xff]  ;;  %v345_v20 = vld [vmem:[%s1918_s3 + $0x10] sm:$0xff] }
  0x10   :  { %v88_v42 = vld [vmem:[%s1916_s1 + $0x1c8] sm:$0xff]  ;;  %245 = vmatprep.mubr.f32.mxu1 %v1152_v41  ;;  %v91_v47 = vld [vmem:[%s1916_s1 + $0x1e0] sm:$0xff]  ;;  %v358_v40 = vld [vmem:[%s1918_s3 + $0x78] sm:$0xff] }
  0x11   :  { %v92_v43 = vld [vmem:[%s1916_s1 + $0x1e8] sm:$0xff]  ;;  %v756_v50 = vpack.c.bf16 %v91_v47, %v87_v46  ;;  %v95_v52 = vld [vmem:[%s1916_s1 + $0x200] sm:$0xff] }
  0x12   :  { %741 = vmatpush1.bf16.msra.mxu1 %v740_v25  ;;  %v754_v45 = vpack.c.bf16 %v92_v43, %v88_v42  ;;  %v96_v48 = vld [vmem:[%s1916_s1 + $0x208] sm:$0xff]  ;;  %v99_v53 = vld [vmem:[%s1916_s1 + $0x220] sm:$0xff] }
  0x13   :  { %743 = vmatprep.subr.bf16.mxu1 %v742_v26  ;;  %v100_v49 = vld [vmem:[%s1916_s1 + $0x228] sm:$0xff]  ;;  %v760_v56 = vpack.c.bf16 %v99_v53, %v95_v52  ;;  %v103_v58 = vld [vmem:[%s1916_s1 + $0x240] sm:$0xff]  ;;  %v349_v26 = vld [vmem:[%s1918_s3 + $0x30] sm:$0xff] }
  0x14   :  { %v758_v51 = vpack.c.bf16 %v100_v49, %v96_v48  ;;  %v104_v54 = vld [vmem:[%s1916_s1 + $0x248] sm:$0xff]  ;;  %v107_v59 = vld [vmem:[%s1916_s1 + $0x260] sm:$0xff]  ;;  %v362_v53 = vld [vmem:[%s1918_s3 + $0x98] sm:$0xff] }
  0x15   :  { %v108_v55 = vld [vmem:[%s1916_s1 + $0x268] sm:$0xff]  ;;  %v764_v62 = vpack.c.bf16 %v107_v59, %v103_v58  ;;  %v111_v0 = vld [vmem:[%s1916_s1 + $0x280] sm:$0xff]  ;;  %v34_v59 = vld [vmem:[%s1916_s1 + $0x18] sm:$0xff] }
  0x16   :  { %745 = vmatpush1.bf16.msra.mxu1 %v744_v31  ;;  %v762_v57 = vpack.c.bf16 %v108_v55, %v104_v54  ;;  %v112_v60 = vld [vmem:[%s1916_s1 + $0x288] sm:$0xff]  ;;  %v115_v1 = vld [vmem:[%s1916_s1 + $0x2a0] sm:$0xff] }
  0x17   :  { %747 = vmatprep.subr.bf16.mxu1 %v746_v32  ;;  %v116_v61 = vld [vmem:[%s1916_s1 + $0x2a8] sm:$0xff]  ;;  %v768_v4 = vpack.c.bf16 %v115_v1, %v111_v0  ;;  %v119_v6 = vld [vmem:[%s1916_s1 + $0x2c0] sm:$0xff]  ;;  %v366_v1 = vld [vmem:[%s1918_s3 + $0xb8] sm:$0xff] }
  0x18   :  { %v766_v63 = vpack.c.bf16 %v116_v61, %v112_v60  ;;  %v120_v2 = vld [vmem:[%s1916_s1 + $0x2c8] sm:$0xff]  ;;  %v123_v7 = vld [vmem:[%s1916_s1 + $0x2e0] sm:$0xff] }
  0x19   :  { %v124_v3 = vld [vmem:[%s1916_s1 + $0x2e8] sm:$0xff]  ;;  %v127_v10 = vld [vmem:[%s1916_s1 + $0x300] sm:$0xff]  ;;  %v772_v12 = vpack.c.bf16 %v123_v7, %v119_v6  ;;  %v37_v6 = vld [vmem:[%s1916_s1 + $0x30] sm:$0xff] }
  0x1a   :  { %749 = vmatpush1.bf16.msra.mxu1 %v748_v37  ;;  %v770_v5 = vpack.c.bf16 %v124_v3, %v120_v2  ;;  %v128_v8 = vld [vmem:[%s1916_s1 + $0x308] sm:$0xff]  ;;  %v131_v11 = vld [vmem:[%s1916_s1 + $0x320] sm:$0xff]  ;;  %v353_v37 = vld [vmem:[%s1918_s3 + $0x50] sm:$0xff] }
  0x1b   :  { %751 = vmatprep.subr.bf16.mxu1 %v750_v38  ;;  %v132_v9 = vld [vmem:[%s1916_s1 + $0x328] sm:$0xff]  ;;  %v343_v17 = vld [vmem:[%s1918_s3] sm:$0xff]  ;;  %v776_v29 = vpack.c.bf16 %v131_v11, %v127_v10  ;;  %v42_v7 = vld [vmem:[%s1916_s1 + $0x58] sm:$0xff] }
  0x1c   :  { %v136_v13 = vld [vmem:[%s1916_s1 + $0x348] sm:$0xff]  ;;  %v774_v18 = vpack.c.bf16 %v132_v9, %v128_v8  ;;  %v856_v23 = vpack.c.bf16 %v345_v20, %v343_v17  ;;  %v347_v25 = vld [vmem:[%s1918_s3 + $0x20] sm:$0xff]  ;;  %v46_v9 = vld [vmem:[%s1916_s1 + $0x78] sm:$0xff] }
  0x1d   :  { %v140_v14 = vld [vmem:[%s1916_s1 + $0x368] sm:$0xff]  ;;  %v135_v30 = vld [vmem:[%s1916_s1 + $0x340] sm:$0xff]  ;;  %v860_v32 = vpack.c.bf16 %v349_v26, %v347_v25  ;;  %v365_v11 = vld [vmem:[%s1918_s3 + $0xb0] sm:$0xff] }
  0x1e   :  { %753 = vmatpush1.bf16.msra.mxu1 %v752_v44  ;;  %v344_v15 = vld [vmem:[%s1918_s3 + $0x8] sm:$0xff]  ;;  %v139_v31 = vld [vmem:[%s1916_s1 + $0x360] sm:$0xff]  ;;  %v778_v33 = vpack.c.bf16 %v140_v14, %v136_v13  ;;  %v370_v13 = vld [vmem:[%s1918_s3 + $0xd8] sm:$0xff] }
  0x1f   :  { %755 = vmatprep.subr.bf16.mxu1 %v754_v45  ;;  %v854_v19 = vpack.c.bf16 %v346_v16, %v344_v15  ;;  %v348_v21 = vld [vmem:[%s1918_s3 + $0x28] sm:$0xff]  ;;  %v351_v36 = vld [vmem:[%s1918_s3 + $0x40] sm:$0xff]  ;;  %v780_v42 = vpack.c.bf16 %v139_v31, %v135_v30 }
  0x20   :  { %v858_v24 = vpack.c.bf16 %v350_v22, %v348_v21  ;;  %v352_v27 = vld [vmem:[%s1918_s3 + $0x48] sm:$0xff]  ;;  %v143_v43 = vld [vmem:[%s1916_s1 + $0x380] sm:$0xff]  ;;  %v864_v45 = vpack.c.bf16 %v353_v37, %v351_v36 }
  0x21   :  { %855 = vmatprep.subr.bf16.mxu0 %v854_v19  ;;  %v144_v34 = vld [vmem:[%s1916_s1 + $0x388] sm:$0xff]  ;;  %v862_v35 = vpack.c.bf16 %v354_v28, %v352_v27  ;;  %v147_v44 = vld [vmem:[%s1916_s1 + $0x3a0] sm:$0xff] }
  0x22   :  { %757 = vmatpush1.bf16.msra.mxu1 %v756_v50  ;;  %857 = vmatpush1.bf16.msra.mxu0 %v856_v23  ;;  %v148_v38 = vld [vmem:[%s1916_s1 + $0x3a8] sm:$0xff]  ;;  %v355_v49 = vld [vmem:[%s1918_s3 + $0x60] sm:$0xff]  ;;  %v357_v50 = vld [vmem:[%s1918_s3 + $0x70] sm:$0xff]  ;;  %v784_v54 = vpack.c.bf16 %v147_v44, %v143_v43 }
  0x23   :  { %759 = vmatprep.subr.bf16.mxu1 %v758_v51  ;;  %859 = vmatprep.subr.bf16.mxu0 %v858_v24  ;;  %v356_v39 = vld [vmem:[%s1918_s3 + $0x68] sm:$0xff]  ;;  %v782_v46 = vpack.c.bf16 %v148_v38, %v144_v34  ;;  %v151_v55 = vld [vmem:[%s1916_s1 + $0x3c0] sm:$0xff] }
  0x24   :  { %v152_v47 = vld [vmem:[%s1916_s1 + $0x3c8] sm:$0xff]  ;;  %v866_v48 = vpack.c.bf16 %v358_v40, %v356_v39  ;;  %v359_v61 = vld [vmem:[%s1918_s3 + $0x80] sm:$0xff] }
  0x25   :  { %v156_v51 = vld [vmem:[%s1916_s1 + $0x3e8] sm:$0xff]  ;;  %v363_v10 = vld [vmem:[%s1918_s3 + $0xa0] sm:$0xff] }
  0x26   :  { %761 = vmatpush1.bf16.msra.mxu1 %v760_v56  ;;  %861 = vmatpush1.bf16.msra.mxu0 %v860_v32  ;;  %v360_v52 = vld [vmem:[%s1918_s3 + $0x88] sm:$0xff]  ;;  %v155_v56 = vld [vmem:[%s1916_s1 + $0x3e0] sm:$0xff]  ;;  %v786_v58 = vpack.c.bf16 %v156_v51, %v152_v47 }
  0x27   :  { %763 = vmatprep.subr.bf16.mxu1 %v762_v57  ;;  %863 = vmatprep.subr.bf16.mxu0 %v862_v35  ;;  %v868_v57 = vpack.c.bf16 %v357_v50, %v355_v49  ;;  %v870_v60 = vpack.c.bf16 %v362_v53, %v360_v52  ;;  %v364_v0 = vld [vmem:[%s1918_s3 + $0xa8] sm:$0xff]  ;;  %v788_v2 = vpack.c.bf16 %v155_v56, %v151_v55 }
  0x28   :  { %v874_v8 = vpack.c.bf16 %v366_v1, %v364_v0 }
  0x2a   :  { %765 = vmatpush1.bf16.msra.mxu1 %v764_v62  ;;  %865 = vmatpush1.bf16.msra.mxu0 %v864_v45  ;;  %v361_v62 = vld [vmem:[%s1918_s3 + $0x90] sm:$0xff] }
  0x2b   :  { %767 = vmatprep.subr.bf16.mxu1 %v766_v63  ;;  %867 = vmatprep.subr.bf16.mxu0 %v866_v48  ;;  %v38_v63 = vld [vmem:[%s1916_s1 + $0x38] sm:$0xff]  ;;  %v872_v3 = vpack.c.bf16 %v361_v62, %v359_v61 }
  0x2e   :  { %769 = vmatpush1.bf16.msra.mxu1 %v768_v4  ;;  %869 = vmatpush1.bf16.msra.mxu0 %v868_v57  ;;  %v790_v4 = vpack.c.bf16 %v38_v63, %v34_v59 }
  0x2f   :  { %771 = vmatprep.subr.bf16.mxu1 %v770_v5  ;;  %v33_v5 = vld [vmem:[%s1916_s1 + $0x10] sm:$0xff]  ;;  %871 = vmatprep.subr.bf16.mxu0 %v870_v60 }
  0x32   :  { %773 = vmatpush1.bf16.msra.mxu1 %v772_v12  ;;  %v368_v12 = vld [vmem:[%s1918_s3 + $0xc8] sm:$0xff] }
  0x33   :  { %775 = vmatprep.subr.bf16.mxu1 %v774_v18 }
  0x36   :  { %777 = vmatpush1.bf16.msra.mxu1 %v776_v29 }
  0x37   :  { %779 = vmatprep.subr.bf16.mxu1 %v778_v33 }
  0x3a   :  { %781 = vmatpush1.bf16.msra.mxu1 %v780_v42 }
  0x3b   :  { %783 = vmatprep.subr.bf16.mxu1 %v782_v46 }
  0x3e   :  { %785 = vmatpush1.bf16.msra.mxu1 %v784_v54 }
  0x3f   :  { %787 = vmatprep.subr.bf16.mxu1 %v786_v58 }
  0x40   :  { %12 = vsyncpa [#allocation3], 0  ;;  %v1362_v14 = vld [vmem:[%s1915_s0] sm:$0xff]  ;;  %v792_v15 = vpack.c.bf16 %v37_v6, %v33_v5  ;;  %v41_v16 = vld [vmem:[%s1916_s1 + $0x50] sm:$0xff]  ;;  %873 = vmatpush1.bf16.msra.mxu0 %v872_v3  ;;  %v794_v17 = vpack.c.bf16 %v46_v9, %v42_v7  ;;  %v876_v21 = vpack.c.bf16 %v365_v11, %v363_v10  ;;  %v878_v23 = vpack.c.bf16 %v370_v13, %v368_v12 }
  0x41   :  { %v45_v18 = vld [vmem:[%s1916_s1 + $0x70] sm:$0xff]  ;;  %v50_v19 = vld [vmem:[%s1916_s1 + $0x98] sm:$0xff]  ;;  %875 = vmatprep.subr.bf16.mxu0 %v874_v8  ;;  %v367_v24 = vld [vmem:[%s1918_s3 + $0xc0] sm:$0xff] }
  0x42   :  { %789 = vmatpush1.bf16.msra.mxu1 %v788_v2  ;;  %v1376_v20 = vld [vmem:[%s1915_s0 + $0x18] sm:$0xff]  ;;  %v369_v25 = vld [vmem:[%s1918_s3 + $0xd0] sm:$0xff]  ;;  %v372_v26 = vld [vmem:[%s1918_s3 + $0xe8] sm:$0xff]  ;;  %v796_v28 = vpack.c.bf16 %v45_v18, %v41_v16 }
  0x43   :  { %791 = vmatprep.subr.bf16.mxu1 %v790_v4  ;;  %v54_v22 = vld [vmem:[%s1916_s1 + $0xb8] sm:$0xff]  ;;  %v1398_v29 = vld [vmem:[%s1915_s0 + $0x10] sm:$0xff]  ;;  %v880_v34 = vpack.c.bf16 %v369_v25, %v367_v24  ;;  %v371_v37 = vld [vmem:[%s1918_s3 + $0xe0] sm:$0xff] }
  0x44   :  { %v374_v27 = vld [vmem:[%s1918_s3 + $0xf8] sm:$0xff]  ;;  %v798_v30 = vpack.c.bf16 %v54_v22, %v50_v19  ;;  %v49_v31 = vld [vmem:[%s1916_s1 + $0x90] sm:$0xff]  ;;  %877 = vmatpush1.bf16.msra.mxu0 %v876_v21  ;;  %v376_v39 = vld [vmem:[%s1918_s3 + $0x108] sm:$0xff] }
  0x45   :  { %246 = vmatmul.mubr.f32.vlgmr.msra.gmra.mrb[0].mxu1 %v1362_v14  ;;  %v53_v32 = vld [vmem:[%s1916_s1 + $0xb0] sm:$0xff]  ;;  %v58_v33 = vld [vmem:[%s1916_s1 + $0xd8] sm:$0xff]  ;;  %879 = vmatprep.subr.bf16.mxu0 %v878_v23  ;;  %v882_v36 = vpack.c.bf16 %v374_v27, %v372_v26  ;;  %v375_v49 = vld [vmem:[%s1918_s3 + $0x100] sm:$0xff] }
  0x46   :  { %793 = vmatpush1.bf16.msra.mxu1 %v792_v15  ;;  %251 = vmatprep.mubr.f32.mxu1 %v1376_v20  ;;  %v62_v35 = vld [vmem:[%s1916_s1 + $0xf8] sm:$0xff]  ;;  %v373_v38 = vld [vmem:[%s1918_s3 + $0xf0] sm:$0xff]  ;;  %v800_v42 = vpack.c.bf16 %v53_v32, %v49_v31  ;;  %v380_v51 = vld [vmem:[%s1918_s3 + $0x128] sm:$0xff] }
  0x47   :  { %795 = vmatprep.subr.bf16.mxu1 %v794_v17  ;;  %v378_v40 = vld [vmem:[%s1918_s3 + $0x118] sm:$0xff]  ;;  %v802_v43 = vpack.c.bf16 %v62_v35, %v58_v33  ;;  %v57_v44 = vld [vmem:[%s1916_s1 + $0xd0] sm:$0xff]  ;;  %v884_v47 = vpack.c.bf16 %v373_v38, %v371_v37  ;;  %v379_v61 = vld [vmem:[%s1918_s3 + $0x120] sm:$0xff] }
  0x48   :  { %v61_v45 = vld [vmem:[%s1916_s1 + $0xf0] sm:$0xff]  ;;  %v66_v46 = vld [vmem:[%s1916_s1 + $0x118] sm:$0xff]  ;;  %881 = vmatpush1.bf16.msra.mxu0 %v880_v34  ;;  %v886_v48 = vpack.c.bf16 %v378_v40, %v376_v39  ;;  %v384_v63 = vld [vmem:[%s1918_s3 + $0x148] sm:$0xff] }
  0x49   :  { %252 = vmatmul.mubr.f32.gmra.mrb[2].mxu1 %v1398_v29  ;;  %883 = vmatprep.subr.bf16.mxu0 %v882_v36  ;;  %v377_v50 = vld [vmem:[%s1918_s3 + $0x110] sm:$0xff]  ;;  %v382_v52 = vld [vmem:[%s1918_s3 + $0x138] sm:$0xff]  ;;  %v804_v53 = vpack.c.bf16 %v61_v45, %v57_v44  ;;  %v383_v9 = vld [vmem:[%s1918_s3 + $0x140] sm:$0xff] }
  0x4a   :  { %797 = vmatpush1.bf16.msra.mxu1 %v796_v28  ;;  %322 = vmatprep.mubr.f32.mxu1 %v1152_v41  ;;  %v70_v41 = vld [vmem:[%s1916_s1 + $0x138] sm:$0xff]  ;;  %v65_v55 = vld [vmem:[%s1916_s1 + $0x110] sm:$0xff]  ;;  %v888_v58 = vpack.c.bf16 %v377_v50, %v375_v49  ;;  %v890_v60 = vpack.c.bf16 %v382_v52, %v380_v51  ;;  %v388_v11 = vld [vmem:[%s1918_s3 + $0x168] sm:$0xff] }
  0x4b   :  { %799 = vmatprep.subr.bf16.mxu1 %v798_v30  ;;  %v806_v54 = vpack.c.bf16 %v70_v41, %v66_v46  ;;  %v69_v56 = vld [vmem:[%s1916_s1 + $0x130] sm:$0xff]  ;;  %v74_v57 = vld [vmem:[%s1916_s1 + $0x158] sm:$0xff]  ;;  %v387_v23 = vld [vmem:[%s1918_s3 + $0x160] sm:$0xff] }
  0x4c   :  { %885 = vmatpush1.bf16.msra.mxu0 %v884_v47  ;;  %v78_v59 = vld [vmem:[%s1916_s1 + $0x178] sm:$0xff]  ;;  %v381_v62 = vld [vmem:[%s1918_s3 + $0x130] sm:$0xff]  ;;  %v808_v1 = vpack.c.bf16 %v69_v56, %v65_v55  ;;  %v392_v25 = vld [vmem:[%s1918_s3 + $0x188] sm:$0xff] }
  0x4d   :  { %887 = vmatprep.subr.bf16.mxu0 %v886_v48  ;;  %v386_v0 = vld [vmem:[%s1918_s3 + $0x158] sm:$0xff]  ;;  %v810_v2 = vpack.c.bf16 %v78_v59, %v74_v57  ;;  %v73_v3 = vld [vmem:[%s1916_s1 + $0x150] sm:$0xff]  ;;  %v892_v6 = vpack.c.bf16 %v381_v62, %v379_v61  ;;  %v391_v36 = vld [vmem:[%s1918_s3 + $0x180] sm:$0xff] }
  0x4e   :  { %801 = vmatpush1.bf16.msra.mxu1 %v800_v42  ;;  %v77_v4 = vld [vmem:[%s1916_s1 + $0x170] sm:$0xff]  ;;  %v82_v5 = vld [vmem:[%s1916_s1 + $0x198] sm:$0xff]  ;;  %v894_v8 = vpack.c.bf16 %v386_v0, %v384_v63  ;;  %v396_v38 = vld [vmem:[%s1918_s3 + $0x1a8] sm:$0xff] }
  0x4f   :  { %803 = vmatprep.subr.bf16.mxu1 %v802_v43  ;;  %v86_v7 = vld [vmem:[%s1916_s1 + $0x1b8] sm:$0xff]  ;;  %v385_v10 = vld [vmem:[%s1918_s3 + $0x150] sm:$0xff]  ;;  %v812_v13 = vpack.c.bf16 %v77_v4, %v73_v3  ;;  %v395_v48 = vld [vmem:[%s1918_s3 + $0x1a0] sm:$0xff] }
  0x50   :  { %889 = vmatpush1.bf16.msra.mxu0 %v888_v58  ;;  %v390_v12 = vld [vmem:[%s1918_s3 + $0x178] sm:$0xff]  ;;  %v814_v15 = vpack.c.bf16 %v86_v7, %v82_v5  ;;  %v81_v16 = vld [vmem:[%s1916_s1 + $0x190] sm:$0xff]  ;;  %v896_v19 = vpack.c.bf16 %v385_v10, %v383_v9  ;;  %v400_v50 = vld [vmem:[%s1918_s3 + $0x1c8] sm:$0xff] }
  0x51   :  { %891 = vmatprep.subr.bf16.mxu0 %v890_v60  ;;  %v85_v17 = vld [vmem:[%s1916_s1 + $0x1b0] sm:$0xff]  ;;  %v90_v18 = vld [vmem:[%s1916_s1 + $0x1d8] sm:$0xff]  ;;  %v898_v22 = vpack.c.bf16 %v390_v12, %v388_v11 }
  0x52   :  { %805 = vmatpush1.bf16.msra.mxu1 %v804_v53  ;;  %v94_v21 = vld [vmem:[%s1916_s1 + $0x1f8] sm:$0xff]  ;;  %v389_v24 = vld [vmem:[%s1918_s3 + $0x170] sm:$0xff]  ;;  %v816_v27 = vpack.c.bf16 %v85_v17, %v81_v16 }
  0x53   :  { %807 = vmatprep.subr.bf16.mxu1 %v806_v54  ;;  %v394_v26 = vld [vmem:[%s1918_s3 + $0x198] sm:$0xff]  ;;  %v818_v28 = vpack.c.bf16 %v94_v21, %v90_v18  ;;  %v89_v30 = vld [vmem:[%s1916_s1 + $0x1d0] sm:$0xff]  ;;  %v900_v33 = vpack.c.bf16 %v389_v24, %v387_v23 }
  0x54   :  { %893 = vmatpush1.bf16.msra.mxu0 %v892_v6  ;;  %v93_v31 = vld [vmem:[%s1916_s1 + $0x1f0] sm:$0xff]  ;;  %v98_v32 = vld [vmem:[%s1916_s1 + $0x218] sm:$0xff]  ;;  %v902_v35 = vpack.c.bf16 %v394_v26, %v392_v25 }
  0x55   :  { %895 = vmatprep.subr.bf16.mxu0 %v894_v8  ;;  %v102_v34 = vld [vmem:[%s1916_s1 + $0x238] sm:$0xff]  ;;  %v393_v37 = vld [vmem:[%s1918_s3 + $0x190] sm:$0xff]  ;;  %v820_v40 = vpack.c.bf16 %v93_v31, %v89_v30 }
  0x56   :  { %809 = vmatpush1.bf16.msra.mxu1 %v808_v1  ;;  %v398_v39 = vld [vmem:[%s1918_s3 + $0x1b8] sm:$0xff]  ;;  %v822_v42 = vpack.c.bf16 %v102_v34, %v98_v32  ;;  %v97_v43 = vld [vmem:[%s1916_s1 + $0x210] sm:$0xff]  ;;  %v904_v46 = vpack.c.bf16 %v393_v37, %v391_v36  ;;  %v399_v34 = vld [vmem:[%s1918_s3 + $0x1c0] sm:$0xff] }
  0x57   :  { %811 = vmatprep.subr.bf16.mxu1 %v810_v2  ;;  %v101_v44 = vld [vmem:[%s1916_s1 + $0x230] sm:$0xff]  ;;  %v106_v45 = vld [vmem:[%s1916_s1 + $0x258] sm:$0xff]  ;;  %v906_v41 = vpack.c.bf16 %v398_v39, %v396_v38  ;;  %v404_v37 = vld [vmem:[%s1918_s3 + $0x1e8] sm:$0xff] }
  0x58   :  { %897 = vmatpush1.bf16.msra.mxu0 %v896_v19  ;;  %v110_v47 = vld [vmem:[%s1916_s1 + $0x278] sm:$0xff]  ;;  %v397_v49 = vld [vmem:[%s1918_s3 + $0x1b0] sm:$0xff]  ;;  %v824_v52 = vpack.c.bf16 %v101_v44, %v97_v43  ;;  %v408_v44 = vld [vmem:[%s1918_s3 + $0x208] sm:$0xff] }
  0x59   :  { %899 = vmatprep.subr.bf16.mxu0 %v898_v22  ;;  %v402_v51 = vld [vmem:[%s1918_s3 + $0x1d8] sm:$0xff]  ;;  %v826_v53 = vpack.c.bf16 %v110_v47, %v106_v45  ;;  %v105_v54 = vld [vmem:[%s1916_s1 + $0x250] sm:$0xff]  ;;  %v908_v56 = vpack.c.bf16 %v397_v49, %v395_v48  ;;  %v161_v47 = vlaneseq  ;;  %v1683_v49 = vld [vmem:[%s1917_s2] sm:$0xf] }
  0x5a   :  { %813 = vmatpush1.bf16.msra.mxu1 %v812_v13  ;;  %v109_v55 = vld [vmem:[%s1916_s1 + $0x270] sm:$0xff]  ;;  %v114_v57 = vld [vmem:[%s1916_s1 + $0x298] sm:$0xff]  ;;  %v910_v59 = vpack.c.bf16 %v402_v51, %v400_v50 }
  0x5b   :  { %815 = vmatprep.subr.bf16.mxu1 %v814_v15  ;;  %v118_v58 = vld [vmem:[%s1916_s1 + $0x2b8] sm:$0xff]  ;;  %v828_v60 = vpack.c.bf16 %v109_v55, %v105_v54  ;;  %v113_v62 = vld [vmem:[%s1916_s1 + $0x290] sm:$0xff] }
  0x5c   :  { %901 = vmatpush1.bf16.msra.mxu0 %v900_v33  ;;  %v830_v61 = vpack.c.bf16 %v118_v58, %v114_v57  ;;  %v117_v63 = vld [vmem:[%s1916_s1 + $0x2b0] sm:$0xff]  ;;  %v122_v0 = vld [vmem:[%s1916_s1 + $0x2d8] sm:$0xff] }
  0x5d   :  { %903 = vmatprep.subr.bf16.mxu0 %v902_v35  ;;  %v126_v1 = vld [vmem:[%s1916_s1 + $0x2f8] sm:$0xff]  ;;  %v832_v2 = vpack.c.bf16 %v117_v63, %v113_v62  ;;  %v121_v4 = vld [vmem:[%s1916_s1 + $0x2d0] sm:$0xff] }
  0x5e   :  { %817 = vmatpush1.bf16.msra.mxu1 %v816_v27  ;;  %v834_v3 = vpack.c.bf16 %v126_v1, %v122_v0  ;;  %v125_v5 = vld [vmem:[%s1916_s1 + $0x2f0] sm:$0xff]  ;;  %v130_v6 = vld [vmem:[%s1916_s1 + $0x318] sm:$0xff] }
  0x5f   :  { %819 = vmatprep.subr.bf16.mxu1 %v818_v28  ;;  %v134_v7 = vld [vmem:[%s1916_s1 + $0x338] sm:$0xff]  ;;  %v836_v8 = vpack.c.bf16 %v125_v5, %v121_v4  ;;  %v129_v10 = vld [vmem:[%s1916_s1 + $0x310] sm:$0xff] }
  0x60   :  { %905 = vmatpush1.bf16.msra.mxu0 %v904_v46  ;;  %v838_v9 = vpack.c.bf16 %v134_v7, %v130_v6  ;;  %v133_v11 = vld [vmem:[%s1916_s1 + $0x330] sm:$0xff]  ;;  %v138_v12 = vld [vmem:[%s1916_s1 + $0x358] sm:$0xff]  ;;  %v416_v6 = vld [vmem:[%s1918_s3 + $0x248] sm:$0xff] }
  0x61   :  { %907 = vmatprep.subr.bf16.mxu0 %v906_v41  ;;  %v142_v13 = vld [vmem:[%s1916_s1 + $0x378] sm:$0xff]  ;;  %v840_v15 = vpack.c.bf16 %v133_v11, %v129_v10  ;;  %v137_v17 = vld [vmem:[%s1916_s1 + $0x350] sm:$0xff]  ;;  %v1675_v41 = vshrl.u32 %v161_v47, 7  ;;  %v435_v47 = vld [vmem:[%s1918_s3 + $0x2e0] sm:$0xff] }
  0x62   :  { %821 = vmatpush1.bf16.msra.mxu1 %v820_v40  ;;  %v842_v16 = vpack.c.bf16 %v142_v13, %v138_v12  ;;  %v141_v18 = vld [vmem:[%s1916_s1 + $0x370] sm:$0xff]  ;;  %v146_v19 = vld [vmem:[%s1916_s1 + $0x398] sm:$0xff]  ;;  %v403_v40 = vld [vmem:[%s1918_s3 + $0x1e0] sm:$0xff] }
  0x63   :  { %823 = vmatprep.subr.bf16.mxu1 %v822_v42  ;;  %v150_v21 = vld [vmem:[%s1916_s1 + $0x3b8] sm:$0xff]  ;;  %v844_v22 = vpack.c.bf16 %v141_v18, %v137_v17  ;;  %v145_v24 = vld [vmem:[%s1916_s1 + $0x390] sm:$0xff]  ;;  %v1678_v48 = vsub.s32 0, %v1675_v41  ;;  %v1686_v50 = vsub.s32 1, %v1675_v41  ;;  %v415_v13 = vld [vmem:[%s1918_s3 + $0x240] sm:$0xff] }
  0x64   :  { %909 = vmatpush1.bf16.msra.mxu0 %v908_v56  ;;  %v846_v23 = vpack.c.bf16 %v150_v21, %v146_v19  ;;  %v149_v25 = vld [vmem:[%s1916_s1 + $0x3b0] sm:$0xff]  ;;  %v154_v26 = vld [vmem:[%s1916_s1 + $0x3d8] sm:$0xff]  ;;  %v407_v56 = vld [vmem:[%s1918_s3 + $0x200] sm:$0xff] }
  0x65   :  { %911 = vmatprep.subr.bf16.mxu0 %v910_v59  ;;  %v158_v27 = vld [vmem:[%s1916_s1 + $0x3f8] sm:$0xff]  ;;  %v848_v28 = vpack.c.bf16 %v149_v25, %v145_v24  ;;  %v153_v31 = vld [vmem:[%s1916_s1 + $0x3d0] sm:$0xff]  ;;  %v164_v51 = vrot.slane %v1683_v49, %v1678_v48  ;;  %v412_v59 = vld [vmem:[%s1918_s3 + $0x228] sm:$0xff] }
  0x66   :  { %825 = vmatpush1.bf16.msra.mxu1 %v824_v52  ;;  %v850_v30 = vpack.c.bf16 %v158_v27, %v154_v26  ;;  %v157_v32 = vld [vmem:[%s1916_s1 + $0x3f0] sm:$0xff]  ;;  %v406_v38 = vld [vmem:[%s1918_s3 + $0x1f8] sm:$0xff]  ;;  %v168_v52 = vrot.slane %v1683_v49, %v1686_v50  ;;  %v419_v21 = vld [vmem:[%s1918_s3 + $0x260] sm:$0xff] }
  0x67   :  { %827 = vmatprep.subr.bf16.mxu1 %v826_v53  ;;  %v852_v33 = vpack.c.bf16 %v157_v32, %v153_v31  ;;  %v401_v35 = vld [vmem:[%s1918_s3 + $0x1d0] sm:$0xff]  ;;  %v914_v39 = vpack.c.bf16 %v406_v38, %v404_v37  ;;  %v410_v45 = vld [vmem:[%s1918_s3 + $0x218] sm:$0xff]  ;;  %v423_v27 = vld [vmem:[%s1918_s3 + $0x280] sm:$0xff] }
  0x68   :  { %v912_v36 = vpack.c.bf16 %v401_v35, %v399_v34  ;;  %v405_v42 = vld [vmem:[%s1918_s3 + $0x1f0] sm:$0xff]  ;;  %v918_v46 = vpack.c.bf16 %v410_v45, %v408_v44  ;;  %v418_v7 = vld [vmem:[%s1918_s3 + $0x258] sm:$0xff]  ;;  %v427_v34 = vld [vmem:[%s1918_s3 + $0x2a0] sm:$0xff] }
  0x69   :  { %v916_v43 = vpack.c.bf16 %v405_v42, %v403_v40  ;;  %v409_v57 = vld [vmem:[%s1918_s3 + $0x210] sm:$0xff]  ;;  %v926_v12 = vpack.c.bf16 %v418_v7, %v416_v6  ;;  %v422_v17 = vld [vmem:[%s1918_s3 + $0x278] sm:$0xff]  ;;  %v431_v40 = vld [vmem:[%s1918_s3 + $0x2c0] sm:$0xff] }
  0x6a   :  { %829 = vmatpush1.bf16.msra.mxu1 %v828_v60  ;;  %913 = vmatpush1.bf16.msra.mxu0 %v912_v36  ;;  %v414_v60 = vld [vmem:[%s1918_s3 + $0x238] sm:$0xff]  ;;  %v920_v63 = vpack.c.bf16 %v409_v57, %v407_v56  ;;  %v429_v35 = vld [vmem:[%s1918_s3 + $0x2b0] sm:$0xff]  ;;  %v432_v36 = vld [vmem:[%s1918_s3 + $0x2c8] sm:$0xff] }
  0x6b   :  { %831 = vmatprep.subr.bf16.mxu1 %v830_v61  ;;  %915 = vmatprep.subr.bf16.mxu0 %v914_v39  ;;  %v922_v1 = vpack.c.bf16 %v414_v60, %v412_v59  ;;  %v426_v24 = vld [vmem:[%s1918_s3 + $0x298] sm:$0xff]  ;;  %v940_v38 = vpack.c.bf16 %v429_v35, %v427_v34  ;;  %v433_v42 = vld [vmem:[%s1918_s3 + $0x2d0] sm:$0xff]  ;;  %v439_v56 = vld [vmem:[%s1918_s3 + $0x300] sm:$0xff]  ;;  %v175_v34 = vsub.s32 3, %v1675_v41 }
  0x6c   :  { %v430_v31 = vld [vmem:[%s1918_s3 + $0x2b8] sm:$0xff]  ;;  %v944_v45 = vpack.c.bf16 %v433_v42, %v431_v40  ;;  %v441_v57 = vld [vmem:[%s1918_s3 + $0x310] sm:$0xff]  ;;  %v452_v6 = vld [vmem:[%s1918_s3 + $0x368] sm:$0xff] }
  0x6d   :  { %v434_v37 = vld [vmem:[%s1918_s3 + $0x2d8] sm:$0xff]  ;;  %v952_v60 = vpack.c.bf16 %v441_v57, %v439_v56  ;;  %v468_v35 = vld [vmem:[%s1918_s3 + $0x3e8] sm:$0xff]  ;;  %v467_v40 = vld [vmem:[%s1918_s3 + $0x3e0] sm:$0xff]  ;;  %v176_v42 = vrot.slane %v1683_v49, %v175_v34 }
  0x6e   :  { %833 = vmatpush1.bf16.msra.mxu1 %v832_v2  ;;  %917 = vmatpush1.bf16.msra.mxu0 %v916_v43  ;;  %v411_v2 = vld [vmem:[%s1918_s3 + $0x220] sm:$0xff]  ;;  %v942_v39 = vpack.c.bf16 %v434_v37, %v432_v36  ;;  %v436_v43 = vld [vmem:[%s1918_s3 + $0x2e8] sm:$0xff]  ;;  %v438_v44 = vld [vmem:[%s1918_s3 + $0x2f8] sm:$0xff] }
  0x6f   :  { %835 = vmatprep.subr.bf16.mxu1 %v834_v3  ;;  %919 = vmatprep.subr.bf16.mxu0 %v918_v46  ;;  %v413_v3 = vld [vmem:[%s1918_s3 + $0x230] sm:$0xff]  ;;  %v946_v46 = vpack.c.bf16 %v438_v44, %v436_v43  ;;  %v446_v59 = vld [vmem:[%s1918_s3 + $0x338] sm:$0xff] }
  0x70   :  { %v924_v10 = vpack.c.bf16 %v413_v3, %v411_v2  ;;  %v454_v7 = vld [vmem:[%s1918_s3 + $0x378] sm:$0xff] }
  0x71   :  { %v470_v36 = vld [vmem:[%s1918_s3 + $0x3f8] sm:$0xff] }
  0x72   :  { %837 = vmatpush1.bf16.msra.mxu1 %v836_v8 }
  0x73   :  { %839 = vmatprep.subr.bf16.mxu1 %v838_v9 }
  0x76   :  { %841 = vmatpush1.bf16.msra.mxu1 %v840_v15  ;;  %v417_v15 = vld [vmem:[%s1918_s3 + $0x250] sm:$0xff] }
  0x77   :  { %843 = vmatprep.subr.bf16.mxu1 %v842_v16  ;;  %v420_v16 = vld [vmem:[%s1918_s3 + $0x268] sm:$0xff]  ;;  %v928_v18 = vpack.c.bf16 %v417_v15, %v415_v13  ;;  %v458_v13 = vld [vmem:[%s1918_s3 + $0x398] sm:$0xff] }
  0x78   :  { %v930_v19 = vpack.c.bf16 %v422_v17, %v420_v16  ;;  %v455_v17 = vld [vmem:[%s1918_s3 + $0x380] sm:$0xff] }
  0x7a   :  { %845 = vmatpush1.bf16.msra.mxu1 %v844_v22  ;;  %v421_v22 = vld [vmem:[%s1918_s3 + $0x270] sm:$0xff] }
  0x7b   :  { %847 = vmatprep.subr.bf16.mxu1 %v846_v23  ;;  %v424_v23 = vld [vmem:[%s1918_s3 + $0x288] sm:$0xff]  ;;  %v932_v25 = vpack.c.bf16 %v421_v22, %v419_v21  ;;  %v462_v21 = vld [vmem:[%s1918_s3 + $0x3b8] sm:$0xff] }
  0x7c   :  { %v934_v26 = vpack.c.bf16 %v426_v24, %v424_v23  ;;  %v459_v24 = vld [vmem:[%s1918_s3 + $0x3a0] sm:$0xff] }
  0x7e   :  { %849 = vmatpush1.bf16.msra.mxu1 %v848_v28  ;;  %v425_v28 = vld [vmem:[%s1918_s3 + $0x290] sm:$0xff] }
  0x7f   :  { %851 = vmatprep.subr.bf16.mxu1 %v850_v30  ;;  %v428_v30 = vld [vmem:[%s1918_s3 + $0x2a8] sm:$0xff]  ;;  %v936_v32 = vpack.c.bf16 %v425_v28, %v423_v27  ;;  %v466_v27 = vld [vmem:[%s1918_s3 + $0x3d8] sm:$0xff] }
  0x82   :  { %853 = vmatpush1.bf16.msra.mxu1 %v852_v33  ;;  %v938_v33 = vpack.c.bf16 %v430_v31, %v428_v30  ;;  %v171_v31 = vsub.s32 2, %v1675_v41  ;;  %v469_v41 = vld [vmem:[%s1918_s3 + $0x3f0] sm:$0xff] }
  0x83   :  { %v980_v44 = vpack.c.bf16 %v469_v41, %v467_v40 }
  0x85   :  { %323 = vmatmul.mubr.f32.vlgmr.msra.gmra.mrb[4].mxu1 %v1362_v14 }
  0x86   :  { %328 = vmatprep.mubr.f32.mxu1 %v1376_v20 }
  0x89   :  { %329 = vmatmul.mubr.f32.gmra.mrb[6].mxu1 %v1398_v29 }
 0x118   :  { %v247_v53 = vpop.f32.mrb[0].mxu1 }
 0x119   :  { %v248_v54 = vadd.f32 %v247_v53, %v164_v51  ;;  %v249_v55 = vpop.f32.mrb[1].mxu1  ;;  %v442_v53 = vld [vmem:[%s1918_s3 + $0x318] sm:$0xff] }
 0x11a   :  { %v250_v58 = vadd.f32 %v249_v55, %v168_v52 }
 0x11b   :  { %v335_v61 = vmax.f32 %v248_v54, 0.0 }
 0x11c   :  { %v336_v62 = vmax.f32 %v250_v58, 0.0  ;;  %v253_v0 = vpop.f32.mrb[2].mxu1  ;;  %v444_v58 = vld [vmem:[%s1918_s3 + $0x328] sm:$0xff] }
 0x11d   :  { %v254_v4 = vadd.f32 %v253_v0, %v164_v51  ;;  %v255_v5 = vpop.f32.mrb[3].mxu1  ;;  %v437_v51 = vld [vmem:[%s1918_s3 + $0x2f0] sm:$0xff]  ;;  %v448_v0 = vld [vmem:[%s1918_s3 + $0x348] sm:$0xff] }
 0x11e   :  { %547 = vmatprep.mubr.f32.mxu0 %v336_v62  ;;  %v256_v8 = vadd.f32 %v255_v5, %v168_v52  ;;  %v440_v52 = vld [vmem:[%s1918_s3 + $0x308] sm:$0xff]  ;;  %v948_v54 = vpack.c.bf16 %v437_v51, %v435_v47  ;;  %v443_v62 = vld [vmem:[%s1918_s3 + $0x320] sm:$0xff]  ;;  %v449_v5 = vld [vmem:[%s1918_s3 + $0x350] sm:$0xff] }
 0x11f   :  { %548 = vmatmul.mubr.f32.vlgmr.msra.gmra.mrb[0].mxu0 %v335_v61  ;;  %v339_v9 = vmax.f32 %v254_v4, 0.0  ;;  %v950_v55 = vpack.c.bf16 %v442_v53, %v440_v52  ;;  %v954_v61 = vpack.c.bf16 %v446_v59, %v444_v58  ;;  %v447_v4 = vld [vmem:[%s1918_s3 + $0x340] sm:$0xff] }
 0x120   :  { %921 = vmatpush1.bf16.msra.mxu0 %v920_v63  ;;  %v340_v11 = vmax.f32 %v256_v8, 0.0  ;;  %v445_v63 = vld [vmem:[%s1918_s3 + $0x330] sm:$0xff]  ;;  %v960_v8 = vpack.c.bf16 %v449_v5, %v447_v4 }
 0x121   :  { %923 = vmatprep.subr.bf16.mxu0 %v922_v1  ;;  %v450_v1 = vld [vmem:[%s1918_s3 + $0x358] sm:$0xff]  ;;  %v956_v2 = vpack.c.bf16 %v445_v63, %v443_v62 }
 0x122   :  { %553 = vmatprep.mubr.f32.mxu0 %v340_v11  ;;  %v958_v3 = vpack.c.bf16 %v450_v1, %v448_v0  ;;  %v453_v11 = vld [vmem:[%s1918_s3 + $0x370] sm:$0xff] }
 0x123   :  { %554 = vmatmul.mubr.f32.gmra.mrb[2].mxu0 %v339_v9  ;;  %v962_v9 = vpack.c.bf16 %v454_v7, %v452_v6 }
 0x124   :  { %925 = vmatpush1.bf16.msra.mxu0 %v924_v10  ;;  %v451_v10 = vld [vmem:[%s1918_s3 + $0x360] sm:$0xff] }
 0x125   :  { %927 = vmatprep.subr.bf16.mxu0 %v926_v12  ;;  %v456_v12 = vld [vmem:[%s1918_s3 + $0x388] sm:$0xff]  ;;  %v964_v15 = vpack.c.bf16 %v453_v11, %v451_v10 }
 0x126   :  { %v966_v16 = vpack.c.bf16 %v458_v13, %v456_v12 }
 0x128   :  { %929 = vmatpush1.bf16.msra.mxu0 %v928_v18  ;;  %v457_v18 = vld [vmem:[%s1918_s3 + $0x390] sm:$0xff] }
 0x129   :  { %931 = vmatprep.subr.bf16.mxu0 %v930_v19  ;;  %v460_v19 = vld [vmem:[%s1918_s3 + $0x3a8] sm:$0xff]  ;;  %v968_v22 = vpack.c.bf16 %v457_v18, %v455_v17 }
 0x12a   :  { %v970_v23 = vpack.c.bf16 %v462_v21, %v460_v19 }
 0x12c   :  { %933 = vmatpush1.bf16.msra.mxu0 %v932_v25  ;;  %v461_v25 = vld [vmem:[%s1918_s3 + $0x3b0] sm:$0xff] }
 0x12d   :  { %935 = vmatprep.subr.bf16.mxu0 %v934_v26  ;;  %v464_v26 = vld [vmem:[%s1918_s3 + $0x3c8] sm:$0xff]  ;;  %v972_v28 = vpack.c.bf16 %v461_v25, %v459_v24 }
 0x12e   :  { %v974_v30 = vpack.c.bf16 %v466_v27, %v464_v26 }
 0x130   :  { %937 = vmatpush1.bf16.msra.mxu0 %v936_v32  ;;  %v463_v32 = vld [vmem:[%s1918_s3 + $0x3c0] sm:$0xff] }
 0x131   :  { %939 = vmatprep.subr.bf16.mxu0 %v938_v33  ;;  %v465_v33 = vld [vmem:[%s1918_s3 + $0x3d0] sm:$0xff] }
 0x132   :  { %v976_v37 = vpack.c.bf16 %v465_v33, %v463_v32  ;;  %v674_v32 = vld [vmem:[%s1920_s5] sm:$0x3]  ;;  %s1022_s5 = smov [#allocation2]  }
 0x133   :  { %v690_v33 = vld [vmem:[%s1921_s6] sm:$0x3]  ;;  %v679_v34 = vrot.slane %v674_v32, %v1678_v48  ;;  %s715_s6 = sshll.u32 %s1022_s5, 4  ;;  %s716_s6 = int_to_ptr.vmem [resolvable:$true] %s715_s6 }
 0x134   :  { %941 = vmatpush1.bf16.msra.mxu0 %v940_v38  ;;  %v172_v38 = vrot.slane %v1683_v49, %v171_v31  ;;  %v471_v49 = vld [vmem:[%s1919_s4] sm:$0x3]  ;;  %v699_v40 = vrot.slane %v690_v33, %v1686_v50  ;;  %s998_s2 = scalar_lea.vmem %s716_s6, 512  ;;  %p1003_p1 = scmp.lt.s32.totalorder %s716_s6, %s716_s6 }
 0x135   :  { %943 = vmatprep.subr.bf16.mxu0 %v942_v39  ;;  %v978_v39 = vpack.c.bf16 %v470_v36, %v468_v35  ;;  %v476_v59 = vrot.slane %v471_v49, %v1678_v48  ;;  %v683_v35 = vrot.slane %v674_v32, %v1686_v50  ;;  %p999_p0 = scmp.ne.s32.totalorder %s716_s6, %s998_s2  ;;  %p1004_p2 = scmp.lt.s32.totalorder %s998_s2, %s998_s2 }
 0x137   :  { %p1005_p3 = por %p1004_p2, %p1003_p1 }
 0x138   :  { %945 = vmatpush1.bf16.msra.mxu0 %v944_v45 }
 0x139   :  { %947 = vmatprep.subr.bf16.mxu0 %v946_v46  ;;  %p1006_p4 = pnand %p1005_p3, %p999_p0 }
 0x13c   :  { %949 = vmatpush1.bf16.msra.mxu0 %v948_v54 }
 0x13d   :  { %951 = vmatprep.subr.bf16.mxu0 %v950_v55 }
 0x140   :  { %953 = vmatpush1.bf16.msra.mxu0 %v952_v60  ;;  %v480_v60 = vrot.slane %v471_v49, %v1686_v50 }
 0x141   :  { %955 = vmatprep.subr.bf16.mxu0 %v954_v61 }
 0x144   :  { %957 = vmatpush1.bf16.msra.mxu0 %v956_v2 }
 0x145   :  { %959 = vmatprep.subr.bf16.mxu0 %v958_v3  ;;  %v997_v3 = vld [vmem:[%s1915_s0 + $0x8] sm:$0xff] }
 0x148   :  { %961 = vmatpush1.bf16.msra.mxu0 %v960_v8 }
 0x149   :  { %963 = vmatprep.subr.bf16.mxu0 %v962_v9 }
 0x14c   :  { %965 = vmatpush1.bf16.msra.mxu0 %v964_v15 }
 0x14d   :  { %967 = vmatprep.subr.bf16.mxu0 %v966_v16 }
 0x150   :  { %969 = vmatpush1.bf16.msra.mxu0 %v968_v22 }
 0x151   :  { %971 = vmatprep.subr.bf16.mxu0 %v970_v23 }
 0x154   :  { %973 = vmatpush1.bf16.msra.mxu0 %v972_v28 }
 0x155   :  { %975 = vmatprep.subr.bf16.mxu0 %v974_v30 }
 0x158   :  { %v324_v43 = vpop.f32.mrb[4].mxu1  ;;  %977 = vmatpush1.bf16.msra.mxu0 %v976_v37 }
 0x159   :  { %v325_v45 = vadd.f32 %v324_v43, %v172_v38  ;;  %v326_v46 = vpop.f32.mrb[5].mxu1  ;;  %979 = vmatprep.subr.bf16.mxu0 %v978_v39  ;;  %v695_v39 = vrot.slane %v690_v33, %v1678_v48 }
 0x15a   :  { %v327_v47 = vadd.f32 %v326_v46, %v176_v42 }
 0x15b   :  { %v337_v53 = vmax.f32 %v325_v45, 0.0 }
 0x15c   :  { %v338_v51 = vmax.f32 %v327_v47, 0.0  ;;  %v330_v52 = vpop.f32.mrb[6].mxu1  ;;  %981 = vmatpush1.bf16.msra.mxu0 %v980_v44 }
 0x15d   :  { %v331_v54 = vadd.f32 %v330_v52, %v172_v38  ;;  %v332_v55 = vpop.f32.mrb[7].mxu1 }
 0x15e   :  { %v333_v56 = vadd.f32 %v332_v55, %v176_v42  ;;  %624 = vmatprep.mubr.f32.mxu0 %v338_v51 }
 0x15f   :  { %625 = vmatmul.mubr.f32.vlgmr.msra.gmra.mrb[0].mxu0 %v337_v53  ;;  %v341_v58 = vmax.f32 %v331_v54, 0.0 }
 0x160   :  { %v342_v57 = vmax.f32 %v333_v56, 0.0 }
 0x162   :  { %630 = vmatprep.mubr.f32.mxu0 %v342_v57 }
 0x163   :  { %631 = vmatmul.mubr.f32.gmra.mrb[2].mxu0 %v341_v58 }
 0x232   :  { %v626_v61 = vpop.f32.mrb[0].mxu0 }
 0x233   :  { %v982_v62 = vadd.f32 %v626_v61, %v476_v59  ;;  %v628_v63 = vpop.f32.mrb[1].mxu0 }
 0x234   :  { %v983_v0 = vadd.f32 %v628_v63, %v480_v60 }
 0x235   :  { %v637_v1 = vadd.f32 %v982_v62, %v1362_v14 }
 0x236   :  { %v632_v2 = vpop.f32.mrb[2].mxu0  ;;  %v638_v4 = vadd.f32 %v997_v3, %v983_v0 }
 0x237   :  { %v984_v5 = vadd.f32 %v632_v2, %v476_v59  ;;  %v634_v6 = vpop.f32.mrb[3].mxu0 }
 0x238   :  { %v985_v7 = vadd.f32 %v634_v6, %v480_v60  ;;  %v641_v8 = vadd.f32 %v638_v4, %v637_v1 }
 0x239   :  { %v639_v9 = vadd.f32 %v984_v5, %v1398_v29 }
 0x23a   :  { %v640_v10 = vadd.f32 %v985_v7, %v1376_v20  ;;  %642 = vadd.xlane.f32.xlu0 %v641_v8 }
 0x23c   :  { %v644_v11 = vadd.f32 %v640_v10, %v639_v9 }
 0x23e   :  { %645 = vadd.xlane.f32.xlu0 %v644_v11 }
 0x2c7   :  { %v643_v12 = vpop.xlane.xlu0 %642 }
 0x2c8   :  { %v648_v13 = vmul.f32 0.00390625, %v643_v12 }
 0x2ca   :  { %v650_v14 = vsub.f32 %v637_v1, %v648_v13  ;;  %v651_v15 = vsub.f32 %v638_v4, %v648_v13 }
 0x2cb   :  { %v646_v16 = vpop.xlane.xlu0 %645 }
 0x2cc   :  { %v649_v17 = vmul.f32 0.00390625, %v646_v16  ;;  %v654_v18 = vmul.f32 %v650_v14, %v650_v14  ;;  %v655_v19 = vmul.f32 %v651_v15, %v651_v15 }
 0x2ce   :  { %v652_v21 = vsub.f32 %v639_v9, %v649_v17  ;;  %v653_v22 = vsub.f32 %v640_v10, %v649_v17  ;;  %v658_v23 = vadd.f32 %v655_v19, %v654_v18 }
 0x2d0   :  { %659 = vadd.xlane.f32.xlu1 %v658_v23  ;;  %v656_v24 = vmul.f32 %v652_v21, %v652_v21  ;;  %v657_v25 = vmul.f32 %v653_v22, %v653_v22 }
 0x2d2   :  { %v661_v29 = vadd.f32 %v657_v25, %v656_v24 }
 0x2d4   :  { %662 = vadd.xlane.f32.xlu1 %v661_v29 }
 0x35d   :  { %v660_v20 = vpop.xlane.xlu1 %659 }
 0x35e   :  { %v664_v26 = vmul.f32 0.00390625, %v660_v20 }
 0x360   :  { %v666_v27 = vadd.f32 1e-05, %v664_v26 }
 0x361   :  { %v663_v28 = vpop.xlane.xlu1 %662 }
 0x362   :  { %993 = vrsqrt.f32 %v666_v27  ;;  %v665_v30 = vmul.f32 0.00390625, %v663_v28 }
 0x364   :  { %v667_v31 = vadd.f32 1e-05, %v665_v30 }
 0x366   :  { %995 = vrsqrt.f32 %v667_v31 }
 0x36c   :  { %v994_v36 = vpop.eup %993 }
 0x36d   :  { %v670_v37 = vmul.f32 %v994_v36, %v650_v14  ;;  %v671_v38 = vmul.f32 %v994_v36, %v651_v15 }
 0x36f   :  { %v686_v41 = vmul.f32 %v679_v34, %v670_v37  ;;  %v687_v42 = vmul.f32 %v683_v35, %v671_v38 }
 0x370   :  { %v996_v43 = vpop.eup %995 }
 0x371   :  { %v672_v44 = vmul.f32 %v996_v43, %v652_v21  ;;  %v673_v45 = vmul.f32 %v996_v43, %v653_v22  ;;  %v702_v46 = vadd.f32 %v695_v39, %v686_v41  ;;  %v703_v47 = vadd.f32 %v699_v40, %v687_v42 }
 0x373   :  { %v688_v51 = vmul.f32 %v679_v34, %v672_v44  ;;  %v689_v52 = vmul.f32 %v683_v35, %v673_v45  ;;  %706 = vst [vmem:[#allocation2] sm:$0xff] %v702_v46  ;;  %707 = vst [vmem:[#allocation2 + $0x8] sm:$0xff] %v703_v47 }
 0x375   :  { %v704_v53 = vadd.f32 %v695_v39, %v688_v51  ;;  %v705_v54 = vadd.f32 %v699_v40, %v689_v52 }
 0x377   :  { %708 = vst [vmem:[#allocation2 + $0x10] sm:$0xff] %v704_v53  ;;  %709 = vst [vmem:[#allocation2 + $0x18] sm:$0xff] %v705_v54 }
 0x378   :  { %1009 = shalt.err (!%p1006_p4)
}
 0x379   :  { %s1010_s13 = scalar_lea.hbm %s1922_s7, 512 }
 0x37a   :  { %p1011_p5 = scmp.ne.s32.totalorder %s1922_s7, %s1010_s13  ;;  %p1014_p6 = scmp.lt.u32.totalorder %s1010_s13, %s1922_s7 }
 0x37c   :  { %p1016_p7 = pnand %p1014_p6, %p1011_p5 }
 0x37e   :  { %1019 = shalt.err (!%p1016_p7)
}
 0x37f   :  { %s1023_s17 = smov 256   ;;  %s1024_s18 = smov 16  }
 0x380   :  { %721 = dma.vmem_to_hbm [thread:$0]  %s716_s6, 512, %s1922_s7, [#allocation3], %s1023_s17, %s1023_s17, %s1024_s18  }
 0x381   :  { %1020 = dma.done.wait [#allocation3], 512  }
 0x382   :  { %1021 = vsyncadd [#allocation3], 4294966784 }
 0x383   :  { %725 = vsyncpa [#allocation3], 1 }

</bundles_post_ra>
